<compile_context>
chip_gen: v5e
topology: v5e:2x2
jax: 0.10.0
libtpu: 0.0.40
codegen_flags: <defaults>
</compile_context>

<pallas_src>
import jax
import jax.numpy as jnp
from jax.experimental import pallas as pl
from jax.experimental.pallas import tpu as pltpu


# ---------------------------------------------------------------------------
# Stage geometry (fixed by the module: 28x28x1 input, k=5 convs, 2x2 pools)
# ---------------------------------------------------------------------------
# conv1: pad=1 -> 30x30 padded input, 26x26 conv output, 13x13 pooled.
C1_WW = 15                      # per-phase grid width (30 / 2)
C1_CWP = 256                    # per-sample column slot (>= 15*15, >= last valid read 224)
C1_HALO = 2 * C1_WW + 2         # max in-kernel column shift (qh, qw <= 2)
# conv2: 13x13 input (padded to 14x14 for the phase split), 9x9 conv, 4x4 pooled.
C2_WW = 7
C2_CWP = 48                     # >= last valid read index 40
C2_HALO = 2 * C2_WW + 2


# ---------------------------------------------------------------------------
# helpers
# ---------------------------------------------------------------------------

def _round_up(x, m):
    return (x + m - 1) // m * m


def _pick_tb(n, tb_max):
    """Samples per conv grid step; capped at ceil(n/2) so there are >= 2 grid
    steps whenever n >= 2 (lets the 'parallel' axis shard across both
    TensorCores on v7x)."""
    tb = min(tb_max, max(1, -(-n // 2)))
    return tb, -(-n // tb)


def _pick_batch_tiling(n, tmax=256):
    n_pad = _round_up(n, 8)
    tb = min(tmax, max(8, _round_up(n_pad // 2, 8)))
    n_pad = _round_up(n_pad, tb)
    return n_pad, tb


# ---------------------------------------------------------------------------
# Fused conv + bias + ReLU + 2x2 maxpool kernel (in-VMEM patch assembly)
# ---------------------------------------------------------------------------

def _make_conv_kernel(cin, cout, ww, bwout, patch_dtype):
    # 36 distinct (phase, column-shift) views: e = dh+kh, f = dw+kw in 0..5.
    views = [((e % 2) * 2 + (f % 2), (e // 2) * ww + (f // 2))
             for e in range(6) for f in range(6)]

    def kernel(xs_ref, w_ref, b_ref, o_ref, p_ref):
        # In-VMEM "im2col": 36 contiguous lane-shifted copies (no HBM traffic).
        for v, (p, s) in enumerate(views):
            if cin == 1:
                p_ref[v, :] = xs_ref[0, p, pl.ds(s, bwout)].astype(patch_dtype)
            else:
                p_ref[v * cin:(v + 1) * cin, :] = (
                    xs_ref[0, p, :, pl.ds(s, bwout)].astype(patch_dtype))
        # One MXU matmul covering all 4 pool offsets (the 4 output row-groups).
        y = jnp.dot(w_ref[...], p_ref[...], preferred_element_type=jnp.float32)
        m = jnp.maximum(jnp.maximum(y[:cout], y[cout:2 * cout]),
                        jnp.maximum(y[2 * cout:3 * cout], y[3 * cout:4 * cout]))
        o_ref[0] = jnp.maximum(m + b_ref[...], 0.0).astype(o_ref.dtype)

    return kernel


def conv_relu_pool(xs, w_big, b_col, *, cin, cout, ww, bwout, patch_dtype,
                   out_dtype):
    """xs: (G, 4, BWin) [cin==1] or (G, 4, cin, BWin) phase blocks (bf16).
    w_big: (4*cout, 36*cin) pre-packed weights.  Returns (G, cout, bwout)."""
    g = xs.shape[0]
    nz = xs.ndim - 1
    kernel = _make_conv_kernel(cin, cout, ww, bwout, patch_dtype)
    return pl.pallas_call(
        kernel,
        out_shape=jax.ShapeDtypeStruct((g, cout, bwout), out_dtype),
        grid=(g,),
        in_specs=[
            pl.BlockSpec((1,) + xs.shape[1:], lambda i: (i,) + (0,) * nz),
            pl.BlockSpec(w_big.shape, lambda i: (0, 0)),      # resident weights
            pl.BlockSpec(b_col.shape, lambda i: (0, 0)),      # resident bias
        ],
        out_specs=pl.BlockSpec((1, cout, bwout), lambda i: (i, 0, 0)),
        scratch_shapes=[pltpu.VMEM((36 * cin, bwout), patch_dtype)],
        compiler_params=pltpu.CompilerParams(
            dimension_semantics=("parallel",),
            vmem_limit_bytes=32 * 1024 * 1024),
    )(xs, w_big, b_col)


# ---------------------------------------------------------------------------
# Fused FC stack kernel (fc1+ReLU -> fc2+ReLU -> fc3)
# ---------------------------------------------------------------------------

def fc_stack_kernel(x_ref, w1_ref, b1_ref, w2_ref, b2_ref, w3_ref, b3_ref,
                    o_ref):
    h = jnp.dot(x_ref[...], w1_ref[...], preferred_element_type=jnp.float32)
    h = jnp.maximum(h + b1_ref[...], 0.0)
    h = jnp.dot(h, w2_ref[...], preferred_element_type=jnp.float32)
    h = jnp.maximum(h + b2_ref[...], 0.0)
    o = jnp.dot(h, w3_ref[...], preferred_element_type=jnp.float32)
    o_ref[...] = (o + b3_ref[...]).astype(o_ref.dtype)


def fc_stack(x, w1, b1, w2, b2, w3, b3):
    n, din = x.shape
    dout = w3.shape[1]
    n_pad, tb = _pick_batch_tiling(n)
    xp = jnp.pad(x, ((0, n_pad - n), (0, 0)))
    out = pl.pallas_call(
        fc_stack_kernel,
        out_shape=jax.ShapeDtypeStruct((n_pad, dout), jnp.float32),
        grid=(n_pad // tb,),
        in_specs=[
            pl.BlockSpec((tb, din), lambda i: (i, 0)),
            pl.BlockSpec(w1.shape, lambda i: (0, 0)),
            pl.BlockSpec(b1.shape, lambda i: (0, 0)),
            pl.BlockSpec(w2.shape, lambda i: (0, 0)),
            pl.BlockSpec(b2.shape, lambda i: (0, 0)),
            pl.BlockSpec(w3.shape, lambda i: (0, 0)),
            pl.BlockSpec(b3.shape, lambda i: (0, 0)),
        ],
        out_specs=pl.BlockSpec((tb, dout), lambda i: (i, 0)),
        compiler_params=pltpu.CompilerParams(
            dimension_semantics=("parallel",),
            vmem_limit_bytes=32 * 1024 * 1024),
    )(xp, w1, b1, w2, b2, w3, b3)
    return out[:n]


# ---------------------------------------------------------------------------
# XLA glue: compact phase-split / regroup between stages (~raw-activation size)
# ---------------------------------------------------------------------------

def _conv1_inputs(x, tb):
    """x: (N, 1, 28, 28) f32 -> (G, 4, tb*C1_CWP + C1_HALO) bf16 phase blocks."""
    n = x.shape[0]
    g = -(-n // tb)
    xp = jnp.pad(x[:, 0], ((0, g * tb - n), (1, 1), (1, 1)))      # conv1 pad=1
    ph = jnp.stack([xp[:, rh::2, rw::2] for rh in range(2) for rw in range(2)],
                   axis=1)                                        # (g*tb, 4, 15, 15)
    ph = ph.reshape(g * tb, 4, C1_WW * C1_WW)
    ph = jnp.pad(ph, ((0, 0), (0, 0), (0, C1_CWP - C1_WW * C1_WW)))
    ph = ph.reshape(g, tb, 4, C1_CWP).transpose(0, 2, 1, 3).reshape(
        g, 4, tb * C1_CWP)
    ph = jnp.pad(ph, ((0, 0), (0, 0), (0, C1_HALO)))
    return ph.astype(jnp.bfloat16)


def _conv2_inputs(y1, n, tb):
    """conv1 output (G1, 32, tb1*C1_CWP) bf16 ->
       (G2, 4, 32, tb*C2_CWP + C2_HALO) bf16 phase blocks for conv2."""
    g1 = y1.shape[0]
    tb1 = y1.shape[2] // C1_CWP
    h = y1.reshape(g1, 32, tb1, C1_CWP)[..., :C1_WW * C1_WW]
    h = h.reshape(g1, 32, tb1, C1_WW, C1_WW)[..., :13, :13]       # valid 13x13
    h = h.transpose(0, 2, 1, 3, 4).reshape(g1 * tb1, 32, 13, 13)[:n]
    g = -(-n // tb)
    h = jnp.pad(h, ((0, g * tb - n), (0, 0), (0, 1), (0, 1)))     # 13 -> 14 (even)
    ph = jnp.stack([h[:, :, rh::2, rw::2] for rh in range(2) for rw in range(2)],
                   axis=1)                                        # (g*tb, 4, 32, 7, 7)
    ph = ph.reshape(g * tb, 4, 32, C2_WW * C2_WW)[..., :C2_CWP]
    ph = ph.reshape(g, tb, 4, 32, C2_CWP).transpose(0, 2, 3, 1, 4).reshape(
        g, 4, 32, tb * C2_CWP)
    ph = jnp.pad(ph, ((0, 0), (0, 0), (0, 0), (0, C2_HALO)))
    return ph.astype(jnp.bfloat16)


def _features(y2, n):
    """conv2 output (G2, 16, tb2*C2_CWP) f32 -> (N, 256) torch (c, h, w) order."""
    g2 = y2.shape[0]
    tb2 = y2.shape[2] // C2_CWP
    h = y2.reshape(g2, 16, tb2, C2_CWP)[..., :4 * C2_WW]
    h = h.reshape(g2, 16, tb2, 4, C2_WW)[..., :4]                 # valid 4x4
    h = h.transpose(0, 2, 1, 3, 4).reshape(g2 * tb2, 16 * 4 * 4)[:n]
    return h


# ---------------------------------------------------------------------------
# Parameters (torch-shaped) and their one-time kernel-layout repack
# ---------------------------------------------------------------------------

def init_params(key):
    ks = jax.random.split(key, 10)
    s = 0.1
    return {
        "w_conv1": jax.random.normal(ks[0], (32, 1, 5, 5), jnp.float32) * s,
        "b_conv1": jax.random.normal(ks[1], (32,), jnp.float32) * s,
        "w_conv2": jax.random.normal(ks[2], (16, 32, 5, 5), jnp.float32) * s,
        "b_conv2": jax.random.normal(ks[3], (16,), jnp.float32) * s,
        "w_fc1": jax.random.normal(ks[4], (128, 16 * 4 * 4), jnp.float32) * s,
        "b_fc1": jax.random.normal(ks[5], (128,), jnp.float32) * s,
        "w_fc2": jax.random.normal(ks[6], (64, 128), jnp.float32) * s,
        "b_fc2": jax.random.normal(ks[7], (64,), jnp.float32) * s,
        "w_fc3": jax.random.normal(ks[8], (10, 64), jnp.float32) * s,
        "b_fc3": jax.random.normal(ks[9], (10,), jnp.float32) * s,
    }


def _pack_conv_weight(w, dtype):
    """(Cout, Cin, 5, 5) torch conv weight -> (4*Cout, 36*Cin): row-group d =
    (dh,dw) pool offset, column (e*6+f)*Cin+ci holds w[co, ci, e-dh, f-dw]
    (zero outside the 5x5 taps) -- matches the kernel's 36-view patch rows."""
    cout, cin = w.shape[0], w.shape[1]
    blocks = []
    for dh in range(2):
        for dw in range(2):
            wp = jnp.pad(w, ((0, 0), (0, 0), (dh, 1 - dh), (dw, 1 - dw)))
            blocks.append(jnp.transpose(wp, (0, 2, 3, 1)).reshape(cout, 36 * cin))
    return jnp.concatenate(blocks, axis=0).astype(dtype)


def prepare_params(params):
    """One-time repack OUTSIDE jit -- no runtime weight relayouts."""
    return {
        "conv1_w": _pack_conv_weight(params["w_conv1"], jnp.float32),   # (128, 36)
        "conv1_b": params["b_conv1"].reshape(-1, 1),
        "conv2_w": _pack_conv_weight(params["w_conv2"], jnp.bfloat16),  # (64, 1152)
        "conv2_b": params["b_conv2"].reshape(-1, 1),
        "fc1_w": params["w_fc1"].T, "fc1_b": params["b_fc1"].reshape(1, -1),
        "fc2_w": params["w_fc2"].T, "fc2_b": params["b_fc2"].reshape(1, -1),
        "fc3_w": params["w_fc3"].T, "fc3_b": params["b_fc3"].reshape(1, -1),
    }


# ---------------------------------------------------------------------------
# Full model forward
# ---------------------------------------------------------------------------

def cnn_forward(prep, x):
    """x: (N, 1, 28, 28) float32 NCHW -> logits (N, 10)."""
    n = x.shape[0]

    tb1, _ = _pick_tb(n, 8)
    xs1 = _conv1_inputs(x, tb1)
    y1 = conv_relu_pool(xs1, prep["conv1_w"], prep["conv1_b"],
                        cin=1, cout=32, ww=C1_WW, bwout=tb1 * C1_CWP,
                        patch_dtype=jnp.float32, out_dtype=jnp.bfloat16)

    tb2, _ = _pick_tb(n, 16)
    xs2 = _conv2_inputs(y1, n, tb2)
    y2 = conv_relu_pool(xs2, prep["conv2_w"], prep["conv2_b"],
                        cin=32, cout=16, ww=C2_WW, bwout=tb2 * C2_CWP,
                        patch_dtype=jnp.bfloat16, out_dtype=jnp.float32)

    feat = _features(y2, n)
    return fc_stack(feat,
                    prep["fc1_w"], prep["fc1_b"],
                    prep["fc2_w"], prep["fc2_b"],
                    prep["fc3_w"], prep["fc3_b"])


# ---------------------------------------------------------------------------
# Pure-JAX f32 reference (sanity check only)
# ---------------------------------------------------------------------------

def _reference_forward(params, x):
    def conv(h, w, b, pad):
        y = jax.lax.conv_general_dilated(
            h, w, window_strides=(1, 1), padding=((pad, pad), (pad, pad)),
            dimension_numbers=("NCHW", "OIHW", "NCHW"))
        return y + b.reshape(1, -1, 1, 1)

    def pool(h):
        return jax.lax.reduce_window(h, -jnp.inf, jax.lax.max,
                                     (1, 1, 2, 2), (1, 1, 2, 2), "VALID")

    h = pool(jax.nn.relu(conv(x, params["w_conv1"], params["b_conv1"], 1)))
    h = pool(jax.nn.relu(conv(h, params["w_conv2"], params["b_conv2"], 0)))
    h = h.reshape(h.shape[0], -1)
    h = jax.nn.relu(h @ params["w_fc1"].T + params["b_fc1"])
    h = jax.nn.relu(h @ params["w_fc2"].T + params["b_fc2"])
    return h @ params["w_fc3"].T + params["b_fc3"]


if __name__ == "__main__":
    key = jax.random.PRNGKey(0)
    k_params, k_x = jax.random.split(key)
    params = init_params(k_params)
    prep = prepare_params(params)             # weight repack hoisted out of jit
    # 28x28 single-channel input is implied by fc1 = 16*4*4
    x = jax.random.normal(k_x, (2, 1, 28, 28), jnp.float32)

    logits = jax.block_until_ready(jax.jit(cnn_forward)(prep, x))

    assert logits.shape == (2, 10), logits.shape
    assert bool(jnp.all(jnp.isfinite(logits)))
    # Loose sanity check vs a pure-JAX f32 reference (the conv path runs with
    # bf16 operands / f32 accumulation, so allow some drift).
    ref = _reference_forward(params, x)
    err = float(jnp.max(jnp.abs(logits - ref)))
    assert err < 0.2 * (1.0 + float(jnp.max(jnp.abs(ref)))), err
    print("KERNEL_OK")
</pallas_src>

<mosaic_0001>
module attributes {stable_mosaic.version = 11 : i64} {
  func.func @kernel(%arg0: i32, %arg1: memref<1x4x288xbf16, #tpu.memory_space<vmem>>, %arg2: memref<128x36xf32, #tpu.memory_space<vmem>>, %arg3: memref<32x1xf32, #tpu.memory_space<vmem>>, %arg4: memref<1x32x256xbf16, #tpu.memory_space<vmem>>, %arg5: memref<36x256xf32, #tpu.memory_space<vmem>>) attributes {dimension_semantics = [#tpu.dimension_semantics<parallel>], iteration_bounds = array<i64: 2>, scalar_prefetch = 0 : i64, scratch_operands = 1 : i64, tpu.core_type = #tpu.core_type<tc>, window_params = [{transform_indices = @transform_0, window_bounds = array<i64: 1, 4, 288>}, {pipeline_mode = #tpu.pipeline_mode<synchronous>, transform_indices = @transform_1, window_bounds = array<i64: 128, 36>}, {pipeline_mode = #tpu.pipeline_mode<synchronous>, transform_indices = @transform_2, window_bounds = array<i64: 32, 1>}, {transform_indices = @transform_3, window_bounds = array<i64: 1, 32, 256>}]} {
    %c0 = arith.constant 0 : index
    %c0_0 = arith.constant 0 : index
    %c0_1 = arith.constant 0 : index
    %0 = vector.load %arg1[%c0, %c0_0, %c0_1] : memref<1x4x288xbf16, #tpu.memory_space<vmem>>, vector<1x1x256xbf16>
    %1 = vector.shape_cast %0 : vector<1x1x256xbf16> to vector<256xbf16>
    %2 = arith.extf %1 : vector<256xbf16> to vector<256xf32>
    %c0_2 = arith.constant 0 : index
    %c0_3 = arith.constant 0 : index
    %3 = vector.load %arg5[%c0_2, %c0_3] : memref<36x256xf32, #tpu.memory_space<vmem>>, vector<1x256xf32>
    %4 = vector.shape_cast %3 : vector<1x256xf32> to vector<256xf32>
    %5 = vector.shape_cast %2 : vector<256xf32> to vector<1x256xf32>
    tpu.vector_store %arg5[%c0_2, %c0_3], %5 {strides = array<i32>} : memref<36x256xf32, #tpu.memory_space<vmem>>, vector<1x256xf32>,
    %c0_4 = arith.constant 0 : index
    %c1 = arith.constant 1 : index
    %c0_5 = arith.constant 0 : index
    %6 = vector.load %arg1[%c0_4, %c1, %c0_5] : memref<1x4x288xbf16, #tpu.memory_space<vmem>>, vector<1x1x256xbf16>
    %7 = vector.shape_cast %6 : vector<1x1x256xbf16> to vector<256xbf16>
    %8 = arith.extf %7 : vector<256xbf16> to vector<256xf32>
    %c1_6 = arith.constant 1 : index
    %c0_7 = arith.constant 0 : index
    %9 = vector.load %arg5[%c1_6, %c0_7] : memref<36x256xf32, #tpu.memory_space<vmem>>, vector<1x256xf32>
    %10 = vector.shape_cast %9 : vector<1x256xf32> to vector<256xf32>
    %11 = vector.shape_cast %8 : vector<256xf32> to vector<1x256xf32>
    tpu.vector_store %arg5[%c1_6, %c0_7], %11 {strides = array<i32>} : memref<36x256xf32, #tpu.memory_space<vmem>>, vector<1x256xf32>,
    %c0_8 = arith.constant 0 : index
    %c0_9 = arith.constant 0 : index
    %c1_10 = arith.constant 1 : index
    %12 = vector.load %arg1[%c0_8, %c0_9, %c1_10] : memref<1x4x288xbf16, #tpu.memory_space<vmem>>, vector<1x1x256xbf16>
    %13 = vector.shape_cast %12 : vector<1x1x256xbf16> to vector<256xbf16>
    %14 = arith.extf %13 : vector<256xbf16> to vector<256xf32>
    %c2 = arith.constant 2 : index
    %c0_11 = arith.constant 0 : index
    %15 = vector.load %arg5[%c2, %c0_11] : memref<36x256xf32, #tpu.memory_space<vmem>>, vector<1x256xf32>
    %16 = vector.shape_cast %15 : vector<1x256xf32> to vector<256xf32>
    %17 = vector.shape_cast %14 : vector<256xf32> to vector<1x256xf32>
    tpu.vector_store %arg5[%c2, %c0_11], %17 {strides = array<i32>} : memref<36x256xf32, #tpu.memory_space<vmem>>, vector<1x256xf32>,
    %c0_12 = arith.constant 0 : index
    %c1_13 = arith.constant 1 : index
    %c1_14 = arith.constant 1 : index
    %18 = vector.load %arg1[%c0_12, %c1_13, %c1_14] : memref<1x4x288xbf16, #tpu.memory_space<vmem>>, vector<1x1x256xbf16>
    %19 = vector.shape_cast %18 : vector<1x1x256xbf16> to vector<256xbf16>
    %20 = arith.extf %19 : vector<256xbf16> to vector<256xf32>
    %c3 = arith.constant 3 : index
    %c0_15 = arith.constant 0 : index
    %21 = vector.load %arg5[%c3, %c0_15] : memref<36x256xf32, #tpu.memory_space<vmem>>, vector<1x256xf32>
    %22 = vector.shape_cast %21 : vector<1x256xf32> to vector<256xf32>
    %23 = vector.shape_cast %20 : vector<256xf32> to vector<1x256xf32>
    tpu.vector_store %arg5[%c3, %c0_15], %23 {strides = array<i32>} : memref<36x256xf32, #tpu.memory_space<vmem>>, vector<1x256xf32>,
    %c0_16 = arith.constant 0 : index
    %c0_17 = arith.constant 0 : index
    %c2_18 = arith.constant 2 : index
    %24 = vector.load %arg1[%c0_16, %c0_17, %c2_18] : memref<1x4x288xbf16, #tpu.memory_space<vmem>>, vector<1x1x256xbf16>
    %25 = vector.shape_cast %24 : vector<1x1x256xbf16> to vector<256xbf16>
    %26 = arith.extf %25 : vector<256xbf16> to vector<256xf32>
    %c4 = arith.constant 4 : index
    %c0_19 = arith.constant 0 : index
    %27 = vector.load %arg5[%c4, %c0_19] : memref<36x256xf32, #tpu.memory_space<vmem>>, vector<1x256xf32>
    %28 = vector.shape_cast %27 : vector<1x256xf32> to vector<256xf32>
    %29 = vector.shape_cast %26 : vector<256xf32> to vector<1x256xf32>
    tpu.vector_store %arg5[%c4, %c0_19], %29 {strides = array<i32>} : memref<36x256xf32, #tpu.memory_space<vmem>>, vector<1x256xf32>,
    %c0_20 = arith.constant 0 : index
    %c1_21 = arith.constant 1 : index
    %c2_22 = arith.constant 2 : index
    %30 = vector.load %arg1[%c0_20, %c1_21, %c2_22] : memref<1x4x288xbf16, #tpu.memory_space<vmem>>, vector<1x1x256xbf16>
    %31 = vector.shape_cast %30 : vector<1x1x256xbf16> to vector<256xbf16>
    %32 = arith.extf %31 : vector<256xbf16> to vector<256xf32>
    %c5 = arith.constant 5 : index
    %c0_23 = arith.constant 0 : index
    %33 = vector.load %arg5[%c5, %c0_23] : memref<36x256xf32, #tpu.memory_space<vmem>>, vector<1x256xf32>
    %34 = vector.shape_cast %33 : vector<1x256xf32> to vector<256xf32>
    %35 = vector.shape_cast %32 : vector<256xf32> to vector<1x256xf32>
    tpu.vector_store %arg5[%c5, %c0_23], %35 {strides = array<i32>} : memref<36x256xf32, #tpu.memory_space<vmem>>, vector<1x256xf32>,
    %c0_24 = arith.constant 0 : index
    %c2_25 = arith.constant 2 : index
    %c0_26 = arith.constant 0 : index
    %36 = vector.load %arg1[%c0_24, %c2_25, %c0_26] : memref<1x4x288xbf16, #tpu.memory_space<vmem>>, vector<1x1x256xbf16>
    %37 = vector.shape_cast %36 : vector<1x1x256xbf16> to vector<256xbf16>
    %38 = arith.extf %37 : vector<256xbf16> to vector<256xf32>
    %c6 = arith.constant 6 : index
    %c0_27 = arith.constant 0 : index
    %39 = vector.load %arg5[%c6, %c0_27] : memref<36x256xf32, #tpu.memory_space<vmem>>, vector<1x256xf32>
    %40 = vector.shape_cast %39 : vector<1x256xf32> to vector<256xf32>
    %41 = vector.shape_cast %38 : vector<256xf32> to vector<1x256xf32>
    tpu.vector_store %arg5[%c6, %c0_27], %41 {strides = array<i32>} : memref<36x256xf32, #tpu.memory_space<vmem>>, vector<1x256xf32>,
    %c0_28 = arith.constant 0 : index
    %c3_29 = arith.constant 3 : index
    %c0_30 = arith.constant 0 : index
    %42 = vector.load %arg1[%c0_28, %c3_29, %c0_30] : memref<1x4x288xbf16, #tpu.memory_space<vmem>>, vector<1x1x256xbf16>
    %43 = vector.shape_cast %42 : vector<1x1x256xbf16> to vector<256xbf16>
    %44 = arith.extf %43 : vector<256xbf16> to vector<256xf32>
    %c7 = arith.constant 7 : index
    %c0_31 = arith.constant 0 : index
    %45 = vector.load %arg5[%c7, %c0_31] : memref<36x256xf32, #tpu.memory_space<vmem>>, vector<1x256xf32>
    %46 = vector.shape_cast %45 : vector<1x256xf32> to vector<256xf32>
    %47 = vector.shape_cast %44 : vector<256xf32> to vector<1x256xf32>
    tpu.vector_store %arg5[%c7, %c0_31], %47 {strides = array<i32>} : memref<36x256xf32, #tpu.memory_space<vmem>>, vector<1x256xf32>,
    %c0_32 = arith.constant 0 : index
    %c2_33 = arith.constant 2 : index
    %c1_34 = arith.constant 1 : index
    %48 = vector.load %arg1[%c0_32, %c2_33, %c1_34] : memref<1x4x288xbf16, #tpu.memory_space<vmem>>, vector<1x1x256xbf16>
    %49 = vector.shape_cast %48 : vector<1x1x256xbf16> to vector<256xbf16>
    %50 = arith.extf %49 : vector<256xbf16> to vector<256xf32>
    %c8 = arith.constant 8 : index
    %c0_35 = arith.constant 0 : index
    %51 = vector.load %arg5[%c8, %c0_35] : memref<36x256xf32, #tpu.memory_space<vmem>>, vector<1x256xf32>
    %52 = vector.shape_cast %51 : vector<1x256xf32> to vector<256xf32>
    %53 = vector.shape_cast %50 : vector<256xf32> to vector<1x256xf32>
    tpu.vector_store %arg5[%c8, %c0_35], %53 {strides = array<i32>} : memref<36x256xf32, #tpu.memory_space<vmem>>, vector<1x256xf32>,
    %c0_36 = arith.constant 0 : index
    %c3_37 = arith.constant 3 : index
    %c1_38 = arith.constant 1 : index
    %54 = vector.load %arg1[%c0_36, %c3_37, %c1_38] : memref<1x4x288xbf16, #tpu.memory_space<vmem>>, vector<1x1x256xbf16>
    %55 = vector.shape_cast %54 : vector<1x1x256xbf16> to vector<256xbf16>
    %56 = arith.extf %55 : vector<256xbf16> to vector<256xf32>
    %c9 = arith.constant 9 : index
    %c0_39 = arith.constant 0 : index
    %57 = vector.load %arg5[%c9, %c0_39] : memref<36x256xf32, #tpu.memory_space<vmem>>, vector<1x256xf32>
    %58 = vector.shape_cast %57 : vector<1x256xf32> to vector<256xf32>
    %59 = vector.shape_cast %56 : vector<256xf32> to vector<1x256xf32>
    tpu.vector_store %arg5[%c9, %c0_39], %59 {strides = array<i32>} : memref<36x256xf32, #tpu.memory_space<vmem>>, vector<1x256xf32>,
    %c0_40 = arith.constant 0 : index
    %c2_41 = arith.constant 2 : index
    %c2_42 = arith.constant 2 : index
    %60 = vector.load %arg1[%c0_40, %c2_41, %c2_42] : memref<1x4x288xbf16, #tpu.memory_space<vmem>>, vector<1x1x256xbf16>
    %61 = vector.shape_cast %60 : vector<1x1x256xbf16> to vector<256xbf16>
    %62 = arith.extf %61 : vector<256xbf16> to vector<256xf32>
    %c10 = arith.constant 10 : index
    %c0_43 = arith.constant 0 : index
    %63 = vector.load %arg5[%c10, %c0_43] : memref<36x256xf32, #tpu.memory_space<vmem>>, vector<1x256xf32>
    %64 = vector.shape_cast %63 : vector<1x256xf32> to vector<256xf32>
    %65 = vector.shape_cast %62 : vector<256xf32> to vector<1x256xf32>
    tpu.vector_store %arg5[%c10, %c0_43], %65 {strides = array<i32>} : memref<36x256xf32, #tpu.memory_space<vmem>>, vector<1x256xf32>,
    %c0_44 = arith.constant 0 : index
    %c3_45 = arith.constant 3 : index
    %c2_46 = arith.constant 2 : index
    %66 = vector.load %arg1[%c0_44, %c3_45, %c2_46] : memref<1x4x288xbf16, #tpu.memory_space<vmem>>, vector<1x1x256xbf16>
    %67 = vector.shape_cast %66 : vector<1x1x256xbf16> to vector<256xbf16>
    %68 = arith.extf %67 : vector<256xbf16> to vector<256xf32>
    %c11 = arith.constant 11 : index
    %c0_47 = arith.constant 0 : index
    %69 = vector.load %arg5[%c11, %c0_47] : memref<36x256xf32, #tpu.memory_space<vmem>>, vector<1x256xf32>
    %70 = vector.shape_cast %69 : vector<1x256xf32> to vector<256xf32>
    %71 = vector.shape_cast %68 : vector<256xf32> to vector<1x256xf32>
    tpu.vector_store %arg5[%c11, %c0_47], %71 {strides = array<i32>} : memref<36x256xf32, #tpu.memory_space<vmem>>, vector<1x256xf32>,
    %c0_48 = arith.constant 0 : index
    %c0_49 = arith.constant 0 : index
    %c15 = arith.constant 15 : index
    %72 = vector.load %arg1[%c0_48, %c0_49, %c15] : memref<1x4x288xbf16, #tpu.memory_space<vmem>>, vector<1x1x256xbf16>
    %73 = vector.shape_cast %72 : vector<1x1x256xbf16> to vector<256xbf16>
    %74 = arith.extf %73 : vector<256xbf16> to vector<256xf32>
    %c12 = arith.constant 12 : index
    %c0_50 = arith.constant 0 : index
    %75 = vector.load %arg5[%c12, %c0_50] : memref<36x256xf32, #tpu.memory_space<vmem>>, vector<1x256xf32>
    %76 = vector.shape_cast %75 : vector<1x256xf32> to vector<256xf32>
    %77 = vector.shape_cast %74 : vector<256xf32> to vector<1x256xf32>
    tpu.vector_store %arg5[%c12, %c0_50], %77 {strides = array<i32>} : memref<36x256xf32, #tpu.memory_space<vmem>>, vector<1x256xf32>,
    %c0_51 = arith.constant 0 : index
    %c1_52 = arith.constant 1 : index
    %c15_53 = arith.constant 15 : index
    %78 = vector.load %arg1[%c0_51, %c1_52, %c15_53] : memref<1x4x288xbf16, #tpu.memory_space<vmem>>, vector<1x1x256xbf16>
    %79 = vector.shape_cast %78 : vector<1x1x256xbf16> to vector<256xbf16>
    %80 = arith.extf %79 : vector<256xbf16> to vector<256xf32>
    %c13 = arith.constant 13 : index
    %c0_54 = arith.constant 0 : index
    %81 = vector.load %arg5[%c13, %c0_54] : memref<36x256xf32, #tpu.memory_space<vmem>>, vector<1x256xf32>
    %82 = vector.shape_cast %81 : vector<1x256xf32> to vector<256xf32>
    %83 = vector.shape_cast %80 : vector<256xf32> to vector<1x256xf32>
    tpu.vector_store %arg5[%c13, %c0_54], %83 {strides = array<i32>} : memref<36x256xf32, #tpu.memory_space<vmem>>, vector<1x256xf32>,
    %c0_55 = arith.constant 0 : index
    %c0_56 = arith.constant 0 : index
    %c16 = arith.constant 16 : index
    %84 = vector.load %arg1[%c0_55, %c0_56, %c16] : memref<1x4x288xbf16, #tpu.memory_space<vmem>>, vector<1x1x256xbf16>
    %85 = vector.shape_cast %84 : vector<1x1x256xbf16> to vector<256xbf16>
    %86 = arith.extf %85 : vector<256xbf16> to vector<256xf32>
    %c14 = arith.constant 14 : index
    %c0_57 = arith.constant 0 : index
    %87 = vector.load %arg5[%c14, %c0_57] : memref<36x256xf32, #tpu.memory_space<vmem>>, vector<1x256xf32>
    %88 = vector.shape_cast %87 : vector<1x256xf32> to vector<256xf32>
    %89 = vector.shape_cast %86 : vector<256xf32> to vector<1x256xf32>
    tpu.vector_store %arg5[%c14, %c0_57], %89 {strides = array<i32>} : memref<36x256xf32, #tpu.memory_space<vmem>>, vector<1x256xf32>,
    %c0_58 = arith.constant 0 : index
    %c1_59 = arith.constant 1 : index
    %c16_60 = arith.constant 16 : index
    %90 = vector.load %arg1[%c0_58, %c1_59, %c16_60] : memref<1x4x288xbf16, #tpu.memory_space<vmem>>, vector<1x1x256xbf16>
    %91 = vector.shape_cast %90 : vector<1x1x256xbf16> to vector<256xbf16>
    %92 = arith.extf %91 : vector<256xbf16> to vector<256xf32>
    %c15_61 = arith.constant 15 : index
    %c0_62 = arith.constant 0 : index
    %93 = vector.load %arg5[%c15_61, %c0_62] : memref<36x256xf32, #tpu.memory_space<vmem>>, vector<1x256xf32>
    %94 = vector.shape_cast %93 : vector<1x256xf32> to vector<256xf32>
    %95 = vector.shape_cast %92 : vector<256xf32> to vector<1x256xf32>
    tpu.vector_store %arg5[%c15_61, %c0_62], %95 {strides = array<i32>} : memref<36x256xf32, #tpu.memory_space<vmem>>, vector<1x256xf32>,
    %c0_63 = arith.constant 0 : index
    %c0_64 = arith.constant 0 : index
    %c17 = arith.constant 17 : index
    %96 = vector.load %arg1[%c0_63, %c0_64, %c17] : memref<1x4x288xbf16, #tpu.memory_space<vmem>>, vector<1x1x256xbf16>
    %97 = vector.shape_cast %96 : vector<1x1x256xbf16> to vector<256xbf16>
    %98 = arith.extf %97 : vector<256xbf16> to vector<256xf32>
    %c16_65 = arith.constant 16 : index
    %c0_66 = arith.constant 0 : index
    %99 = vector.load %arg5[%c16_65, %c0_66] : memref<36x256xf32, #tpu.memory_space<vmem>>, vector<1x256xf32>
    %100 = vector.shape_cast %99 : vector<1x256xf32> to vector<256xf32>
    %101 = vector.shape_cast %98 : vector<256xf32> to vector<1x256xf32>
    tpu.vector_store %arg5[%c16_65, %c0_66], %101 {strides = array<i32>} : memref<36x256xf32, #tpu.memory_space<vmem>>, vector<1x256xf32>,
    %c0_67 = arith.constant 0 : index
    %c1_68 = arith.constant 1 : index
    %c17_69 = arith.constant 17 : index
    %102 = vector.load %arg1[%c0_67, %c1_68, %c17_69] : memref<1x4x288xbf16, #tpu.memory_space<vmem>>, vector<1x1x256xbf16>
    %103 = vector.shape_cast %102 : vector<1x1x256xbf16> to vector<256xbf16>
    %104 = arith.extf %103 : vector<256xbf16> to vector<256xf32>
    %c17_70 = arith.constant 17 : index
    %c0_71 = arith.constant 0 : index
    %105 = vector.load %arg5[%c17_70, %c0_71] : memref<36x256xf32, #tpu.memory_space<vmem>>, vector<1x256xf32>
    %106 = vector.shape_cast %105 : vector<1x256xf32> to vector<256xf32>
    %107 = vector.shape_cast %104 : vector<256xf32> to vector<1x256xf32>
    tpu.vector_store %arg5[%c17_70, %c0_71], %107 {strides = array<i32>} : memref<36x256xf32, #tpu.memory_space<vmem>>, vector<1x256xf32>,
    %c0_72 = arith.constant 0 : index
    %c2_73 = arith.constant 2 : index
    %c15_74 = arith.constant 15 : index
    %108 = vector.load %arg1[%c0_72, %c2_73, %c15_74] : memref<1x4x288xbf16, #tpu.memory_space<vmem>>, vector<1x1x256xbf16>
    %109 = vector.shape_cast %108 : vector<1x1x256xbf16> to vector<256xbf16>
    %110 = arith.extf %109 : vector<256xbf16> to vector<256xf32>
    %c18 = arith.constant 18 : index
    %c0_75 = arith.constant 0 : index
    %111 = vector.load %arg5[%c18, %c0_75] : memref<36x256xf32, #tpu.memory_space<vmem>>, vector<1x256xf32>
    %112 = vector.shape_cast %111 : vector<1x256xf32> to vector<256xf32>
    %113 = vector.shape_cast %110 : vector<256xf32> to vector<1x256xf32>
    tpu.vector_store %arg5[%c18, %c0_75], %113 {strides = array<i32>} : memref<36x256xf32, #tpu.memory_space<vmem>>, vector<1x256xf32>,
    %c0_76 = arith.constant 0 : index
    %c3_77 = arith.constant 3 : index
    %c15_78 = arith.constant 15 : index
    %114 = vector.load %arg1[%c0_76, %c3_77, %c15_78] : memref<1x4x288xbf16, #tpu.memory_space<vmem>>, vector<1x1x256xbf16>
    %115 = vector.shape_cast %114 : vector<1x1x256xbf16> to vector<256xbf16>
    %116 = arith.extf %115 : vector<256xbf16> to vector<256xf32>
    %c19 = arith.constant 19 : index
    %c0_79 = arith.constant 0 : index
    %117 = vector.load %arg5[%c19, %c0_79] : memref<36x256xf32, #tpu.memory_space<vmem>>, vector<1x256xf32>
    %118 = vector.shape_cast %117 : vector<1x256xf32> to vector<256xf32>
    %119 = vector.shape_cast %116 : vector<256xf32> to vector<1x256xf32>
    tpu.vector_store %arg5[%c19, %c0_79], %119 {strides = array<i32>} : memref<36x256xf32, #tpu.memory_space<vmem>>, vector<1x256xf32>,
    %c0_80 = arith.constant 0 : index
    %c2_81 = arith.constant 2 : index
    %c16_82 = arith.constant 16 : index
    %120 = vector.load %arg1[%c0_80, %c2_81, %c16_82] : memref<1x4x288xbf16, #tpu.memory_space<vmem>>, vector<1x1x256xbf16>
    %121 = vector.shape_cast %120 : vector<1x1x256xbf16> to vector<256xbf16>
    %122 = arith.extf %121 : vector<256xbf16> to vector<256xf32>
    %c20 = arith.constant 20 : index
    %c0_83 = arith.constant 0 : index
    %123 = vector.load %arg5[%c20, %c0_83] : memref<36x256xf32, #tpu.memory_space<vmem>>, vector<1x256xf32>
    %124 = vector.shape_cast %123 : vector<1x256xf32> to vector<256xf32>
    %125 = vector.shape_cast %122 : vector<256xf32> to vector<1x256xf32>
    tpu.vector_store %arg5[%c20, %c0_83], %125 {strides = array<i32>} : memref<36x256xf32, #tpu.memory_space<vmem>>, vector<1x256xf32>,
    %c0_84 = arith.constant 0 : index
    %c3_85 = arith.constant 3 : index
    %c16_86 = arith.constant 16 : index
    %126 = vector.load %arg1[%c0_84, %c3_85, %c16_86] : memref<1x4x288xbf16, #tpu.memory_space<vmem>>, vector<1x1x256xbf16>
    %127 = vector.shape_cast %126 : vector<1x1x256xbf16> to vector<256xbf16>
    %128 = arith.extf %127 : vector<256xbf16> to vector<256xf32>
    %c21 = arith.constant 21 : index
    %c0_87 = arith.constant 0 : index
    %129 = vector.load %arg5[%c21, %c0_87] : memref<36x256xf32, #tpu.memory_space<vmem>>, vector<1x256xf32>
    %130 = vector.shape_cast %129 : vector<1x256xf32> to vector<256xf32>
    %131 = vector.shape_cast %128 : vector<256xf32> to vector<1x256xf32>
    tpu.vector_store %arg5[%c21, %c0_87], %131 {strides = array<i32>} : memref<36x256xf32, #tpu.memory_space<vmem>>, vector<1x256xf32>,
    %c0_88 = arith.constant 0 : index
    %c2_89 = arith.constant 2 : index
    %c17_90 = arith.constant 17 : index
    %132 = vector.load %arg1[%c0_88, %c2_89, %c17_90] : memref<1x4x288xbf16, #tpu.memory_space<vmem>>, vector<1x1x256xbf16>
    %133 = vector.shape_cast %132 : vector<1x1x256xbf16> to vector<256xbf16>
    %134 = arith.extf %133 : vector<256xbf16> to vector<256xf32>
    %c22 = arith.constant 22 : index
    %c0_91 = arith.constant 0 : index
    %135 = vector.load %arg5[%c22, %c0_91] : memref<36x256xf32, #tpu.memory_space<vmem>>, vector<1x256xf32>
    %136 = vector.shape_cast %135 : vector<1x256xf32> to vector<256xf32>
    %137 = vector.shape_cast %134 : vector<256xf32> to vector<1x256xf32>
    tpu.vector_store %arg5[%c22, %c0_91], %137 {strides = array<i32>} : memref<36x256xf32, #tpu.memory_space<vmem>>, vector<1x256xf32>,
    %c0_92 = arith.constant 0 : index
    %c3_93 = arith.constant 3 : index
    %c17_94 = arith.constant 17 : index
    %138 = vector.load %arg1[%c0_92, %c3_93, %c17_94] : memref<1x4x288xbf16, #tpu.memory_space<vmem>>, vector<1x1x256xbf16>
    %139 = vector.shape_cast %138 : vector<1x1x256xbf16> to vector<256xbf16>
    %140 = arith.extf %139 : vector<256xbf16> to vector<256xf32>
    %c23 = arith.constant 23 : index
    %c0_95 = arith.constant 0 : index
    %141 = vector.load %arg5[%c23, %c0_95] : memref<36x256xf32, #tpu.memory_space<vmem>>, vector<1x256xf32>
    %142 = vector.shape_cast %141 : vector<1x256xf32> to vector<256xf32>
    %143 = vector.shape_cast %140 : vector<256xf32> to vector<1x256xf32>
    tpu.vector_store %arg5[%c23, %c0_95], %143 {strides = array<i32>} : memref<36x256xf32, #tpu.memory_space<vmem>>, vector<1x256xf32>,
    %c0_96 = arith.constant 0 : index
    %c0_97 = arith.constant 0 : index
    %c30 = arith.constant 30 : index
    %144 = vector.load %arg1[%c0_96, %c0_97, %c30] : memref<1x4x288xbf16, #tpu.memory_space<vmem>>, vector<1x1x256xbf16>
    %145 = vector.shape_cast %144 : vector<1x1x256xbf16> to vector<256xbf16>
    %146 = arith.extf %145 : vector<256xbf16> to vector<256xf32>
    %c24 = arith.constant 24 : index
    %c0_98 = arith.constant 0 : index
    %147 = vector.load %arg5[%c24, %c0_98] : memref<36x256xf32, #tpu.memory_space<vmem>>, vector<1x256xf32>
    %148 = vector.shape_cast %147 : vector<1x256xf32> to vector<256xf32>
    %149 = vector.shape_cast %146 : vector<256xf32> to vector<1x256xf32>
    tpu.vector_store %arg5[%c24, %c0_98], %149 {strides = array<i32>} : memref<36x256xf32, #tpu.memory_space<vmem>>, vector<1x256xf32>,
    %c0_99 = arith.constant 0 : index
    %c1_100 = arith.constant 1 : index
    %c30_101 = arith.constant 30 : index
    %150 = vector.load %arg1[%c0_99, %c1_100, %c30_101] : memref<1x4x288xbf16, #tpu.memory_space<vmem>>, vector<1x1x256xbf16>
    %151 = vector.shape_cast %150 : vector<1x1x256xbf16> to vector<256xbf16>
    %152 = arith.extf %151 : vector<256xbf16> to vector<256xf32>
    %c25 = arith.constant 25 : index
    %c0_102 = arith.constant 0 : index
    %153 = vector.load %arg5[%c25, %c0_102] : memref<36x256xf32, #tpu.memory_space<vmem>>, vector<1x256xf32>
    %154 = vector.shape_cast %153 : vector<1x256xf32> to vector<256xf32>
    %155 = vector.shape_cast %152 : vector<256xf32> to vector<1x256xf32>
    tpu.vector_store %arg5[%c25, %c0_102], %155 {strides = array<i32>} : memref<36x256xf32, #tpu.memory_space<vmem>>, vector<1x256xf32>,
    %c0_103 = arith.constant 0 : index
    %c0_104 = arith.constant 0 : index
    %c31 = arith.constant 31 : index
    %156 = vector.load %arg1[%c0_103, %c0_104, %c31] : memref<1x4x288xbf16, #tpu.memory_space<vmem>>, vector<1x1x256xbf16>
    %157 = vector.shape_cast %156 : vector<1x1x256xbf16> to vector<256xbf16>
    %158 = arith.extf %157 : vector<256xbf16> to vector<256xf32>
    %c26 = arith.constant 26 : index
    %c0_105 = arith.constant 0 : index
    %159 = vector.load %arg5[%c26, %c0_105] : memref<36x256xf32, #tpu.memory_space<vmem>>, vector<1x256xf32>
    %160 = vector.shape_cast %159 : vector<1x256xf32> to vector<256xf32>
    %161 = vector.shape_cast %158 : vector<256xf32> to vector<1x256xf32>
    tpu.vector_store %arg5[%c26, %c0_105], %161 {strides = array<i32>} : memref<36x256xf32, #tpu.memory_space<vmem>>, vector<1x256xf32>,
    %c0_106 = arith.constant 0 : index
    %c1_107 = arith.constant 1 : index
    %c31_108 = arith.constant 31 : index
    %162 = vector.load %arg1[%c0_106, %c1_107, %c31_108] : memref<1x4x288xbf16, #tpu.memory_space<vmem>>, vector<1x1x256xbf16>
    %163 = vector.shape_cast %162 : vector<1x1x256xbf16> to vector<256xbf16>
    %164 = arith.extf %163 : vector<256xbf16> to vector<256xf32>
    %c27 = arith.constant 27 : index
    %c0_109 = arith.constant 0 : index
    %165 = vector.load %arg5[%c27, %c0_109] : memref<36x256xf32, #tpu.memory_space<vmem>>, vector<1x256xf32>
    %166 = vector.shape_cast %165 : vector<1x256xf32> to vector<256xf32>
    %167 = vector.shape_cast %164 : vector<256xf32> to vector<1x256xf32>
    tpu.vector_store %arg5[%c27, %c0_109], %167 {strides = array<i32>} : memref<36x256xf32, #tpu.memory_space<vmem>>, vector<1x256xf32>,
    %c0_110 = arith.constant 0 : index
    %c0_111 = arith.constant 0 : index
    %c32 = arith.constant 32 : index
    %168 = vector.load %arg1[%c0_110, %c0_111, %c32] : memref<1x4x288xbf16, #tpu.memory_space<vmem>>, vector<1x1x256xbf16>
    %169 = vector.shape_cast %168 : vector<1x1x256xbf16> to vector<256xbf16>
    %170 = arith.extf %169 : vector<256xbf16> to vector<256xf32>
    %c28 = arith.constant 28 : index
    %c0_112 = arith.constant 0 : index
    %171 = vector.load %arg5[%c28, %c0_112] : memref<36x256xf32, #tpu.memory_space<vmem>>, vector<1x256xf32>
    %172 = vector.shape_cast %171 : vector<1x256xf32> to vector<256xf32>
    %173 = vector.shape_cast %170 : vector<256xf32> to vector<1x256xf32>
    tpu.vector_store %arg5[%c28, %c0_112], %173 {strides = array<i32>} : memref<36x256xf32, #tpu.memory_space<vmem>>, vector<1x256xf32>,
    %c0_113 = arith.constant 0 : index
    %c1_114 = arith.constant 1 : index
    %c32_115 = arith.constant 32 : index
    %174 = vector.load %arg1[%c0_113, %c1_114, %c32_115] : memref<1x4x288xbf16, #tpu.memory_space<vmem>>, vector<1x1x256xbf16>
    %175 = vector.shape_cast %174 : vector<1x1x256xbf16> to vector<256xbf16>
    %176 = arith.extf %175 : vector<256xbf16> to vector<256xf32>
    %c29 = arith.constant 29 : index
    %c0_116 = arith.constant 0 : index
    %177 = vector.load %arg5[%c29, %c0_116] : memref<36x256xf32, #tpu.memory_space<vmem>>, vector<1x256xf32>
    %178 = vector.shape_cast %177 : vector<1x256xf32> to vector<256xf32>
    %179 = vector.shape_cast %176 : vector<256xf32> to vector<1x256xf32>
    tpu.vector_store %arg5[%c29, %c0_116], %179 {strides = array<i32>} : memref<36x256xf32, #tpu.memory_space<vmem>>, vector<1x256xf32>,
    %c0_117 = arith.constant 0 : index
    %c2_118 = arith.constant 2 : index
    %c30_119 = arith.constant 30 : index
    %180 = vector.load %arg1[%c0_117, %c2_118, %c30_119] : memref<1x4x288xbf16, #tpu.memory_space<vmem>>, vector<1x1x256xbf16>
    %181 = vector.shape_cast %180 : vector<1x1x256xbf16> to vector<256xbf16>
    %182 = arith.extf %181 : vector<256xbf16> to vector<256xf32>
    %c30_120 = arith.constant 30 : index
    %c0_121 = arith.constant 0 : index
    %183 = vector.load %arg5[%c30_120, %c0_121] : memref<36x256xf32, #tpu.memory_space<vmem>>, vector<1x256xf32>
    %184 = vector.shape_cast %183 : vector<1x256xf32> to vector<256xf32>
    %185 = vector.shape_cast %182 : vector<256xf32> to vector<1x256xf32>
    tpu.vector_store %arg5[%c30_120, %c0_121], %185 {strides = array<i32>} : memref<36x256xf32, #tpu.memory_space<vmem>>, vector<1x256xf32>,
    %c0_122 = arith.constant 0 : index
    %c3_123 = arith.constant 3 : index
    %c30_124 = arith.constant 30 : index
    %186 = vector.load %arg1[%c0_122, %c3_123, %c30_124] : memref<1x4x288xbf16, #tpu.memory_space<vmem>>, vector<1x1x256xbf16>
    %187 = vector.shape_cast %186 : vector<1x1x256xbf16> to vector<256xbf16>
    %188 = arith.extf %187 : vector<256xbf16> to vector<256xf32>
    %c31_125 = arith.constant 31 : index
    %c0_126 = arith.constant 0 : index
    %189 = vector.load %arg5[%c31_125, %c0_126] : memref<36x256xf32, #tpu.memory_space<vmem>>, vector<1x256xf32>
    %190 = vector.shape_cast %189 : vector<1x256xf32> to vector<256xf32>
    %191 = vector.shape_cast %188 : vector<256xf32> to vector<1x256xf32>
    tpu.vector_store %arg5[%c31_125, %c0_126], %191 {strides = array<i32>} : memref<36x256xf32, #tpu.memory_space<vmem>>, vector<1x256xf32>,
    %c0_127 = arith.constant 0 : index
    %c2_128 = arith.constant 2 : index
    %c31_129 = arith.constant 31 : index
    %192 = vector.load %arg1[%c0_127, %c2_128, %c31_129] : memref<1x4x288xbf16, #tpu.memory_space<vmem>>, vector<1x1x256xbf16>
    %193 = vector.shape_cast %192 : vector<1x1x256xbf16> to vector<256xbf16>
    %194 = arith.extf %193 : vector<256xbf16> to vector<256xf32>
    %c32_130 = arith.constant 32 : index
    %c0_131 = arith.constant 0 : index
    %195 = vector.load %arg5[%c32_130, %c0_131] : memref<36x256xf32, #tpu.memory_space<vmem>>, vector<1x256xf32>
    %196 = vector.shape_cast %195 : vector<1x256xf32> to vector<256xf32>
    %197 = vector.shape_cast %194 : vector<256xf32> to vector<1x256xf32>
    tpu.vector_store %arg5[%c32_130, %c0_131], %197 {strides = array<i32>} : memref<36x256xf32, #tpu.memory_space<vmem>>, vector<1x256xf32>,
    %c0_132 = arith.constant 0 : index
    %c3_133 = arith.constant 3 : index
    %c31_134 = arith.constant 31 : index
    %198 = vector.load %arg1[%c0_132, %c3_133, %c31_134] : memref<1x4x288xbf16, #tpu.memory_space<vmem>>, vector<1x1x256xbf16>
    %199 = vector.shape_cast %198 : vector<1x1x256xbf16> to vector<256xbf16>
    %200 = arith.extf %199 : vector<256xbf16> to vector<256xf32>
    %c33 = arith.constant 33 : index
    %c0_135 = arith.constant 0 : index
    %201 = vector.load %arg5[%c33, %c0_135] : memref<36x256xf32, #tpu.memory_space<vmem>>, vector<1x256xf32>
    %202 = vector.shape_cast %201 : vector<1x256xf32> to vector<256xf32>
    %203 = vector.shape_cast %200 : vector<256xf32> to vector<1x256xf32>
    tpu.vector_store %arg5[%c33, %c0_135], %203 {strides = array<i32>} : memref<36x256xf32, #tpu.memory_space<vmem>>, vector<1x256xf32>,
    %c0_136 = arith.constant 0 : index
    %c2_137 = arith.constant 2 : index
    %c32_138 = arith.constant 32 : index
    %204 = vector.load %arg1[%c0_136, %c2_137, %c32_138] : memref<1x4x288xbf16, #tpu.memory_space<vmem>>, vector<1x1x256xbf16>
    %205 = vector.shape_cast %204 : vector<1x1x256xbf16> to vector<256xbf16>
    %206 = arith.extf %205 : vector<256xbf16> to vector<256xf32>
    %c34 = arith.constant 34 : index
    %c0_139 = arith.constant 0 : index
    %207 = vector.load %arg5[%c34, %c0_139] : memref<36x256xf32, #tpu.memory_space<vmem>>, vector<1x256xf32>
    %208 = vector.shape_cast %207 : vector<1x256xf32> to vector<256xf32>
    %209 = vector.shape_cast %206 : vector<256xf32> to vector<1x256xf32>
    tpu.vector_store %arg5[%c34, %c0_139], %209 {strides = array<i32>} : memref<36x256xf32, #tpu.memory_space<vmem>>, vector<1x256xf32>,
    %c0_140 = arith.constant 0 : index
    %c3_141 = arith.constant 3 : index
    %c32_142 = arith.constant 32 : index
    %210 = vector.load %arg1[%c0_140, %c3_141, %c32_142] : memref<1x4x288xbf16, #tpu.memory_space<vmem>>, vector<1x1x256xbf16>
    %211 = vector.shape_cast %210 : vector<1x1x256xbf16> to vector<256xbf16>
    %212 = arith.extf %211 : vector<256xbf16> to vector<256xf32>
    %c35 = arith.constant 35 : index
    %c0_143 = arith.constant 0 : index
    %213 = vector.load %arg5[%c35, %c0_143] : memref<36x256xf32, #tpu.memory_space<vmem>>, vector<1x256xf32>
    %214 = vector.shape_cast %213 : vector<1x256xf32> to vector<256xf32>
    %215 = vector.shape_cast %212 : vector<256xf32> to vector<1x256xf32>
    tpu.vector_store %arg5[%c35, %c0_143], %215 {strides = array<i32>} : memref<36x256xf32, #tpu.memory_space<vmem>>, vector<1x256xf32>,
    %c0_144 = arith.constant 0 : index
    %c0_145 = arith.constant 0 : index
    %216 = vector.load %arg2[%c0_144, %c0_145] : memref<128x36xf32, #tpu.memory_space<vmem>>, vector<128x36xf32>
    %c0_146 = arith.constant 0 : index
    %c0_147 = arith.constant 0 : index
    %217 = vector.load %arg5[%c0_146, %c0_147] : memref<36x256xf32, #tpu.memory_space<vmem>>, vector<36x256xf32>
    %cst = arith.constant dense<0.000000e+00> : vector<128x256xf32>
    %218 = tpu.matmul %216, %217, %cst {dimension_numbers = #tpu.dot_dimension_numbers<[1], [0], [0], [1], [0, 0, 1, 1], [], []>} : vector<128x36xf32>, vector<36x256xf32>, vector<128x256xf32> -> vector<128x256xf32>
    %219 = vector.extract_strided_slice %218 {offsets = [0, 0], sizes = [32, 256], strides = [1, 1]} : vector<128x256xf32> to vector<32x256xf32>
    %220 = vector.extract_strided_slice %218 {offsets = [32, 0], sizes = [32, 256], strides = [1, 1]} : vector<128x256xf32> to vector<32x256xf32>
    %221 = arith.maximumf %219, %220 : vector<32x256xf32>
    %222 = vector.extract_strided_slice %218 {offsets = [64, 0], sizes = [32, 256], strides = [1, 1]} : vector<128x256xf32> to vector<32x256xf32>
    %223 = vector.extract_strided_slice %218 {offsets = [96, 0], sizes = [32, 256], strides = [1, 1]} : vector<128x256xf32> to vector<32x256xf32>
    %224 = arith.maximumf %222, %223 : vector<32x256xf32>
    %225 = arith.maximumf %221, %224 : vector<32x256xf32>
    %c0_148 = arith.constant 0 : index
    %c0_149 = arith.constant 0 : index
    %226 = vector.load %arg3[%c0_148, %c0_149] : memref<32x1xf32, #tpu.memory_space<vmem>>, vector<32x1xf32>
    %227 = vector.broadcast %226 : vector<32x1xf32> to vector<32x256xf32>
    %228 = arith.addf %225, %227 : vector<32x256xf32>
    %cst_150 = arith.constant 0.000000e+00 : f32
    %229 = vector.broadcast %cst_150 : f32 to vector<32x256xf32>
    %230 = arith.maximumf %228, %229 : vector<32x256xf32>
    %231 = arith.truncf %230 : vector<32x256xf32> to vector<32x256xbf16>
    %c0_151 = arith.constant 0 : index
    %c0_152 = arith.constant 0 : index
    %c0_153 = arith.constant 0 : index
    %232 = vector.load %arg4[%c0_151, %c0_152, %c0_153] : memref<1x32x256xbf16, #tpu.memory_space<vmem>>, vector<1x32x256xbf16>
    %233 = vector.shape_cast %232 : vector<1x32x256xbf16> to vector<32x256xbf16>
    %234 = vector.shape_cast %231 : vector<32x256xbf16> to vector<1x32x256xbf16>
    tpu.vector_store %arg4[%c0_151, %c0_152, %c0_153], %234 {strides = array<i32>} : memref<1x32x256xbf16, #tpu.memory_space<vmem>>, vector<1x32x256xbf16>,
    return
  }
  func.func @transform_0(%arg0: i32) -> (i32, i32, i32) {
    %c0_i32 = arith.constant 0 : i32
    %c0_i32_0 = arith.constant 0 : i32
    %c0_i32_1 = arith.constant 0 : i32
    return %arg0, %c0_i32, %c0_i32_0 : i32, i32, i32
  }
  func.func @transform_1(%arg0: i32) -> (i32, i32) {
    %c0_i32 = arith.constant 0 : i32
    %c0_i32_0 = arith.constant 0 : i32
    %c0_i32_1 = arith.constant 0 : i32
    return %c0_i32, %c0_i32_0 : i32, i32
  }
  func.func @transform_2(%arg0: i32) -> (i32, i32) {
    %c0_i32 = arith.constant 0 : i32
    %c0_i32_0 = arith.constant 0 : i32
    %c0_i32_1 = arith.constant 0 : i32
    return %c0_i32, %c0_i32_0 : i32, i32
  }
  func.func @transform_3(%arg0: i32) -> (i32, i32, i32) {
    %c0_i32 = arith.constant 0 : i32
    %c0_i32_0 = arith.constant 0 : i32
    %c0_i32_1 = arith.constant 0 : i32
    return %arg0, %c0_i32, %c0_i32_0 : i32, i32, i32
  }
}

module attributes {stable_mosaic.version = 11 : i64} {
  func.func @kernel(%arg0: i32, %arg1: memref<1x4x32x64xbf16, #tpu.memory_space<vmem>>, %arg2: memref<64x1152xbf16, #tpu.memory_space<vmem>>, %arg3: memref<16x1xf32, #tpu.memory_space<vmem>>, %arg4: memref<1x16x48xf32, #tpu.memory_space<vmem>>, %arg5: memref<1152x48xbf16, #tpu.memory_space<vmem>>) attributes {dimension_semantics = [#tpu.dimension_semantics<parallel>], iteration_bounds = array<i64: 2>, scalar_prefetch = 0 : i64, scratch_operands = 1 : i64, tpu.core_type = #tpu.core_type<tc>, window_params = [{transform_indices = @transform_0, window_bounds = array<i64: 1, 4, 32, 64>}, {pipeline_mode = #tpu.pipeline_mode<synchronous>, transform_indices = @transform_1, window_bounds = array<i64: 64, 1152>}, {pipeline_mode = #tpu.pipeline_mode<synchronous>, transform_indices = @transform_2, window_bounds = array<i64: 16, 1>}, {transform_indices = @transform_3, window_bounds = array<i64: 1, 16, 48>}]} {
    %c0 = arith.constant 0 : index
    %c0_0 = arith.constant 0 : index
    %c0_1 = arith.constant 0 : index
    %c0_2 = arith.constant 0 : index
    %0 = vector.load %arg1[%c0, %c0_0, %c0_1, %c0_2] : memref<1x4x32x64xbf16, #tpu.memory_space<vmem>>, vector<1x1x32x48xbf16>
    %1 = vector.shape_cast %0 : vector<1x1x32x48xbf16> to vector<32x48xbf16>
    %c0_3 = arith.constant 0 : index
    %c0_4 = arith.constant 0 : index
    %2 = vector.load %arg5[%c0_3, %c0_4] : memref<1152x48xbf16, #tpu.memory_space<vmem>>, vector<32x48xbf16>
    tpu.vector_store %arg5[%c0_3, %c0_4], %1 {strides = array<i32>} : memref<1152x48xbf16, #tpu.memory_space<vmem>>, vector<32x48xbf16>,
    %c0_5 = arith.constant 0 : index
    %c1 = arith.constant 1 : index
    %c0_6 = arith.constant 0 : index
    %c0_7 = arith.constant 0 : index
    %3 = vector.load %arg1[%c0_5, %c1, %c0_6, %c0_7] : memref<1x4x32x64xbf16, #tpu.memory_space<vmem>>, vector<1x1x32x48xbf16>
    %4 = vector.shape_cast %3 : vector<1x1x32x48xbf16> to vector<32x48xbf16>
    %c32 = arith.constant 32 : index
    %c0_8 = arith.constant 0 : index
    %5 = vector.load %arg5[%c32, %c0_8] : memref<1152x48xbf16, #tpu.memory_space<vmem>>, vector<32x48xbf16>
    tpu.vector_store %arg5[%c32, %c0_8], %4 {strides = array<i32>} : memref<1152x48xbf16, #tpu.memory_space<vmem>>, vector<32x48xbf16>,
    %c0_9 = arith.constant 0 : index
    %c0_10 = arith.constant 0 : index
    %c0_11 = arith.constant 0 : index
    %c1_12 = arith.constant 1 : index
    %6 = vector.load %arg1[%c0_9, %c0_10, %c0_11, %c1_12] : memref<1x4x32x64xbf16, #tpu.memory_space<vmem>>, vector<1x1x32x48xbf16>
    %7 = vector.shape_cast %6 : vector<1x1x32x48xbf16> to vector<32x48xbf16>
    %c64 = arith.constant 64 : index
    %c0_13 = arith.constant 0 : index
    %8 = vector.load %arg5[%c64, %c0_13] : memref<1152x48xbf16, #tpu.memory_space<vmem>>, vector<32x48xbf16>
    tpu.vector_store %arg5[%c64, %c0_13], %7 {strides = array<i32>} : memref<1152x48xbf16, #tpu.memory_space<vmem>>, vector<32x48xbf16>,
    %c0_14 = arith.constant 0 : index
    %c1_15 = arith.constant 1 : index
    %c0_16 = arith.constant 0 : index
    %c1_17 = arith.constant 1 : index
    %9 = vector.load %arg1[%c0_14, %c1_15, %c0_16, %c1_17] : memref<1x4x32x64xbf16, #tpu.memory_space<vmem>>, vector<1x1x32x48xbf16>
    %10 = vector.shape_cast %9 : vector<1x1x32x48xbf16> to vector<32x48xbf16>
    %c96 = arith.constant 96 : index
    %c0_18 = arith.constant 0 : index
    %11 = vector.load %arg5[%c96, %c0_18] : memref<1152x48xbf16, #tpu.memory_space<vmem>>, vector<32x48xbf16>
    tpu.vector_store %arg5[%c96, %c0_18], %10 {strides = array<i32>} : memref<1152x48xbf16, #tpu.memory_space<vmem>>, vector<32x48xbf16>,
    %c0_19 = arith.constant 0 : index
    %c0_20 = arith.constant 0 : index
    %c0_21 = arith.constant 0 : index
    %c2 = arith.constant 2 : index
    %12 = vector.load %arg1[%c0_19, %c0_20, %c0_21, %c2] : memref<1x4x32x64xbf16, #tpu.memory_space<vmem>>, vector<1x1x32x48xbf16>
    %13 = vector.shape_cast %12 : vector<1x1x32x48xbf16> to vector<32x48xbf16>
    %c128 = arith.constant 128 : index
    %c0_22 = arith.constant 0 : index
    %14 = vector.load %arg5[%c128, %c0_22] : memref<1152x48xbf16, #tpu.memory_space<vmem>>, vector<32x48xbf16>
    tpu.vector_store %arg5[%c128, %c0_22], %13 {strides = array<i32>} : memref<1152x48xbf16, #tpu.memory_space<vmem>>, vector<32x48xbf16>,
    %c0_23 = arith.constant 0 : index
    %c1_24 = arith.constant 1 : index
    %c0_25 = arith.constant 0 : index
    %c2_26 = arith.constant 2 : index
    %15 = vector.load %arg1[%c0_23, %c1_24, %c0_25, %c2_26] : memref<1x4x32x64xbf16, #tpu.memory_space<vmem>>, vector<1x1x32x48xbf16>
    %16 = vector.shape_cast %15 : vector<1x1x32x48xbf16> to vector<32x48xbf16>
    %c160 = arith.constant 160 : index
    %c0_27 = arith.constant 0 : index
    %17 = vector.load %arg5[%c160, %c0_27] : memref<1152x48xbf16, #tpu.memory_space<vmem>>, vector<32x48xbf16>
    tpu.vector_store %arg5[%c160, %c0_27], %16 {strides = array<i32>} : memref<1152x48xbf16, #tpu.memory_space<vmem>>, vector<32x48xbf16>,
    %c0_28 = arith.constant 0 : index
    %c2_29 = arith.constant 2 : index
    %c0_30 = arith.constant 0 : index
    %c0_31 = arith.constant 0 : index
    %18 = vector.load %arg1[%c0_28, %c2_29, %c0_30, %c0_31] : memref<1x4x32x64xbf16, #tpu.memory_space<vmem>>, vector<1x1x32x48xbf16>
    %19 = vector.shape_cast %18 : vector<1x1x32x48xbf16> to vector<32x48xbf16>
    %c192 = arith.constant 192 : index
    %c0_32 = arith.constant 0 : index
    %20 = vector.load %arg5[%c192, %c0_32] : memref<1152x48xbf16, #tpu.memory_space<vmem>>, vector<32x48xbf16>
    tpu.vector_store %arg5[%c192, %c0_32], %19 {strides = array<i32>} : memref<1152x48xbf16, #tpu.memory_space<vmem>>, vector<32x48xbf16>,
    %c0_33 = arith.constant 0 : index
    %c3 = arith.constant 3 : index
    %c0_34 = arith.constant 0 : index
    %c0_35 = arith.constant 0 : index
    %21 = vector.load %arg1[%c0_33, %c3, %c0_34, %c0_35] : memref<1x4x32x64xbf16, #tpu.memory_space<vmem>>, vector<1x1x32x48xbf16>
    %22 = vector.shape_cast %21 : vector<1x1x32x48xbf16> to vector<32x48xbf16>
    %c224 = arith.constant 224 : index
    %c0_36 = arith.constant 0 : index
    %23 = vector.load %arg5[%c224, %c0_36] : memref<1152x48xbf16, #tpu.memory_space<vmem>>, vector<32x48xbf16>
    tpu.vector_store %arg5[%c224, %c0_36], %22 {strides = array<i32>} : memref<1152x48xbf16, #tpu.memory_space<vmem>>, vector<32x48xbf16>,
    %c0_37 = arith.constant 0 : index
    %c2_38 = arith.constant 2 : index
    %c0_39 = arith.constant 0 : index
    %c1_40 = arith.constant 1 : index
    %24 = vector.load %arg1[%c0_37, %c2_38, %c0_39, %c1_40] : memref<1x4x32x64xbf16, #tpu.memory_space<vmem>>, vector<1x1x32x48xbf16>
    %25 = vector.shape_cast %24 : vector<1x1x32x48xbf16> to vector<32x48xbf16>
    %c256 = arith.constant 256 : index
    %c0_41 = arith.constant 0 : index
    %26 = vector.load %arg5[%c256, %c0_41] : memref<1152x48xbf16, #tpu.memory_space<vmem>>, vector<32x48xbf16>
    tpu.vector_store %arg5[%c256, %c0_41], %25 {strides = array<i32>} : memref<1152x48xbf16, #tpu.memory_space<vmem>>, vector<32x48xbf16>,
    %c0_42 = arith.constant 0 : index
    %c3_43 = arith.constant 3 : index
    %c0_44 = arith.constant 0 : index
    %c1_45 = arith.constant 1 : index
    %27 = vector.load %arg1[%c0_42, %c3_43, %c0_44, %c1_45] : memref<1x4x32x64xbf16, #tpu.memory_space<vmem>>, vector<1x1x32x48xbf16>
    %28 = vector.shape_cast %27 : vector<1x1x32x48xbf16> to vector<32x48xbf16>
    %c288 = arith.constant 288 : index
    %c0_46 = arith.constant 0 : index
    %29 = vector.load %arg5[%c288, %c0_46] : memref<1152x48xbf16, #tpu.memory_space<vmem>>, vector<32x48xbf16>
    tpu.vector_store %arg5[%c288, %c0_46], %28 {strides = array<i32>} : memref<1152x48xbf16, #tpu.memory_space<vmem>>, vector<32x48xbf16>,
    %c0_47 = arith.constant 0 : index
    %c2_48 = arith.constant 2 : index
    %c0_49 = arith.constant 0 : index
    %c2_50 = arith.constant 2 : index
    %30 = vector.load %arg1[%c0_47, %c2_48, %c0_49, %c2_50] : memref<1x4x32x64xbf16, #tpu.memory_space<vmem>>, vector<1x1x32x48xbf16>
    %31 = vector.shape_cast %30 : vector<1x1x32x48xbf16> to vector<32x48xbf16>
    %c320 = arith.constant 320 : index
    %c0_51 = arith.constant 0 : index
    %32 = vector.load %arg5[%c320, %c0_51] : memref<1152x48xbf16, #tpu.memory_space<vmem>>, vector<32x48xbf16>
    tpu.vector_store %arg5[%c320, %c0_51], %31 {strides = array<i32>} : memref<1152x48xbf16, #tpu.memory_space<vmem>>, vector<32x48xbf16>,
    %c0_52 = arith.constant 0 : index
    %c3_53 = arith.constant 3 : index
    %c0_54 = arith.constant 0 : index
    %c2_55 = arith.constant 2 : index
    %33 = vector.load %arg1[%c0_52, %c3_53, %c0_54, %c2_55] : memref<1x4x32x64xbf16, #tpu.memory_space<vmem>>, vector<1x1x32x48xbf16>
    %34 = vector.shape_cast %33 : vector<1x1x32x48xbf16> to vector<32x48xbf16>
    %c352 = arith.constant 352 : index
    %c0_56 = arith.constant 0 : index
    %35 = vector.load %arg5[%c352, %c0_56] : memref<1152x48xbf16, #tpu.memory_space<vmem>>, vector<32x48xbf16>
    tpu.vector_store %arg5[%c352, %c0_56], %34 {strides = array<i32>} : memref<1152x48xbf16, #tpu.memory_space<vmem>>, vector<32x48xbf16>,
    %c0_57 = arith.constant 0 : index
    %c0_58 = arith.constant 0 : index
    %c0_59 = arith.constant 0 : index
    %c7 = arith.constant 7 : index
    %36 = vector.load %arg1[%c0_57, %c0_58, %c0_59, %c7] : memref<1x4x32x64xbf16, #tpu.memory_space<vmem>>, vector<1x1x32x48xbf16>
    %37 = vector.shape_cast %36 : vector<1x1x32x48xbf16> to vector<32x48xbf16>
    %c384 = arith.constant 384 : index
    %c0_60 = arith.constant 0 : index
    %38 = vector.load %arg5[%c384, %c0_60] : memref<1152x48xbf16, #tpu.memory_space<vmem>>, vector<32x48xbf16>
    tpu.vector_store %arg5[%c384, %c0_60], %37 {strides = array<i32>} : memref<1152x48xbf16, #tpu.memory_space<vmem>>, vector<32x48xbf16>,
    %c0_61 = arith.constant 0 : index
    %c1_62 = arith.constant 1 : index
    %c0_63 = arith.constant 0 : index
    %c7_64 = arith.constant 7 : index
    %39 = vector.load %arg1[%c0_61, %c1_62, %c0_63, %c7_64] : memref<1x4x32x64xbf16, #tpu.memory_space<vmem>>, vector<1x1x32x48xbf16>
    %40 = vector.shape_cast %39 : vector<1x1x32x48xbf16> to vector<32x48xbf16>
    %c416 = arith.constant 416 : index
    %c0_65 = arith.constant 0 : index
    %41 = vector.load %arg5[%c416, %c0_65] : memref<1152x48xbf16, #tpu.memory_space<vmem>>, vector<32x48xbf16>
    tpu.vector_store %arg5[%c416, %c0_65], %40 {strides = array<i32>} : memref<1152x48xbf16, #tpu.memory_space<vmem>>, vector<32x48xbf16>,
    %c0_66 = arith.constant 0 : index
    %c0_67 = arith.constant 0 : index
    %c0_68 = arith.constant 0 : index
    %c8 = arith.constant 8 : index
    %42 = vector.load %arg1[%c0_66, %c0_67, %c0_68, %c8] : memref<1x4x32x64xbf16, #tpu.memory_space<vmem>>, vector<1x1x32x48xbf16>
    %43 = vector.shape_cast %42 : vector<1x1x32x48xbf16> to vector<32x48xbf16>
    %c448 = arith.constant 448 : index
    %c0_69 = arith.constant 0 : index
    %44 = vector.load %arg5[%c448, %c0_69] : memref<1152x48xbf16, #tpu.memory_space<vmem>>, vector<32x48xbf16>
    tpu.vector_store %arg5[%c448, %c0_69], %43 {strides = array<i32>} : memref<1152x48xbf16, #tpu.memory_space<vmem>>, vector<32x48xbf16>,
    %c0_70 = arith.constant 0 : index
    %c1_71 = arith.constant 1 : index
    %c0_72 = arith.constant 0 : index
    %c8_73 = arith.constant 8 : index
    %45 = vector.load %arg1[%c0_70, %c1_71, %c0_72, %c8_73] : memref<1x4x32x64xbf16, #tpu.memory_space<vmem>>, vector<1x1x32x48xbf16>
    %46 = vector.shape_cast %45 : vector<1x1x32x48xbf16> to vector<32x48xbf16>
    %c480 = arith.constant 480 : index
    %c0_74 = arith.constant 0 : index
    %47 = vector.load %arg5[%c480, %c0_74] : memref<1152x48xbf16, #tpu.memory_space<vmem>>, vector<32x48xbf16>
    tpu.vector_store %arg5[%c480, %c0_74], %46 {strides = array<i32>} : memref<1152x48xbf16, #tpu.memory_space<vmem>>, vector<32x48xbf16>,
    %c0_75 = arith.constant 0 : index
    %c0_76 = arith.constant 0 : index
    %c0_77 = arith.constant 0 : index
    %c9 = arith.constant 9 : index
    %48 = vector.load %arg1[%c0_75, %c0_76, %c0_77, %c9] : memref<1x4x32x64xbf16, #tpu.memory_space<vmem>>, vector<1x1x32x48xbf16>
    %49 = vector.shape_cast %48 : vector<1x1x32x48xbf16> to vector<32x48xbf16>
    %c512 = arith.constant 512 : index
    %c0_78 = arith.constant 0 : index
    %50 = vector.load %arg5[%c512, %c0_78] : memref<1152x48xbf16, #tpu.memory_space<vmem>>, vector<32x48xbf16>
    tpu.vector_store %arg5[%c512, %c0_78], %49 {strides = array<i32>} : memref<1152x48xbf16, #tpu.memory_space<vmem>>, vector<32x48xbf16>,
    %c0_79 = arith.constant 0 : index
    %c1_80 = arith.constant 1 : index
    %c0_81 = arith.constant 0 : index
    %c9_82 = arith.constant 9 : index
    %51 = vector.load %arg1[%c0_79, %c1_80, %c0_81, %c9_82] : memref<1x4x32x64xbf16, #tpu.memory_space<vmem>>, vector<1x1x32x48xbf16>
    %52 = vector.shape_cast %51 : vector<1x1x32x48xbf16> to vector<32x48xbf16>
    %c544 = arith.constant 544 : index
    %c0_83 = arith.constant 0 : index
    %53 = vector.load %arg5[%c544, %c0_83] : memref<1152x48xbf16, #tpu.memory_space<vmem>>, vector<32x48xbf16>
    tpu.vector_store %arg5[%c544, %c0_83], %52 {strides = array<i32>} : memref<1152x48xbf16, #tpu.memory_space<vmem>>, vector<32x48xbf16>,
    %c0_84 = arith.constant 0 : index
    %c2_85 = arith.constant 2 : index
    %c0_86 = arith.constant 0 : index
    %c7_87 = arith.constant 7 : index
    %54 = vector.load %arg1[%c0_84, %c2_85, %c0_86, %c7_87] : memref<1x4x32x64xbf16, #tpu.memory_space<vmem>>, vector<1x1x32x48xbf16>
    %55 = vector.shape_cast %54 : vector<1x1x32x48xbf16> to vector<32x48xbf16>
    %c576 = arith.constant 576 : index
    %c0_88 = arith.constant 0 : index
    %56 = vector.load %arg5[%c576, %c0_88] : memref<1152x48xbf16, #tpu.memory_space<vmem>>, vector<32x48xbf16>
    tpu.vector_store %arg5[%c576, %c0_88], %55 {strides = array<i32>} : memref<1152x48xbf16, #tpu.memory_space<vmem>>, vector<32x48xbf16>,
    %c0_89 = arith.constant 0 : index
    %c3_90 = arith.constant 3 : index
    %c0_91 = arith.constant 0 : index
    %c7_92 = arith.constant 7 : index
    %57 = vector.load %arg1[%c0_89, %c3_90, %c0_91, %c7_92] : memref<1x4x32x64xbf16, #tpu.memory_space<vmem>>, vector<1x1x32x48xbf16>
    %58 = vector.shape_cast %57 : vector<1x1x32x48xbf16> to vector<32x48xbf16>
    %c608 = arith.constant 608 : index
    %c0_93 = arith.constant 0 : index
    %59 = vector.load %arg5[%c608, %c0_93] : memref<1152x48xbf16, #tpu.memory_space<vmem>>, vector<32x48xbf16>
    tpu.vector_store %arg5[%c608, %c0_93], %58 {strides = array<i32>} : memref<1152x48xbf16, #tpu.memory_space<vmem>>, vector<32x48xbf16>,
    %c0_94 = arith.constant 0 : index
    %c2_95 = arith.constant 2 : index
    %c0_96 = arith.constant 0 : index
    %c8_97 = arith.constant 8 : index
    %60 = vector.load %arg1[%c0_94, %c2_95, %c0_96, %c8_97] : memref<1x4x32x64xbf16, #tpu.memory_space<vmem>>, vector<1x1x32x48xbf16>
    %61 = vector.shape_cast %60 : vector<1x1x32x48xbf16> to vector<32x48xbf16>
    %c640 = arith.constant 640 : index
    %c0_98 = arith.constant 0 : index
    %62 = vector.load %arg5[%c640, %c0_98] : memref<1152x48xbf16, #tpu.memory_space<vmem>>, vector<32x48xbf16>
    tpu.vector_store %arg5[%c640, %c0_98], %61 {strides = array<i32>} : memref<1152x48xbf16, #tpu.memory_space<vmem>>, vector<32x48xbf16>,
    %c0_99 = arith.constant 0 : index
    %c3_100 = arith.constant 3 : index
    %c0_101 = arith.constant 0 : index
    %c8_102 = arith.constant 8 : index
    %63 = vector.load %arg1[%c0_99, %c3_100, %c0_101, %c8_102] : memref<1x4x32x64xbf16, #tpu.memory_space<vmem>>, vector<1x1x32x48xbf16>
    %64 = vector.shape_cast %63 : vector<1x1x32x48xbf16> to vector<32x48xbf16>
    %c672 = arith.constant 672 : index
    %c0_103 = arith.constant 0 : index
    %65 = vector.load %arg5[%c672, %c0_103] : memref<1152x48xbf16, #tpu.memory_space<vmem>>, vector<32x48xbf16>
    tpu.vector_store %arg5[%c672, %c0_103], %64 {strides = array<i32>} : memref<1152x48xbf16, #tpu.memory_space<vmem>>, vector<32x48xbf16>,
    %c0_104 = arith.constant 0 : index
    %c2_105 = arith.constant 2 : index
    %c0_106 = arith.constant 0 : index
    %c9_107 = arith.constant 9 : index
    %66 = vector.load %arg1[%c0_104, %c2_105, %c0_106, %c9_107] : memref<1x4x32x64xbf16, #tpu.memory_space<vmem>>, vector<1x1x32x48xbf16>
    %67 = vector.shape_cast %66 : vector<1x1x32x48xbf16> to vector<32x48xbf16>
    %c704 = arith.constant 704 : index
    %c0_108 = arith.constant 0 : index
    %68 = vector.load %arg5[%c704, %c0_108] : memref<1152x48xbf16, #tpu.memory_space<vmem>>, vector<32x48xbf16>
    tpu.vector_store %arg5[%c704, %c0_108], %67 {strides = array<i32>} : memref<1152x48xbf16, #tpu.memory_space<vmem>>, vector<32x48xbf16>,
    %c0_109 = arith.constant 0 : index
    %c3_110 = arith.constant 3 : index
    %c0_111 = arith.constant 0 : index
    %c9_112 = arith.constant 9 : index
    %69 = vector.load %arg1[%c0_109, %c3_110, %c0_111, %c9_112] : memref<1x4x32x64xbf16, #tpu.memory_space<vmem>>, vector<1x1x32x48xbf16>
    %70 = vector.shape_cast %69 : vector<1x1x32x48xbf16> to vector<32x48xbf16>
    %c736 = arith.constant 736 : index
    %c0_113 = arith.constant 0 : index
    %71 = vector.load %arg5[%c736, %c0_113] : memref<1152x48xbf16, #tpu.memory_space<vmem>>, vector<32x48xbf16>
    tpu.vector_store %arg5[%c736, %c0_113], %70 {strides = array<i32>} : memref<1152x48xbf16, #tpu.memory_space<vmem>>, vector<32x48xbf16>,
    %c0_114 = arith.constant 0 : index
    %c0_115 = arith.constant 0 : index
    %c0_116 = arith.constant 0 : index
    %c14 = arith.constant 14 : index
    %72 = vector.load %arg1[%c0_114, %c0_115, %c0_116, %c14] : memref<1x4x32x64xbf16, #tpu.memory_space<vmem>>, vector<1x1x32x48xbf16>
    %73 = vector.shape_cast %72 : vector<1x1x32x48xbf16> to vector<32x48xbf16>
    %c768 = arith.constant 768 : index
    %c0_117 = arith.constant 0 : index
    %74 = vector.load %arg5[%c768, %c0_117] : memref<1152x48xbf16, #tpu.memory_space<vmem>>, vector<32x48xbf16>
    tpu.vector_store %arg5[%c768, %c0_117], %73 {strides = array<i32>} : memref<1152x48xbf16, #tpu.memory_space<vmem>>, vector<32x48xbf16>,
    %c0_118 = arith.constant 0 : index
    %c1_119 = arith.constant 1 : index
    %c0_120 = arith.constant 0 : index
    %c14_121 = arith.constant 14 : index
    %75 = vector.load %arg1[%c0_118, %c1_119, %c0_120, %c14_121] : memref<1x4x32x64xbf16, #tpu.memory_space<vmem>>, vector<1x1x32x48xbf16>
    %76 = vector.shape_cast %75 : vector<1x1x32x48xbf16> to vector<32x48xbf16>
    %c800 = arith.constant 800 : index
    %c0_122 = arith.constant 0 : index
    %77 = vector.load %arg5[%c800, %c0_122] : memref<1152x48xbf16, #tpu.memory_space<vmem>>, vector<32x48xbf16>
    tpu.vector_store %arg5[%c800, %c0_122], %76 {strides = array<i32>} : memref<1152x48xbf16, #tpu.memory_space<vmem>>, vector<32x48xbf16>,
    %c0_123 = arith.constant 0 : index
    %c0_124 = arith.constant 0 : index
    %c0_125 = arith.constant 0 : index
    %c15 = arith.constant 15 : index
    %78 = vector.load %arg1[%c0_123, %c0_124, %c0_125, %c15] : memref<1x4x32x64xbf16, #tpu.memory_space<vmem>>, vector<1x1x32x48xbf16>
    %79 = vector.shape_cast %78 : vector<1x1x32x48xbf16> to vector<32x48xbf16>
    %c832 = arith.constant 832 : index
    %c0_126 = arith.constant 0 : index
    %80 = vector.load %arg5[%c832, %c0_126] : memref<1152x48xbf16, #tpu.memory_space<vmem>>, vector<32x48xbf16>
    tpu.vector_store %arg5[%c832, %c0_126], %79 {strides = array<i32>} : memref<1152x48xbf16, #tpu.memory_space<vmem>>, vector<32x48xbf16>,
    %c0_127 = arith.constant 0 : index
    %c1_128 = arith.constant 1 : index
    %c0_129 = arith.constant 0 : index
    %c15_130 = arith.constant 15 : index
    %81 = vector.load %arg1[%c0_127, %c1_128, %c0_129, %c15_130] : memref<1x4x32x64xbf16, #tpu.memory_space<vmem>>, vector<1x1x32x48xbf16>
    %82 = vector.shape_cast %81 : vector<1x1x32x48xbf16> to vector<32x48xbf16>
    %c864 = arith.constant 864 : index
    %c0_131 = arith.constant 0 : index
    %83 = vector.load %arg5[%c864, %c0_131] : memref<1152x48xbf16, #tpu.memory_space<vmem>>, vector<32x48xbf16>
    tpu.vector_store %arg5[%c864, %c0_131], %82 {strides = array<i32>} : memref<1152x48xbf16, #tpu.memory_space<vmem>>, vector<32x48xbf16>,
    %c0_132 = arith.constant 0 : index
    %c0_133 = arith.constant 0 : index
    %c0_134 = arith.constant 0 : index
    %c16 = arith.constant 16 : index
    %84 = vector.load %arg1[%c0_132, %c0_133, %c0_134, %c16] : memref<1x4x32x64xbf16, #tpu.memory_space<vmem>>, vector<1x1x32x48xbf16>
    %85 = vector.shape_cast %84 : vector<1x1x32x48xbf16> to vector<32x48xbf16>
    %c896 = arith.constant 896 : index
    %c0_135 = arith.constant 0 : index
    %86 = vector.load %arg5[%c896, %c0_135] : memref<1152x48xbf16, #tpu.memory_space<vmem>>, vector<32x48xbf16>
    tpu.vector_store %arg5[%c896, %c0_135], %85 {strides = array<i32>} : memref<1152x48xbf16, #tpu.memory_space<vmem>>, vector<32x48xbf16>,
    %c0_136 = arith.constant 0 : index
    %c1_137 = arith.constant 1 : index
    %c0_138 = arith.constant 0 : index
    %c16_139 = arith.constant 16 : index
    %87 = vector.load %arg1[%c0_136, %c1_137, %c0_138, %c16_139] : memref<1x4x32x64xbf16, #tpu.memory_space<vmem>>, vector<1x1x32x48xbf16>
    %88 = vector.shape_cast %87 : vector<1x1x32x48xbf16> to vector<32x48xbf16>
    %c928 = arith.constant 928 : index
    %c0_140 = arith.constant 0 : index
    %89 = vector.load %arg5[%c928, %c0_140] : memref<1152x48xbf16, #tpu.memory_space<vmem>>, vector<32x48xbf16>
    tpu.vector_store %arg5[%c928, %c0_140], %88 {strides = array<i32>} : memref<1152x48xbf16, #tpu.memory_space<vmem>>, vector<32x48xbf16>,
    %c0_141 = arith.constant 0 : index
    %c2_142 = arith.constant 2 : index
    %c0_143 = arith.constant 0 : index
    %c14_144 = arith.constant 14 : index
    %90 = vector.load %arg1[%c0_141, %c2_142, %c0_143, %c14_144] : memref<1x4x32x64xbf16, #tpu.memory_space<vmem>>, vector<1x1x32x48xbf16>
    %91 = vector.shape_cast %90 : vector<1x1x32x48xbf16> to vector<32x48xbf16>
    %c960 = arith.constant 960 : index
    %c0_145 = arith.constant 0 : index
    %92 = vector.load %arg5[%c960, %c0_145] : memref<1152x48xbf16, #tpu.memory_space<vmem>>, vector<32x48xbf16>
    tpu.vector_store %arg5[%c960, %c0_145], %91 {strides = array<i32>} : memref<1152x48xbf16, #tpu.memory_space<vmem>>, vector<32x48xbf16>,
    %c0_146 = arith.constant 0 : index
    %c3_147 = arith.constant 3 : index
    %c0_148 = arith.constant 0 : index
    %c14_149 = arith.constant 14 : index
    %93 = vector.load %arg1[%c0_146, %c3_147, %c0_148, %c14_149] : memref<1x4x32x64xbf16, #tpu.memory_space<vmem>>, vector<1x1x32x48xbf16>
    %94 = vector.shape_cast %93 : vector<1x1x32x48xbf16> to vector<32x48xbf16>
    %c992 = arith.constant 992 : index
    %c0_150 = arith.constant 0 : index
    %95 = vector.load %arg5[%c992, %c0_150] : memref<1152x48xbf16, #tpu.memory_space<vmem>>, vector<32x48xbf16>
    tpu.vector_store %arg5[%c992, %c0_150], %94 {strides = array<i32>} : memref<1152x48xbf16, #tpu.memory_space<vmem>>, vector<32x48xbf16>,
    %c0_151 = arith.constant 0 : index
    %c2_152 = arith.constant 2 : index
    %c0_153 = arith.constant 0 : index
    %c15_154 = arith.constant 15 : index
    %96 = vector.load %arg1[%c0_151, %c2_152, %c0_153, %c15_154] : memref<1x4x32x64xbf16, #tpu.memory_space<vmem>>, vector<1x1x32x48xbf16>
    %97 = vector.shape_cast %96 : vector<1x1x32x48xbf16> to vector<32x48xbf16>
    %c1024 = arith.constant 1024 : index
    %c0_155 = arith.constant 0 : index
    %98 = vector.load %arg5[%c1024, %c0_155] : memref<1152x48xbf16, #tpu.memory_space<vmem>>, vector<32x48xbf16>
    tpu.vector_store %arg5[%c1024, %c0_155], %97 {strides = array<i32>} : memref<1152x48xbf16, #tpu.memory_space<vmem>>, vector<32x48xbf16>,
    %c0_156 = arith.constant 0 : index
    %c3_157 = arith.constant 3 : index
    %c0_158 = arith.constant 0 : index
    %c15_159 = arith.constant 15 : index
    %99 = vector.load %arg1[%c0_156, %c3_157, %c0_158, %c15_159] : memref<1x4x32x64xbf16, #tpu.memory_space<vmem>>, vector<1x1x32x48xbf16>
    %100 = vector.shape_cast %99 : vector<1x1x32x48xbf16> to vector<32x48xbf16>
    %c1056 = arith.constant 1056 : index
    %c0_160 = arith.constant 0 : index
    %101 = vector.load %arg5[%c1056, %c0_160] : memref<1152x48xbf16, #tpu.memory_space<vmem>>, vector<32x48xbf16>
    tpu.vector_store %arg5[%c1056, %c0_160], %100 {strides = array<i32>} : memref<1152x48xbf16, #tpu.memory_space<vmem>>, vector<32x48xbf16>,
    %c0_161 = arith.constant 0 : index
    %c2_162 = arith.constant 2 : index
    %c0_163 = arith.constant 0 : index
    %c16_164 = arith.constant 16 : index
    %102 = vector.load %arg1[%c0_161, %c2_162, %c0_163, %c16_164] : memref<1x4x32x64xbf16, #tpu.memory_space<vmem>>, vector<1x1x32x48xbf16>
    %103 = vector.shape_cast %102 : vector<1x1x32x48xbf16> to vector<32x48xbf16>
    %c1088 = arith.constant 1088 : index
    %c0_165 = arith.constant 0 : index
    %104 = vector.load %arg5[%c1088, %c0_165] : memref<1152x48xbf16, #tpu.memory_space<vmem>>, vector<32x48xbf16>
    tpu.vector_store %arg5[%c1088, %c0_165], %103 {strides = array<i32>} : memref<1152x48xbf16, #tpu.memory_space<vmem>>, vector<32x48xbf16>,
    %c0_166 = arith.constant 0 : index
    %c3_167 = arith.constant 3 : index
    %c0_168 = arith.constant 0 : index
    %c16_169 = arith.constant 16 : index
    %105 = vector.load %arg1[%c0_166, %c3_167, %c0_168, %c16_169] : memref<1x4x32x64xbf16, #tpu.memory_space<vmem>>, vector<1x1x32x48xbf16>
    %106 = vector.shape_cast %105 : vector<1x1x32x48xbf16> to vector<32x48xbf16>
    %c1120 = arith.constant 1120 : index
    %c0_170 = arith.constant 0 : index
    %107 = vector.load %arg5[%c1120, %c0_170] : memref<1152x48xbf16, #tpu.memory_space<vmem>>, vector<32x48xbf16>
    tpu.vector_store %arg5[%c1120, %c0_170], %106 {strides = array<i32>} : memref<1152x48xbf16, #tpu.memory_space<vmem>>, vector<32x48xbf16>,
    %c0_171 = arith.constant 0 : index
    %c0_172 = arith.constant 0 : index
    %108 = vector.load %arg2[%c0_171, %c0_172] : memref<64x1152xbf16, #tpu.memory_space<vmem>>, vector<64x1152xbf16>
    %c0_173 = arith.constant 0 : index
    %c0_174 = arith.constant 0 : index
    %109 = vector.load %arg5[%c0_173, %c0_174] : memref<1152x48xbf16, #tpu.memory_space<vmem>>, vector<1152x48xbf16>
    %cst = arith.constant dense<0.000000e+00> : vector<64x48xf32>
    %110 = tpu.matmul %108, %109, %cst {dimension_numbers = #tpu.dot_dimension_numbers<[1], [0], [0], [1], [0, 0, 1, 1], [], []>} : vector<64x1152xbf16>, vector<1152x48xbf16>, vector<64x48xf32> -> vector<64x48xf32>
    %111 = vector.extract_strided_slice %110 {offsets = [0, 0], sizes = [16, 48], strides = [1, 1]} : vector<64x48xf32> to vector<16x48xf32>
    %112 = vector.extract_strided_slice %110 {offsets = [16, 0], sizes = [16, 48], strides = [1, 1]} : vector<64x48xf32> to vector<16x48xf32>
    %113 = arith.maximumf %111, %112 : vector<16x48xf32>
    %114 = vector.extract_strided_slice %110 {offsets = [32, 0], sizes = [16, 48], strides = [1, 1]} : vector<64x48xf32> to vector<16x48xf32>
    %115 = vector.extract_strided_slice %110 {offsets = [48, 0], sizes = [16, 48], strides = [1, 1]} : vector<64x48xf32> to vector<16x48xf32>
    %116 = arith.maximumf %114, %115 : vector<16x48xf32>
    %117 = arith.maximumf %113, %116 : vector<16x48xf32>
    %c0_175 = arith.constant 0 : index
    %c0_176 = arith.constant 0 : index
    %118 = vector.load %arg3[%c0_175, %c0_176] : memref<16x1xf32, #tpu.memory_space<vmem>>, vector<16x1xf32>
    %119 = vector.broadcast %118 : vector<16x1xf32> to vector<16x48xf32>
    %120 = arith.addf %117, %119 : vector<16x48xf32>
    %cst_177 = arith.constant 0.000000e+00 : f32
    %121 = vector.broadcast %cst_177 : f32 to vector<16x48xf32>
    %122 = arith.maximumf %120, %121 : vector<16x48xf32>
    %c0_178 = arith.constant 0 : index
    %c0_179 = arith.constant 0 : index
    %c0_180 = arith.constant 0 : index
    %123 = vector.load %arg4[%c0_178, %c0_179, %c0_180] : memref<1x16x48xf32, #tpu.memory_space<vmem>>, vector<1x16x48xf32>
    %124 = vector.shape_cast %123 : vector<1x16x48xf32> to vector<16x48xf32>
    %125 = vector.shape_cast %122 : vector<16x48xf32> to vector<1x16x48xf32>
    tpu.vector_store %arg4[%c0_178, %c0_179, %c0_180], %125 {strides = array<i32>} : memref<1x16x48xf32, #tpu.memory_space<vmem>>, vector<1x16x48xf32>,
    return
  }
  func.func @transform_0(%arg0: i32) -> (i32, i32, i32, i32) {
    %c0_i32 = arith.constant 0 : i32
    %c0_i32_0 = arith.constant 0 : i32
    %c0_i32_1 = arith.constant 0 : i32
    %c0_i32_2 = arith.constant 0 : i32
    return %arg0, %c0_i32, %c0_i32_0, %c0_i32_1 : i32, i32, i32, i32
  }
  func.func @transform_1(%arg0: i32) -> (i32, i32) {
    %c0_i32 = arith.constant 0 : i32
    %c0_i32_0 = arith.constant 0 : i32
    %c0_i32_1 = arith.constant 0 : i32
    return %c0_i32, %c0_i32_0 : i32, i32
  }
  func.func @transform_2(%arg0: i32) -> (i32, i32) {
    %c0_i32 = arith.constant 0 : i32
    %c0_i32_0 = arith.constant 0 : i32
    %c0_i32_1 = arith.constant 0 : i32
    return %c0_i32, %c0_i32_0 : i32, i32
  }
  func.func @transform_3(%arg0: i32) -> (i32, i32, i32) {
    %c0_i32 = arith.constant 0 : i32
    %c0_i32_0 = arith.constant 0 : i32
    %c0_i32_1 = arith.constant 0 : i32
    return %arg0, %c0_i32, %c0_i32_0 : i32, i32, i32
  }
}

module attributes {stable_mosaic.version = 11 : i64} {
  func.func @fc_stack_kernel(%arg0: i32, %arg1: memref<8x256xf32, #tpu.memory_space<vmem>>, %arg2: memref<256x128xf32, #tpu.memory_space<vmem>>, %arg3: memref<1x128xf32, #tpu.memory_space<vmem>>, %arg4: memref<128x64xf32, #tpu.memory_space<vmem>>, %arg5: memref<1x64xf32, #tpu.memory_space<vmem>>, %arg6: memref<64x10xf32, #tpu.memory_space<vmem>>, %arg7: memref<1x10xf32, #tpu.memory_space<vmem>>, %arg8: memref<8x10xf32, #tpu.memory_space<vmem>>) attributes {dimension_semantics = [#tpu.dimension_semantics<parallel>], iteration_bounds = array<i64: 1>, scalar_prefetch = 0 : i64, scratch_operands = 0 : i64, tpu.core_type = #tpu.core_type<tc>, window_params = [{transform_indices = @transform_0, window_bounds = array<i64: 8, 256>}, {pipeline_mode = #tpu.pipeline_mode<synchronous>, transform_indices = @transform_1, window_bounds = array<i64: 256, 128>}, {pipeline_mode = #tpu.pipeline_mode<synchronous>, transform_indices = @transform_2, window_bounds = array<i64: 1, 128>}, {pipeline_mode = #tpu.pipeline_mode<synchronous>, transform_indices = @transform_3, window_bounds = array<i64: 128, 64>}, {pipeline_mode = #tpu.pipeline_mode<synchronous>, transform_indices = @transform_4, window_bounds = array<i64: 1, 64>}, {pipeline_mode = #tpu.pipeline_mode<synchronous>, transform_indices = @transform_5, window_bounds = array<i64: 64, 10>}, {pipeline_mode = #tpu.pipeline_mode<synchronous>, transform_indices = @transform_6, window_bounds = array<i64: 1, 10>}, {transform_indices = @transform_7, window_bounds = array<i64: 8, 10>}]} {
    %c0 = arith.constant 0 : index
    %c0_0 = arith.constant 0 : index
    %0 = vector.load %arg1[%c0, %c0_0] : memref<8x256xf32, #tpu.memory_space<vmem>>, vector<8x256xf32>
    %c0_1 = arith.constant 0 : index
    %c0_2 = arith.constant 0 : index
    %1 = vector.load %arg2[%c0_1, %c0_2] : memref<256x128xf32, #tpu.memory_space<vmem>>, vector<256x128xf32>
    %cst = arith.constant dense<0.000000e+00> : vector<8x128xf32>
    %2 = tpu.matmul %0, %1, %cst {dimension_numbers = #tpu.dot_dimension_numbers<[1], [0], [0], [1], [0, 0, 1, 1], [], []>} : vector<8x256xf32>, vector<256x128xf32>, vector<8x128xf32> -> vector<8x128xf32>
    %c0_3 = arith.constant 0 : index
    %c0_4 = arith.constant 0 : index
    %3 = vector.load %arg3[%c0_3, %c0_4] : memref<1x128xf32, #tpu.memory_space<vmem>>, vector<1x128xf32>
    %4 = vector.broadcast %3 : vector<1x128xf32> to vector<8x128xf32>
    %5 = arith.addf %2, %4 : vector<8x128xf32>
    %cst_5 = arith.constant 0.000000e+00 : f32
    %6 = vector.broadcast %cst_5 : f32 to vector<8x128xf32>
    %7 = arith.maximumf %5, %6 : vector<8x128xf32>
    %c0_6 = arith.constant 0 : index
    %c0_7 = arith.constant 0 : index
    %8 = vector.load %arg4[%c0_6, %c0_7] : memref<128x64xf32, #tpu.memory_space<vmem>>, vector<128x64xf32>
    %cst_8 = arith.constant dense<0.000000e+00> : vector<8x64xf32>
    %9 = tpu.matmul %7, %8, %cst_8 {dimension_numbers = #tpu.dot_dimension_numbers<[1], [0], [0], [1], [0, 0, 1, 1], [], []>} : vector<8x128xf32>, vector<128x64xf32>, vector<8x64xf32> -> vector<8x64xf32>
    %c0_9 = arith.constant 0 : index
    %c0_10 = arith.constant 0 : index
    %10 = vector.load %arg5[%c0_9, %c0_10] : memref<1x64xf32, #tpu.memory_space<vmem>>, vector<1x64xf32>
    %11 = vector.broadcast %10 : vector<1x64xf32> to vector<8x64xf32>
    %12 = arith.addf %9, %11 : vector<8x64xf32>
    %cst_11 = arith.constant 0.000000e+00 : f32
    %13 = vector.broadcast %cst_11 : f32 to vector<8x64xf32>
    %14 = arith.maximumf %12, %13 : vector<8x64xf32>
    %c0_12 = arith.constant 0 : index
    %c0_13 = arith.constant 0 : index
    %15 = vector.load %arg6[%c0_12, %c0_13] : memref<64x10xf32, #tpu.memory_space<vmem>>, vector<64x10xf32>
    %cst_14 = arith.constant dense<0.000000e+00> : vector<8x10xf32>
    %16 = tpu.matmul %14, %15, %cst_14 {dimension_numbers = #tpu.dot_dimension_numbers<[1], [0], [0], [1], [0, 0, 1, 1], [], []>} : vector<8x64xf32>, vector<64x10xf32>, vector<8x10xf32> -> vector<8x10xf32>
    %c0_15 = arith.constant 0 : index
    %c0_16 = arith.constant 0 : index
    %17 = vector.load %arg7[%c0_15, %c0_16] : memref<1x10xf32, #tpu.memory_space<vmem>>, vector<1x10xf32>
    %18 = vector.broadcast %17 : vector<1x10xf32> to vector<8x10xf32>
    %19 = arith.addf %16, %18 : vector<8x10xf32>
    %c0_17 = arith.constant 0 : index
    %c0_18 = arith.constant 0 : index
    %20 = vector.load %arg8[%c0_17, %c0_18] : memref<8x10xf32, #tpu.memory_space<vmem>>, vector<8x10xf32>
    tpu.vector_store %arg8[%c0_17, %c0_18], %19 {strides = array<i32>} : memref<8x10xf32, #tpu.memory_space<vmem>>, vector<8x10xf32>,
    return
  }
  func.func @transform_0(%arg0: i32) -> (i32, i32) {
    %c0_i32 = arith.constant 0 : i32
    %c0_i32_0 = arith.constant 0 : i32
    return %arg0, %c0_i32 : i32, i32
  }
  func.func @transform_1(%arg0: i32) -> (i32, i32) {
    %c0_i32 = arith.constant 0 : i32
    %c0_i32_0 = arith.constant 0 : i32
    %c0_i32_1 = arith.constant 0 : i32
    return %c0_i32, %c0_i32_0 : i32, i32
  }
  func.func @transform_2(%arg0: i32) -> (i32, i32) {
    %c0_i32 = arith.constant 0 : i32
    %c0_i32_0 = arith.constant 0 : i32
    %c0_i32_1 = arith.constant 0 : i32
    return %c0_i32, %c0_i32_0 : i32, i32
  }
  func.func @transform_3(%arg0: i32) -> (i32, i32) {
    %c0_i32 = arith.constant 0 : i32
    %c0_i32_0 = arith.constant 0 : i32
    %c0_i32_1 = arith.constant 0 : i32
    return %c0_i32, %c0_i32_0 : i32, i32
  }
  func.func @transform_4(%arg0: i32) -> (i32, i32) {
    %c0_i32 = arith.constant 0 : i32
    %c0_i32_0 = arith.constant 0 : i32
    %c0_i32_1 = arith.constant 0 : i32
    return %c0_i32, %c0_i32_0 : i32, i32
  }
  func.func @transform_5(%arg0: i32) -> (i32, i32) {
    %c0_i32 = arith.constant 0 : i32
    %c0_i32_0 = arith.constant 0 : i32
    %c0_i32_1 = arith.constant 0 : i32
    return %c0_i32, %c0_i32_0 : i32, i32
  }
  func.func @transform_6(%arg0: i32) -> (i32, i32) {
    %c0_i32 = arith.constant 0 : i32
    %c0_i32_0 = arith.constant 0 : i32
    %c0_i32_1 = arith.constant 0 : i32
    return %c0_i32, %c0_i32_0 : i32, i32
  }
  func.func @transform_7(%arg0: i32) -> (i32, i32) {
    %c0_i32 = arith.constant 0 : i32
    %c0_i32_0 = arith.constant 0 : i32
    return %arg0, %c0_i32 : i32, i32
  }
}

</mosaic_0001>

<bundles_post_ra>
// kernel: cnn_forward.5
= control target key start
LH: loop header
LB: loop body
LE: loop exit
PB: predicated region body
PF: predicated region fallthrough
CT: control target
= control target key end

     0   :  { %vm158_vm0 = vcmask 523264   ;;  %vm182_vm1 = vcmask 80896   ;;  %s418_s1 = inlined_call_operand.vmem [shape: f32[256,128], index: 1, kind: input, shape index: {}]   ;;  %s419_s3 = inlined_call_operand.vmem [shape: f32[128,64], index: 3, kind: input, shape index: {}]   ;;  %s420_s2 = inlined_call_operand.vmem [shape: f32[1,128], index: 2, kind: input, shape index: {}]   ;;  %s421_s0 = inlined_call_operand.vmem [shape: f32[8,256], index: 0, kind: input, shape index: {}]   ;;  %s422_s4 = inlined_call_operand.vmem [shape: f32[1,64], index: 4, kind: input, shape index: {}]   ;;  %s423_s5 = inlined_call_operand.vmem [shape: f32[64,10], index: 5, kind: input, shape index: {}]   ;;  %s424_s6 = inlined_call_operand.vmem [shape: f32[1,10], index: 6, kind: input, shape index: {}]   ;;  %s425_s7 = inlined_call_operand.vmem [shape: f32[8,10], index: 7, kind: output, shape index: {}]  }
   0x1   :  { %v43_v0 = vld [vmem:[%s418_s1 + $0x78] sm:$0xff]  ;;  %v42_v1 = vld [vmem:[%s418_s1 + $0x70] sm:$0xff]  ;;  %v41_v4 = vld [vmem:[%s418_s1 + $0x68] sm:$0xff] }
   0x2   :  { %v59_v2 = vld [vmem:[%s418_s1 + $0xf8] sm:$0xff]  ;;  %64 = vmatpush.msra.mxu0 %v43_v0  ;;  %v58_v3 = vld [vmem:[%s418_s1 + $0xf0] sm:$0xff]  ;;  %v57_v5 = vld [vmem:[%s418_s1 + $0xe8] sm:$0xff] }
   0x3   :  { %84 = vmatpush.msra.mxu1 %v59_v2  ;;  %v40_v6 = vld [vmem:[%s418_s1 + $0x60] sm:$0xff]  ;;  %v39_v8 = vld [vmem:[%s418_s1 + $0x58] sm:$0xff]  ;;  %v38_v10 = vld [vmem:[%s418_s1 + $0x50] sm:$0xff] }
   0x4   :  { %65 = vmatpush.msra.mxu0 %v42_v1  ;;  %v56_v7 = vld [vmem:[%s418_s1 + $0xe0] sm:$0xff]  ;;  %v55_v9 = vld [vmem:[%s418_s1 + $0xd8] sm:$0xff]  ;;  %v54_v11 = vld [vmem:[%s418_s1 + $0xd0] sm:$0xff] }
   0x5   :  { %85 = vmatpush.msra.mxu1 %v58_v3  ;;  %v37_v12 = vld [vmem:[%s418_s1 + $0x48] sm:$0xff]  ;;  %v120_v14 = vld [vmem:[%s419_s3 + $0x78] sm:$0xff]  ;;  %v119_v15 = vld [vmem:[%s419_s3 + $0x70] sm:$0xff] }
   0x6   :  { %66 = vmatpush.msra.mxu0 %v41_v4  ;;  %v53_v13 = vld [vmem:[%s418_s1 + $0xc8] sm:$0xff]  ;;  %v36_v16 = vld [vmem:[%s418_s1 + $0x40] sm:$0xff]  ;;  %125 = vmatpush.msra.mxu2 %v120_v14  ;;  %v35_v19 = vld [vmem:[%s418_s1 + $0x38] sm:$0xff] }
   0x7   :  { %86 = vmatpush.msra.mxu1 %v57_v5  ;;  %v52_v17 = vld [vmem:[%s418_s1 + $0xc0] sm:$0xff]  ;;  %v118_v18 = vld [vmem:[%s419_s3 + $0x68] sm:$0xff]  ;;  %v51_v20 = vld [vmem:[%s418_s1 + $0xb8] sm:$0xff] }
   0x8   :  { %67 = vmatpush.msra.mxu0 %v40_v6  ;;  %126 = vmatpush.msra.mxu2 %v119_v15  ;;  %v117_v21 = vld [vmem:[%s419_s3 + $0x60] sm:$0xff]  ;;  %v34_v22 = vld [vmem:[%s418_s1 + $0x30] sm:$0xff]  ;;  %v116_v24 = vld [vmem:[%s419_s3 + $0x58] sm:$0xff] }
   0x9   :  { %87 = vmatpush.msra.mxu1 %v56_v7  ;;  %v50_v23 = vld [vmem:[%s418_s1 + $0xb0] sm:$0xff]  ;;  %v33_v25 = vld [vmem:[%s418_s1 + $0x28] sm:$0xff]  ;;  %v32_v28 = vld [vmem:[%s418_s1 + $0x20] sm:$0xff] }
   0xa   :  { %68 = vmatpush.msra.mxu0 %v39_v8  ;;  %127 = vmatpush.msra.mxu2 %v118_v18  ;;  %v49_v26 = vld [vmem:[%s418_s1 + $0xa8] sm:$0xff]  ;;  %v115_v27 = vld [vmem:[%s419_s3 + $0x50] sm:$0xff]  ;;  %v48_v29 = vld [vmem:[%s418_s1 + $0xa0] sm:$0xff] }
   0xb   :  { %88 = vmatpush.msra.mxu1 %v55_v9  ;;  %v114_v30 = vld [vmem:[%s419_s3 + $0x48] sm:$0xff]  ;;  %v31_v31 = vld [vmem:[%s418_s1 + $0x18] sm:$0xff]  ;;  %v113_v33 = vld [vmem:[%s419_s3 + $0x40] sm:$0xff] }
   0xc   :  { %69 = vmatpush.msra.mxu0 %v38_v10  ;;  %128 = vmatpush.msra.mxu2 %v117_v21  ;;  %v47_v32 = vld [vmem:[%s418_s1 + $0x98] sm:$0xff]  ;;  %v30_v34 = vld [vmem:[%s418_s1 + $0x10] sm:$0xff]  ;;  %v29_v37 = vld [vmem:[%s418_s1 + $0x8] sm:$0xff] }
   0xd   :  { %89 = vmatpush.msra.mxu1 %v54_v11  ;;  %v46_v35 = vld [vmem:[%s418_s1 + $0x90] sm:$0xff]  ;;  %v112_v36 = vld [vmem:[%s419_s3 + $0x38] sm:$0xff]  ;;  %v45_v38 = vld [vmem:[%s418_s1 + $0x88] sm:$0xff] }
   0xe   :  { %70 = vmatpush.msra.mxu0 %v37_v12  ;;  %129 = vmatpush.msra.mxu2 %v116_v24  ;;  %v111_v39 = vld [vmem:[%s419_s3 + $0x30] sm:$0xff]  ;;  %v28_v40 = vld [vmem:[%s418_s1] sm:$0xff]  ;;  %v27_v43 = vld [vmem:[%s421_s0 + $0x8] sm:$0xff] }
   0xf   :  { %90 = vmatpush.msra.mxu1 %v53_v13  ;;  %v44_v41 = vld [vmem:[%s418_s1 + $0x80] sm:$0xff]  ;;  %v110_v44 = vld [vmem:[%s419_s3 + $0x28] sm:$0xff]  ;;  %v108_v46 = vld [vmem:[%s419_s3 + $0x18] sm:$0xff] }
  0x10   :  { %71 = vmatpush.msra.mxu0 %v36_v16  ;;  %130 = vmatpush.msra.mxu2 %v115_v27  ;;  %v26_v42 = vld [vmem:[%s421_s0] sm:$0xff]  ;;  %v107_v47 = vld [vmem:[%s419_s3 + $0x10] sm:$0xff]  ;;  %v106_v48 = vld [vmem:[%s419_s3 + $0x8] sm:$0xff] }
  0x11   :  { %91 = vmatpush.msra.mxu1 %v52_v17  ;;  %v109_v45 = vld [vmem:[%s419_s3 + $0x20] sm:$0xff]  ;;  %v153_v50 = vld [vmem:[%s423_s5 + $0x38] sm:$0xff]  ;;  %v152_v51 = vld [vmem:[%s423_s5 + $0x30] sm:$0xff] }
  0x12   :  { %72 = vmatpush.msra.mxu0 %v35_v19  ;;  %131 = vmatpush.msra.mxu2 %v114_v30  ;;  %v105_v49 = vld [vmem:[%s419_s3] sm:$0xff]  ;;  %v151_v52 = vld [vmem:[%s423_s5 + $0x28] sm:$0xff]  ;;  %v149_v54 = vld [vmem:[%s423_s5 + $0x18] sm:$0xff] }
  0x13   :  { %92 = vmatpush.msra.mxu1 %v51_v20  ;;  %170 = vmatpush.msra.mxu3 %v153_v50  ;;  %v150_v53 = vld [vmem:[%s423_s5 + $0x20] sm:$0xff]  ;;  %v148_v61 = vld [vmem:[%s423_s5 + $0x10] sm:$0xff]  ;;  %v147_v62 = vld [vmem:[%s423_s5 + $0x8] sm:$0xff] }
  0x14   :  { %73 = vmatpush.msra.mxu0 %v34_v22  ;;  %132 = vmatpush.msra.mxu2 %v113_v33  ;;  %v189_v55 = vld [vmem:[%s420_s2] ss:$0 sm:$0xff] }
  0x15   :  { %93 = vmatpush.msra.mxu1 %v50_v23  ;;  %171 = vmatpush.msra.mxu3 %v152_v51  ;;  %v146_v63 = vld [vmem:[%s423_s5] sm:$0xff] }
  0x16   :  { %74 = vmatpush.msra.mxu0 %v33_v25  ;;  %133 = vmatpush.msra.mxu2 %v112_v36  ;;  %v190_v0 = vld [vmem:[%s422_s4] ss:$0 sm:$0xff] }
  0x17   :  { %94 = vmatpush.msra.mxu1 %v49_v26  ;;  %172 = vmatpush.msra.mxu3 %v151_v52  ;;  %v191_v4 = vld [vmem:[%s424_s6] ss:$0 sm:$0xff] }
  0x18   :  { %75 = vmatpush.msra.mxu0 %v32_v28  ;;  %134 = vmatpush.msra.mxu2 %v111_v39 }
  0x19   :  { %95 = vmatpush.msra.mxu1 %v48_v29  ;;  %173 = vmatpush.msra.mxu3 %v150_v53 }
  0x1a   :  { %76 = vmatpush.msra.mxu0 %v31_v31  ;;  %135 = vmatpush.msra.mxu2 %v110_v44 }
  0x1b   :  { %96 = vmatpush.msra.mxu1 %v47_v32  ;;  %174 = vmatpush.msra.mxu3 %v149_v54 }
  0x1c   :  { %77 = vmatpush.msra.mxu0 %v30_v34  ;;  %136 = vmatpush.msra.mxu2 %v109_v45 }
  0x1d   :  { %97 = vmatpush.msra.mxu1 %v46_v35  ;;  %175 = vmatpush.msra.mxu3 %v148_v61 }
  0x1e   :  { %78 = vmatpush.msra.mxu0 %v29_v37  ;;  %137 = vmatpush.msra.mxu2 %v108_v46 }
  0x1f   :  { %98 = vmatpush.msra.mxu1 %v45_v38  ;;  %176 = vmatpush.msra.mxu3 %v147_v62 }
  0x20   :  { %79 = vmatpush.msra.mxu0 %v28_v40  ;;  %138 = vmatpush.msra.mxu2 %v107_v47 }
  0x21   :  { %99 = vmatpush.msra.mxu1 %v44_v41  ;;  %80 = vmatmul.f32.vlgmr.msra.gmra.mxu0 %v26_v42 }
  0x22   :  { %100 = vmatmul.f32.vlgmr.msra.gmra.mxu1 %v27_v43  ;;  %139 = vmatpush.msra.mxu2 %v106_v48 }
  0x23   :  { %177 = vmatpush.msra.mxu3 %v146_v63 }
  0x24   :  { %140 = vmatpush.msra.mxu2 %v105_v49 }
  0x9e   :  { %v81_v56 = vpop.f32.mrf.mxu0 }
  0x9f   :  { %v101_v57 = vpop.f32.mrf.mxu1  ;;  %v82_v58 = vadd.f32 %v189_v55, %v81_v56 }
  0xa1   :  { %v102_v59 = vadd.f32 %v101_v57, %v82_v58 }
  0xa3   :  { %v104_v60 = vmax.f32 %v102_v59, 0.0 }
  0xa5   :  { %141 = vmatmul.f32.vlgmr.msra.gmra.mxu2 %v104_v60 }
 0x128   :  { %v142_v1 = vpop.f32.mrf.mxu2 }
 0x129   :  { %v143_v2 = vadd.f32 %v190_v0, %v142_v1 }
 0x12b   :  { %v145_v3 = vmax.f32 %v143_v2, 0.0 }
 0x12d   :  { %188 = vmatmul.msk.f32.vlgmr.msra.gmra.mxu3 %vm158_vm0, %v145_v3 }
 0x1b0   :  { %v179_v5 = vpop.f32.mrf.mxu3 }
 0x1b1   :  { %v180_v6 = vadd.f32 %v191_v4, %v179_v5 }
 0x1b3   :  { %183 = vst.msk [vmem:[%s425_s7] sm:$0xff] %vm182_vm1, %v180_v6 }

// kernel: cnn_forward.3
= control target key start
LH: loop header
LB: loop body
LE: loop exit
PB: predicated region body
PF: predicated region fallthrough
CT: control target
= control target key end

     0   :  { %s1236_s12 = smov 0   ;;  %s1585_s0 = inlined_call_operand.vmem [shape: bf16[2,4,288], index: 0, kind: input, shape index: {}]   ;;  %s1586_s1 = inlined_call_operand.vmem [shape: f32[128,36], index: 1, kind: input, shape index: {}]   ;;  %s1587_s2 = inlined_call_operand.vmem [shape: f32[32,1], index: 2, kind: input, shape index: {}]   ;;  %s1588_s3 = inlined_call_operand.vmem [shape: bf16[2,32,256], index: 3, kind: output, shape index: {}]  }
   0x1 LB: > { %s1123_s13 = sadd.s32 4294967295, %s1205_s12   ;;  %p1127_p0 = scmp.ge.s32.totalorder %s1205_s12, 1  ;;  %s1205_s12 = sphi %s1236_s12, %s13_s12  }
   0x2   : > { %p137_p1 = scmp.lt.s32.totalorder %s1205_s12, 3 }
   0x4   : > { %p138_p2 = pnand %p1127_p0, %p137_p1 }
   0x5   : > { %p161_p3 = scmp.lt.s32.totalorder (!%p138_p2), %s1123_s13, 1  ;;  %s1207_s18 = smov (!%p138_p2), 97  }
   0x6   : > { %141 = sbr.rel (%p138_p2) target bundleno = 599 (0x257), region = 32  ;;  %s1208_s19 = smov (!%p138_p2), 127  }
   0x7   : > { %s1209_s20 = smov (!%p138_p2), 111   ;;  %s1210_s21 = smov (!%p138_p2), 113  }
   0x8   : > { %s1211_s22 = smov (!%p138_p2), 98   ;;  %s1212_s23 = smov (!%p138_p2), 96  }
   0x9   : > { %s1213_s24 = smov (!%p138_p2), 126   ;;  %s1214_s25 = smov (!%p138_p2), 112  }
   0xb   : > { %s1592_s13 = smov (!%p161_p3, %s1123_s13), 1  ;;  %vm175_vm0 = vcmask 1040384   ;;  %vm203_vm1 = vcmask 1042434   ;;  %vm205_vm2 = vcmask 1041408   ;;  %vm622_vm3 = vcmask 793600  }
   0xc   : > { %s1178_s14 = smul.u32 6, %s1592_s13  ;;  %vm585_vm5 = vcmask 801792   ;;  %vm659_vm6 = vcmask 785408   ;;  %vm446_vm7 = vcmask 908288   ;;  %vm210_vm8 = vcmask 1039360   ;;  %s1167_s16 = sshll.u32 %s1592_s13, 5 }
   0xd   : > { %vm409_vm9 = vcmask 916480   ;;  %vm372_vm10 = vcmask 924672   ;;  %vm247_vm11 = vcmask 1031168   ;;  %vm859_vm12 = vcmask 1043456  }
   0xe   : > { %s1250_s17 = scalar_lea.vmem %s1585_s0, %s1178_s14  ;;  %vm810_vm13 = vcmask 293888  }
   0xf   : > { %v608_v0 = vld [vmem:[%s1250_s17] sm:$0x15]  ;;  %v270_v46 = vld [vmem:[%s1250_s17] sm:$0xa] }
  0x10   : > { %v432_v1 = vld [vmem:[%s1250_s17] sm:$0x15]  ;;  %v609_v3 = vunpack.c.l.bf16 %v608_v0  ;;  %v610_v4 = vunpack.c.h.bf16 %v608_v0  ;;  %v271_v47 = vunpack.c.l.bf16 %v270_v46  ;;  %v280_v49 = vld [vmem:[%s1250_s17] sm:$0xa] }
  0x11   : > { %v194_v2 = vld [vmem:[%s1250_s17] sm:$0x15]  ;;  %v433_v5 = vunpack.c.l.bf16 %v432_v1  ;;  %v434_v6 = vunpack.c.h.bf16 %v432_v1  ;;  %v281_v50 = vunpack.c.l.bf16 %v280_v49  ;;  %v290_v52 = vld [vmem:[%s1250_s17] sm:$0x2a] }
  0x12   : > { %v195_v7 = vunpack.c.l.bf16 %v194_v2  ;;  %v196_v8 = vunpack.c.h.bf16 %v194_v2  ;;  %v613_v9 = vrot.slane %v609_v3, 3  ;;  %v614_v10 = vrot.slane %v610_v4, 6  ;;  %v184_v20 = vld [vmem:[%s1250_s17] sm:$0x5]  ;;  %v307_v1 = vld [vmem:[%s1250_s17] sm:$0x2a] }
  0x13   : > { %v615_v11 = vrot.slane %v610_v4, 1  ;;  %v437_v12 = vrot.slane %v433_v5, 3  ;;  %v438_v13 = vrot.slane %v434_v6, 6  ;;  %v439_v18 = vrot.slane %v434_v6, 1  ;;  %v358_v23 = vld [vmem:[%s1250_s17] sm:$0x15] }
  0x14   : > { %v199_v14 = vrot.slane %v195_v7, 3  ;;  %v200_v15 = vrot.slane %v196_v8, 6  ;;  %v616_v16 = vsel %vm175_vm0, %v609_v3, %v613_v9  ;;  %v201_v19 = vrot.slane %v196_v8, 1  ;;  %v216_v31 = vld [vmem:[%s1250_s17] sm:$0x15] }
  0x15   : > { %v617_v17 = vsel %vm203_vm1, %v614_v10, %v615_v11  ;;  %v185_v26 = vunpack.c.l.bf16 %v184_v20  ;;  %v440_v27 = vsel %vm175_vm0, %v433_v5, %v437_v12  ;;  %v441_v28 = vsel %vm203_vm1, %v438_v13, %v439_v18  ;;  %v253_v42 = vld [vmem:[%s1250_s17] sm:$0x15]  ;;  %v324_v5 = vld [vmem:[%s1250_s17] sm:$0x2a] }
  0x16   : > { %v618_v21 = vsel %vm205_vm2, %v616_v16, %v617_v17  ;;  %v202_v22 = vsel %vm175_vm0, %v195_v7, %v199_v14  ;;  %v204_v24 = vsel %vm203_vm1, %v200_v15, %v201_v19  ;;  %v359_v29 = vunpack.c.l.bf16 %v358_v23  ;;  %v571_v53 = vld [vmem:[%s1250_s17] sm:$0x15]  ;;  %v341_v18 = vld [vmem:[%s1250_s17] sm:$0x2a] }
  0x17   : > { %619 = vrot.lane.b32.xlu0 %v618_v21, %s1207_s18  ;;  %v206_v25 = vsel %vm205_vm2, %v202_v22, %v204_v24  ;;  %v360_v30 = vunpack.c.h.bf16 %v358_v23  ;;  %187 = vst [vmem:[#allocation1] sm:$0xff] %v185_v26  ;;  %v442_v32 = vsel %vm205_vm2, %v440_v27, %v441_v28  ;;  %v217_v36 = vunpack.c.l.bf16 %v216_v31  ;;  %v645_v6 = vld [vmem:[%s1250_s17] sm:$0x15] }
  0x18   : > { %207 = vrot.lane.b32.xlu1 %v206_v25, %s1208_s19  ;;  %v363_v33 = vrot.slane %v359_v29, 3  ;;  %v218_v37 = vunpack.c.h.bf16 %v216_v31  ;;  %v254_v43 = vunpack.c.l.bf16 %v253_v42  ;;  %v255_v44 = vunpack.c.h.bf16 %v253_v42  ;;  %v378_v22 = vld [vmem:[%s1250_s17] sm:$0x15] }
  0x19   : > { %v364_v34 = vrot.slane %v360_v30, 6  ;;  %v365_v35 = vrot.slane %v360_v30, 1  ;;  %v291_v54 = vunpack.c.l.bf16 %v290_v52  ;;  %v572_v55 = vunpack.c.l.bf16 %v571_v53  ;;  %v395_v23 = vld [vmem:[%s1250_s17] sm:$0x15] }
  0x1a   : > { %v366_v38 = vsel %vm175_vm0, %v359_v29, %v363_v33  ;;  %v573_v56 = vunpack.c.h.bf16 %v571_v53  ;;  %v292_v57 = vunpack.c.h.bf16 %v290_v52  ;;  %v308_v2 = vunpack.c.l.bf16 %v307_v1 }
  0x1b   : > { %v367_v39 = vsel %vm203_vm1, %v364_v34, %v365_v35  ;;  %v576_v58 = vrot.slane %v572_v55, 3  ;;  %v309_v3 = vunpack.c.h.bf16 %v307_v1  ;;  %v325_v7 = vunpack.c.l.bf16 %v324_v5  ;;  %v415_v35 = vld [vmem:[%s1250_s17] sm:$0x15] }
  0x1c   : > { %v368_v41 = vsel %vm205_vm2, %v366_v38, %v367_v39  ;;  %v577_v59 = vrot.slane %v573_v56, 6  ;;  %v578_v60 = vrot.slane %v573_v56, 1  ;;  %v646_v8 = vunpack.c.l.bf16 %v645_v6  ;;  %v452_v39 = vld [vmem:[%s1250_s17] sm:$0x15] }
  0x1d   : > { %v579_v62 = vsel %vm175_vm0, %v572_v55, %v576_v58  ;;  %v647_v9 = vunpack.c.h.bf16 %v645_v6  ;;  %v326_v10 = vunpack.c.h.bf16 %v324_v5  ;;  %v342_v19 = vunpack.c.l.bf16 %v341_v18  ;;  %v503_v55 = vld [vmem:[%s1250_s17] sm:$0x2a] }
  0x1e   : > { %v1272_v40 = vld [vmem:[#allocation1 + $0x1] ss:$4 sm:$0xff]  ;;  %v580_v63 = vsel %vm203_vm1, %v577_v59, %v578_v60  ;;  %v650_v11 = vrot.slane %v646_v8, 3  ;;  %v343_v20 = vunpack.c.h.bf16 %v341_v18  ;;  %v379_v24 = vunpack.c.l.bf16 %v378_v22 }
  0x1f   : > { %443 = vrot.lane.b32.xlu0 %v442_v32, %s1209_s20  ;;  %221 = vst [vmem:[#allocation1] sm:$0xff] %v217_v36  ;;  %v581_v0 = vsel %vm205_vm2, %v579_v62, %v580_v63  ;;  %v651_v12 = vrot.slane %v647_v9, 6  ;;  %v652_v13 = vrot.slane %v647_v9, 1  ;;  %v396_v25 = vunpack.c.l.bf16 %v395_v23  ;;  %v520_v59 = vld [vmem:[%s1250_s17] sm:$0x2a] }
  0x20   : > { %222 = vst [vmem:[#allocation1 + $0x8] sm:$0xff] %v218_v37  ;;  %582 = vrot.lane.b32.xlu2 %v581_v0, %s1211_s22  ;;  %v653_v15 = vsel %vm175_vm0, %v646_v8, %v650_v11  ;;  %v397_v26 = vunpack.c.h.bf16 %v395_v23  ;;  %v380_v27 = vunpack.c.h.bf16 %v378_v22  ;;  %v416_v36 = vunpack.c.l.bf16 %v415_v35  ;;  %v537_v0 = vld [vmem:[%s1250_s17] sm:$0x2a]  ;;  %v591_v8 = vld [vmem:[%s1250_s17] sm:$0x15] }
  0x21   : > { %v654_v16 = vsel %vm203_vm1, %v651_v12, %v652_v13  ;;  %v400_v28 = vrot.slane %v396_v25, 3  ;;  %v417_v37 = vunpack.c.h.bf16 %v415_v35  ;;  %v454_v42 = vunpack.c.h.bf16 %v452_v39  ;;  %v628_v12 = vld [vmem:[%s1250_s17] sm:$0x15] }
  0x22   : > { %v655_v17 = vsel %vm205_vm2, %v653_v15, %v654_v16  ;;  %v401_v29 = vrot.slane %v397_v26, 6  ;;  %v402_v30 = vrot.slane %v397_v26, 1  ;;  %v504_v56 = vunpack.c.l.bf16 %v503_v55  ;;  %v665_v16 = vld [vmem:[%s1250_s17] sm:$0x15] }
  0x23   : > { %v403_v32 = vsel %vm175_vm0, %v396_v25, %v400_v28  ;;  %v521_v60 = vunpack.c.l.bf16 %v520_v59  ;;  %v522_v62 = vunpack.c.h.bf16 %v520_v59  ;;  %v538_v1 = vunpack.c.l.bf16 %v537_v0  ;;  %v716_v28 = vld [vmem:[%s1250_s17] sm:$0x2a] }
  0x24   : > { %v404_v33 = vsel %vm203_vm1, %v401_v29, %v402_v30  ;;  %v592_v9 = vunpack.c.l.bf16 %v591_v8  ;;  %v629_v13 = vunpack.c.l.bf16 %v628_v12  ;;  %v667_v18 = vunpack.c.h.bf16 %v665_v16 }
  0x25   : > { %v405_v34 = vsel %vm205_vm2, %v403_v32, %v404_v33  ;;  %v178_v29 = vlaneseq  ;;  %v717_v32 = vunpack.c.l.bf16 %v716_v28 }
  0x27   : > { %369 = vrot.lane.b32.xlu0 %v368_v41, %s1210_s21  ;;  %v1277_v45 = vld [vmem:[#allocation1 + $0x1] ss:$4 sm:$0xff]  ;;  %v453_v41 = vunpack.c.l.bf16 %v452_v39  ;;  %vm1338_vm4 = vcmp.lt.s32.totalorder %v178_v29, 256 }
  0x28   : > { %258 = vst [vmem:[#allocation1] sm:$0xff] %v254_v43  ;;  %656 = vrot.lane.b32.xlu2 %v655_v17, %s1212_s23  ;;  %v666_v17 = vunpack.c.l.bf16 %v665_v16 }
  0x29   : > { %259 = vst [vmem:[#allocation1 + $0x8] sm:$0xff] %v255_v44  ;;  %v469_v44 = vld [vmem:[%s1250_s17] sm:$0x2a] }
  0x2a   : > { %v470_v46 = vunpack.c.l.bf16 %v469_v44  ;;  %192 = vst.msk [vmem:[#allocation2 + $0x1] ss:$8 sm:$0x3] %vm1338_vm4, %v1272_v40 }
  0x30   : > { %v1280_v48 = vld [vmem:[#allocation1 + $0x1] ss:$4 sm:$0xff]  ;;  %406 = vrot.lane.b32.xlu2 %v405_v34, %s1214_s25  ;;  %v718_v34 = vunpack.c.h.bf16 %v716_v28 }
  0x31   : > { %273 = vst [vmem:[#allocation1] sm:$0xff] %v271_v47  ;;  %v471_v47 = vunpack.c.h.bf16 %v469_v44 }
  0x38   : > { %v1283_v51 = vld [vmem:[#allocation1 + $0x2] ss:$4 sm:$0xff] }
  0x39   : > { %283 = vst [vmem:[#allocation1] sm:$0xff] %v281_v50  ;;  %v486_v50 = vld [vmem:[%s1250_s17] sm:$0x2a] }
  0x3a   : > { %v487_v52 = vunpack.c.l.bf16 %v486_v50  ;;  %v488_v53 = vunpack.c.h.bf16 %v486_v50  ;;  %278 = vst.msk [vmem:[#allocation2 + $0x6] ss:$8 sm:$0x3] %vm1338_vm4, %v1283_v51 }
  0x40   : > { %v1287_v61 = vld [vmem:[#allocation1 + $0x3] ss:$4 sm:$0xff] }
  0x41   : > { %295 = vst [vmem:[#allocation1] sm:$0xff] %v291_v54 }
  0x42   : > { %296 = vst [vmem:[#allocation1 + $0x8] sm:$0xff] %v292_v57  ;;  %v505_v57 = vunpack.c.h.bf16 %v503_v55  ;;  %v750_v55 = vld [vmem:[%s1250_s17] sm:$0x2a] }
  0x43   : > { %288 = vst.msk [vmem:[#allocation2 + $0x7] ss:$8 sm:$0x3] %vm1338_vm4, %v1287_v61 }
  0x49   : > { %v298_v4 = vld [vmem:[#allocation1 + $0x2] ss:$4 sm:$0xff] }
  0x4a   : > { %312 = vst [vmem:[#allocation1] sm:$0xff] %v308_v2  ;;  %299 = vrot.lane.b32.xlu2 %v298_v4, %s1208_s19  ;;  %v539_v2 = vunpack.c.h.bf16 %v537_v0  ;;  %v554_v4 = vld [vmem:[%s1250_s17] sm:$0x2a] }
  0x4b   : > { %313 = vst [vmem:[#allocation1 + $0x8] sm:$0xff] %v309_v3  ;;  %v555_v5 = vunpack.c.l.bf16 %v554_v4  ;;  %v556_v6 = vunpack.c.h.bf16 %v554_v4 }
  0x52   : > { %v315_v14 = vld [vmem:[#allocation1 + $0x3] ss:$4 sm:$0xff] }
  0x53   : > { %329 = vst [vmem:[#allocation1] sm:$0xff] %v325_v7  ;;  %316 = vrot.lane.b32.xlu0 %v315_v14, %s1208_s19  ;;  %v630_v14 = vunpack.c.h.bf16 %v628_v12 }
  0x54   : > { %330 = vst [vmem:[#allocation1 + $0x8] sm:$0xff] %v326_v10  ;;  %v593_v10 = vunpack.c.h.bf16 %v591_v8 }
  0x5b   : > { %v332_v21 = vld [vmem:[#allocation1 + $0x2] ss:$4 sm:$0xff] }
  0x5c   : > { %333 = vrot.lane.b32.xlu1 %v332_v21, %s1213_s24  ;;  %346 = vst [vmem:[#allocation1] sm:$0xff] %v342_v19 }
  0x5d   : > { %347 = vst [vmem:[#allocation1 + $0x8] sm:$0xff] %v343_v20  ;;  %v682_v20 = vld [vmem:[%s1250_s17] sm:$0x2a] }
  0x5e   : > { %v683_v21 = vunpack.c.l.bf16 %v682_v20  ;;  %v684_v22 = vunpack.c.h.bf16 %v682_v20 }
  0x64   : > { %v349_v31 = vld [vmem:[#allocation1 + $0x3] ss:$4 sm:$0xff] }
  0x65   : > { %383 = vst [vmem:[#allocation1] sm:$0xff] %v379_v24  ;;  %350 = vrot.lane.b32.xlu2 %v349_v31, %s1213_s24  ;;  %v699_v24 = vld [vmem:[%s1250_s17] sm:$0x2a] }
  0x66   : > { %384 = vst [vmem:[#allocation1 + $0x8] sm:$0xff] %v380_v27  ;;  %v700_v25 = vunpack.c.l.bf16 %v699_v24  ;;  %v701_v26 = vunpack.c.h.bf16 %v699_v24 }
  0x6d   : > { %v386_v38 = vld [vmem:[#allocation1 + $0x1] ss:$4 sm:$0xff] }
  0x6e   : > { %387 = vrot.lane.b32.xlu1 %v386_v38, %s1210_s21  ;;  %420 = vst [vmem:[#allocation1] sm:$0xff] %v416_v36 }
  0x6f   : > { %421 = vst [vmem:[#allocation1 + $0x8] sm:$0xff] %v417_v37 }
  0x76   : > { %v423_v43 = vld [vmem:[#allocation1 + $0x1] ss:$4 sm:$0xff] }
  0x77   : > { %424 = vrot.lane.b32.xlu0 %v423_v43, %s1214_s25  ;;  %457 = vst [vmem:[#allocation1] sm:$0xff] %v453_v41  ;;  %v733_v41 = vld [vmem:[%s1250_s17] sm:$0x2a] }
  0x78   : > { %458 = vst [vmem:[#allocation1 + $0x8] sm:$0xff] %v454_v42  ;;  %v734_v43 = vunpack.c.l.bf16 %v733_v41 }
  0x7a   : > { %v583_v31 = vpop.permute.xlu2 %582 }
  0x7b   : > { %v584_v36 = vrot.slane %v583_v31, 1 }
  0x7d   : > { %v586_v39 = vsel %vm585_vm5, %v583_v31, %v584_v36 }
  0x7e   : > { %589 = vst.msk [vmem:[#allocation2 + $0x30] ss:$8 sm:$0x3] %vm1338_vm4, %v586_v39 }
  0x7f   : > { %v460_v49 = vld [vmem:[#allocation1 + $0x1] ss:$4 sm:$0xff] }
  0x80   : > { %461 = vrot.lane.b32.xlu1 %v460_v49, %s1209_s20  ;;  %474 = vst [vmem:[#allocation1] sm:$0xff] %v470_v46  ;;  %v735_v49 = vunpack.c.h.bf16 %v733_v41 }
  0x81   : > { %475 = vst [vmem:[#allocation1 + $0x8] sm:$0xff] %v471_v47 }
  0x82   : > { %v657_v40 = vpop.permute.xlu2 %656 }
  0x83   : > { %v658_v44 = vrot.slane %v657_v40, 1 }
  0x85   : > { %v660_v50 = vsel %vm659_vm6, %v657_v40, %v658_v44 }
  0x86   : > { %663 = vst.msk [vmem:[#allocation2 + $0x34] ss:$8 sm:$0x3] %vm1338_vm4, %v660_v50 }
  0x88   : > { %v477_v54 = vld [vmem:[#allocation1 + $0x2] ss:$4 sm:$0xff] }
  0x89   : > { %491 = vst [vmem:[#allocation1] sm:$0xff] %v487_v52  ;;  %478 = vrot.lane.b32.xlu2 %v477_v54, %s1210_s21  ;;  %v620_v30 = vpop.permute.xlu0 %619 }
  0x8a   : > { %492 = vst [vmem:[#allocation1 + $0x8] sm:$0xff] %v488_v53  ;;  %v621_v33 = vrot.slane %v620_v30, 1  ;;  %v208_v47 = vpop.permute.xlu1 %207  ;;  %v233_v53 = vld [vmem:[%s1250_s17] sm:$0x15] }
  0x8b   : > { %v209_v51 = vrot.slane %v208_v47, 1 }
  0x8c   : > { %v623_v37 = vsel %vm622_vm3, %v620_v30, %v621_v33 }
  0x8d   : > { %626 = vst.msk [vmem:[#allocation2 + $0x32] ss:$8 sm:$0x3] %vm1338_vm4, %v623_v37  ;;  %v211_v54 = vsel %vm210_vm8, %v208_v47, %v209_v51 }
  0x8e   : > { %214 = vst.msk [vmem:[#allocation2 + $0x2] ss:$8 sm:$0x3] %vm1338_vm4, %v211_v54 }
  0x91   : > { %v494_v58 = vld [vmem:[#allocation1 + $0x3] ss:$4 sm:$0xff]  ;;  %v444_v42 = vpop.permute.xlu0 %443 }
  0x92   : > { %495 = vrot.lane.b32.xlu0 %v494_v58, %s1210_s21  ;;  %508 = vst [vmem:[#allocation1] sm:$0xff] %v504_v56  ;;  %v445_v46 = vrot.slane %v444_v42, 1  ;;  %v234_v56 = vunpack.c.l.bf16 %v233_v53  ;;  %v407_v58 = vpop.permute.xlu2 %406 }
  0x93   : > { %509 = vst [vmem:[#allocation1 + $0x8] sm:$0xff] %v505_v57  ;;  %v235_v57 = vunpack.c.h.bf16 %v233_v53  ;;  %v408_v59 = vrot.slane %v407_v58, 1 }
  0x94   : > { %v447_v61 = vsel %vm446_vm7, %v444_v42, %v445_v46  ;;  %v238_v4 = vrot.slane %v234_v56, 3 }
  0x95   : > { %450 = vst.msk [vmem:[#allocation2 + $0x20] ss:$8 sm:$0x3] %vm1338_vm4, %v447_v61 }
  0x9a   : > { %v511_v63 = vld [vmem:[#allocation1 + $0x2] ss:$4 sm:$0xff] }
  0x9b   : > { %512 = vrot.lane.b32.xlu1 %v511_v63, %s1214_s25  ;;  %525 = vst [vmem:[#allocation1] sm:$0xff] %v521_v60  ;;  %v751_v63 = vunpack.c.l.bf16 %v750_v55 }
  0x9c   : > { %526 = vst [vmem:[#allocation1 + $0x8] sm:$0xff] %v522_v62 }
  0xa3   : > { %v528_v3 = vld [vmem:[#allocation1 + $0x3] ss:$4 sm:$0xff] }
  0xa4   : > { %542 = vst [vmem:[#allocation1] sm:$0xff] %v538_v1  ;;  %529 = vrot.lane.b32.xlu2 %v528_v3, %s1214_s25  ;;  %v752_v1 = vunpack.c.h.bf16 %v750_v55  ;;  %v300_v12 = vpop.permute.xlu2 %299 }
  0xa5   : > { %543 = vst [vmem:[#allocation1 + $0x8] sm:$0xff] %v539_v2  ;;  %v410_v2 = vsel %vm409_vm9, %v407_v58, %v408_v59 }
  0xa6   : > { %413 = vst.msk [vmem:[#allocation2 + $0x16] ss:$8 sm:$0x3] %vm1338_vm4, %v410_v2 }
  0xac   : > { %v545_v7 = vld [vmem:[#allocation1 + $0x2] ss:$4 sm:$0xff] }
  0xad   : > { %546 = vrot.lane.b32.xlu0 %v545_v7, %s1209_s20  ;;  %559 = vst [vmem:[#allocation1] sm:$0xff] %v555_v5  ;;  %v239_v5 = vrot.slane %v235_v57, 6 }
  0xae   : > { %560 = vst [vmem:[#allocation1 + $0x8] sm:$0xff] %v556_v6  ;;  %v240_v6 = vrot.slane %v235_v57, 1 }
  0xb5   : > { %v562_v11 = vld [vmem:[#allocation1 + $0x3] ss:$4 sm:$0xff] }
  0xb6   : > { %563 = vrot.lane.b32.xlu1 %v562_v11, %s1209_s20  ;;  %596 = vst [vmem:[#allocation1] sm:$0xff] %v592_v9  ;;  %v767_v9 = vld [vmem:[%s1250_s17] sm:$0x2a]  ;;  %v242_v11 = vsel %vm203_vm1, %v239_v5, %v240_v6 }
  0xb7   : > { %597 = vst [vmem:[#allocation1 + $0x8] sm:$0xff] %v593_v10  ;;  %v241_v10 = vsel %vm175_vm0, %v234_v56, %v238_v4 }
  0xbe   : > { %v599_v15 = vld [vmem:[#allocation1 + $0x1] ss:$4 sm:$0xff] }
  0xbf   : > { %633 = vst [vmem:[#allocation1] sm:$0xff] %v629_v13  ;;  %600 = vrot.lane.b32.xlu2 %v599_v15, %s1211_s22 }
  0xc0   : > { %634 = vst [vmem:[#allocation1 + $0x8] sm:$0xff] %v630_v14  ;;  %v301_v14 = vrot.slane %v300_v12, 1 }
  0xc2   : > { %v302_v20 = vsel %vm210_vm8, %v300_v12, %v301_v14 }
  0xc3   : > { %305 = vst.msk [vmem:[#allocation2 + $0x10] ss:$8 sm:$0x3] %vm1338_vm4, %v302_v20 }
  0xc7   : > { %v636_v19 = vld [vmem:[#allocation1 + $0x1] ss:$4 sm:$0xff] }
  0xc8   : > { %637 = vrot.lane.b32.xlu1 %v636_v19, %s1207_s18  ;;  %670 = vst [vmem:[#allocation1] sm:$0xff] %v666_v17  ;;  %v243_v19 = vsel %vm205_vm2, %v241_v10, %v242_v11  ;;  %v171_v10 = vld [vmem:[%s1250_s17] sm:$0x5] }
  0xc9   : > { %671 = vst [vmem:[#allocation1 + $0x8] sm:$0xff] %v667_v18  ;;  %v768_v18 = vunpack.c.l.bf16 %v767_v9  ;;  %v172_v12 = vunpack.c.l.bf16 %v171_v10 }
  0xce   : > { %v334_v62 = vpop.permute.xlu1 %333 }
  0xcf   : > { %v335_v0 = vrot.slane %v334_v62, 1 }
  0xd0   : > { %v673_v23 = vld [vmem:[#allocation1 + $0x1] ss:$4 sm:$0xff] }
  0xd1   : > { %674 = vrot.lane.b32.xlu0 %v673_v23, %s1212_s23  ;;  %687 = vst [vmem:[#allocation1] sm:$0xff] %v683_v21  ;;  %v336_v8 = vsel %vm247_vm11, %v334_v62, %v335_v0 }
  0xd2   : > { %688 = vst [vmem:[#allocation1 + $0x8] sm:$0xff] %v684_v22  ;;  %v769_v22 = vunpack.c.h.bf16 %v767_v9 }
  0xd3   : > { %339 = vst.msk [vmem:[#allocation2 + $0x12] ss:$8 sm:$0x3] %vm1338_vm4, %v336_v8 }
  0xd9   : > { %v690_v27 = vld [vmem:[#allocation1 + $0x2] ss:$4 sm:$0xff] }
  0xda   : > { %691 = vrot.lane.b32.xlu1 %v690_v27, %s1211_s22  ;;  %704 = vst [vmem:[#allocation1] sm:$0xff] %v700_v25  ;;  %v351_v25 = vpop.permute.xlu2 %350 }
  0xdb   : > { %705 = vst [vmem:[#allocation1 + $0x8] sm:$0xff] %v701_v26  ;;  %v352_v27 = vrot.slane %v351_v25, 1 }
  0xdd   : > { %v353_v31 = vsel %vm247_vm11, %v351_v25, %v352_v27 }
  0xde   : > { %356 = vst.msk [vmem:[#allocation2 + $0x13] ss:$8 sm:$0x3] %vm1338_vm4, %v353_v31 }
  0xe0   : > { %v388_v16 = vpop.permute.xlu1 %387 }
  0xe1   : > { %v389_v17 = vrot.slane %v388_v16, 1 }
  0xe2   : > { %v707_v38 = vld [vmem:[#allocation1 + $0x3] ss:$4 sm:$0xff] }
  0xe3   : > { %708 = vrot.lane.b32.xlu2 %v707_v38, %s1211_s22  ;;  %721 = vst [vmem:[#allocation1] sm:$0xff] %v717_v32  ;;  %v390_v23 = vsel %vm372_vm10, %v388_v16, %v389_v17  ;;  %v479_v36 = vpop.permute.xlu2 %478 }
  0xe4   : > { %722 = vst [vmem:[#allocation1 + $0x8] sm:$0xff] %v718_v34  ;;  %v480_v38 = vrot.slane %v479_v36, 1 }
  0xe5   : > { %393 = vst.msk [vmem:[#allocation2 + $0x15] ss:$8 sm:$0x3] %vm1338_vm4, %v390_v23 }
  0xe6   : > { %v481_v41 = vsel %vm372_vm10, %v479_v36, %v480_v38  ;;  %v784_v38 = vld [vmem:[%s1586_s1] sm:$0xff] }
  0xe7   : > { %484 = vst.msk [vmem:[#allocation2 + $0x22] ss:$8 sm:$0x3] %vm1338_vm4, %v481_v41 }
  0xeb   : > { %v724_v52 = vld [vmem:[#allocation1 + $0x2] ss:$4 sm:$0xff]  ;;  %225 = vrot.lane.b32.xlu2 %v1277_v45, %s1208_s19  ;;  %v370_v45 = vpop.permute.xlu0 %369  ;;  %s1572_s19 = scalar_lea.vmem %s1588_s3, %s1167_s16 }
  0xec   : > { %725 = vrot.lane.b32.xlu0 %v724_v52, %s1207_s18  ;;  %738 = vst [vmem:[#allocation1] sm:$0xff] %v734_v43  ;;  %v371_v60 = vrot.slane %v370_v45, 1 }
  0xed   : > { %739 = vst [vmem:[#allocation1 + $0x8] sm:$0xff] %v735_v49 }
  0xee   : > { %v373_v3 = vsel %vm372_vm10, %v370_v45, %v371_v60 }
  0xef   : > { %376 = vst.msk [vmem:[#allocation2 + $0x14] ss:$8 sm:$0x3] %vm1338_vm4, %v373_v3 }
  0xf2   : > { %v462_v29 = vpop.permute.xlu1 %461 }
  0xf3   : > { %v317_v13 = vpop.permute.xlu0 %316  ;;  %v463_v30 = vrot.slane %v462_v29, 1 }
  0xf4   : > { %v741_v7 = vld [vmem:[#allocation1 + $0x3] ss:$4 sm:$0xff]  ;;  %v318_v15 = vrot.slane %v317_v13, 1 }
  0xf5   : > { %755 = vst [vmem:[#allocation1] sm:$0xff] %v751_v63  ;;  %742 = vrot.lane.b32.xlu0 %v741_v7, %s1207_s18  ;;  %v464_v33 = vsel %vm446_vm7, %v462_v29, %v463_v30 }
  0xf6   : > { %756 = vst [vmem:[#allocation1 + $0x8] sm:$0xff] %v752_v1  ;;  %v319_v21 = vsel %vm210_vm8, %v317_v13, %v318_v15  ;;  %v174_v13 = vrot.slane %v172_v12, 3 }
  0xf7   : > { %322 = vst.msk [vmem:[#allocation2 + $0x11] ss:$8 sm:$0x3] %vm1338_vm4, %v319_v21 }
  0xf8   : > { %467 = vst.msk [vmem:[#allocation2 + $0x21] ss:$8 sm:$0x3] %vm1338_vm4, %v464_v33  ;;  %v176_v14 = vsel %vm175_vm0, %v172_v12, %v174_v13 }
  0xf9   : > { %182 = vst.msk [vmem:[#allocation2] ss:$8 sm:$0x3] %vm1338_vm4, %v176_v14 }
  0xfb   : > { %v425_v26 = vpop.permute.xlu0 %424 }
  0xfc   : > { %v426_v28 = vrot.slane %v425_v26, 1 }
  0xfd   : > { %v758_v24 = vld [vmem:[#allocation1 + $0x2] ss:$4 sm:$0xff]  ;;  %244 = vrot.lane.b32.xlu0 %v243_v19, %s1213_s24 }
  0xfe   : > { %759 = vrot.lane.b32.xlu1 %v758_v24, %s1212_s23  ;;  %772 = vst [vmem:[#allocation1] sm:$0xff] %v768_v18  ;;  %v427_v32 = vsel %vm409_vm9, %v425_v26, %v426_v28  ;;  %v530_v44 = vpop.permute.xlu2 %529 }
  0xff   : > { %773 = vst [vmem:[#allocation1 + $0x8] sm:$0xff] %v769_v22  ;;  %v531_v47 = vrot.slane %v530_v44, 1 }
 0x100   : > { %430 = vst.msk [vmem:[#allocation2 + $0x17] ss:$8 sm:$0x3] %vm1338_vm4, %v427_v32 }
 0x101   : > { %v532_v49 = vsel %vm409_vm9, %v530_v44, %v531_v47  ;;  %v786_v44 = vld [vmem:[%s1586_s1 + $0x10] sm:$0xff]  ;;  %v787_v47 = vld [vmem:[%s1586_s1 + $0x18] sm:$0xff] }
 0x102   : > { %535 = vst.msk [vmem:[#allocation2 + $0x25] ss:$8 sm:$0x3] %vm1338_vm4, %v532_v49  ;;  %v795_v49 = vld [vmem:[%s1586_s1 + $0x58] sm:$0xff] }
 0x104   : > { %v496_v37 = vpop.permute.xlu0 %495 }
 0x105   : > { %v497_v39 = vrot.slane %v496_v37, 1 }
 0x106   : > { %v775_v34 = vld [vmem:[#allocation1 + $0x3] ss:$4 sm:$0xff] }
 0x107   : > { %776 = vrot.lane.b32.xlu1 %v775_v34, %s1212_s23  ;;  %v498_v40 = vsel %vm372_vm10, %v496_v37, %v497_v39  ;;  %v802_v37 = vld [vmem:[#allocation2 + $0x10] sm:$0xff]  ;;  %v803_v35 = vld [vmem:[#allocation2 + $0x18] sm:$0xff] }
 0x108   : > { %501 = vst.msk [vmem:[#allocation2 + $0x23] ss:$8 sm:$0x3] %vm1338_vm4, %v498_v40  ;;  %v792_v40 = vld [vmem:[%s1586_s1 + $0x40] sm:$0xff] }
 0x10d   : > { %v513_v42 = vpop.permute.xlu1 %512 }
 0x10e   : > { %v514_v43 = vrot.slane %v513_v42, 1 }
 0x10f   : > { %262 = vrot.lane.b32.xlu1 %v1280_v48, %s1213_s24 }
 0x110   : > { %v515_v46 = vsel %vm409_vm9, %v513_v42, %v514_v43  ;;  %v785_v42 = vld [vmem:[%s1586_s1 + $0x8] sm:$0xff] }
 0x111   : > { %518 = vst.msk [vmem:[#allocation2 + $0x24] ss:$8 sm:$0x3] %vm1338_vm4, %v515_v46  ;;  %v793_v43 = vld [vmem:[%s1586_s1 + $0x48] sm:$0xff]  ;;  %v794_v46 = vld [vmem:[%s1586_s1 + $0x50] sm:$0xff] }
 0x119   : > { %v601_v51 = vpop.permute.xlu2 %600 }
 0x11a   : > { %v602_v50 = vrot.slane %v601_v51, 1 }
 0x11c   : > { %v603_v52 = vsel %vm585_vm5, %v601_v51, %v602_v50  ;;  %v1021_v51 = vld [vmem:[%s1587_s2 + $0x8] sm:$0xff]  ;;  %v1022_v50 = vld [vmem:[%s1587_s2 + $0x10] sm:$0xff] }
 0x11d   : > { %606 = vst.msk [vmem:[#allocation2 + $0x31] ss:$8 sm:$0x3] %vm1338_vm4, %v603_v52  ;;  %v1215_v52 = vmov 0  }
 0x11e   : > { %1197 = vset.pattern.permute.xlu0 %v1215_v52  ;;  %1198 = vset.pattern.permute.xlu1 %v1215_v52 }
 0x11f   : > { %v547_v48 = vpop.permute.xlu0 %546  ;;  %1031 = vperm.xlu0 %1197, %v1021_v51   ;;  %1036 = vperm.xlu1 %1198, %v1022_v50  }
 0x120   : > { %v548_v61 = vrot.slane %v547_v48, 1  ;;  %1196 = vset.pattern.permute.xlu2 %v1215_v52 }
 0x122   : > { %v549_v53 = vsel %vm446_vm7, %v547_v48, %v548_v61  ;;  %v1020_v48 = vld [vmem:[%s1587_s2] sm:$0xff] }
 0x123   : > { %552 = vst.msk [vmem:[#allocation2 + $0x26] ss:$8 sm:$0x3] %vm1338_vm4, %v549_v53  ;;  %v788_v61 = vld [vmem:[%s1586_s1 + $0x20] sm:$0xff]  ;;  %1026 = vperm.xlu2 %1196, %v1020_v48  }
 0x124   : > { %v796_v53 = vld [vmem:[%s1586_s1 + $0x60] sm:$0xff] }
 0x128   : > { %v564_v54 = vpop.permute.xlu1 %563 }
 0x129   : > { %v565_v55 = vrot.slane %v564_v54, 1 }
 0x12b   : > { %v566_v56 = vsel %vm446_vm7, %v564_v54, %v565_v55  ;;  %v1023_v54 = vld [vmem:[%s1587_s2 + $0x18] sm:$0xff]  ;;  %v789_v55 = vld [vmem:[%s1586_s1 + $0x28] sm:$0xff] }
 0x12c   : > { %569 = vst.msk [vmem:[#allocation2 + $0x27] ss:$8 sm:$0x3] %vm1338_vm4, %v566_v56  ;;  %v797_v56 = vld [vmem:[%s1586_s1 + $0x68] sm:$0xff]  ;;  %1041 = vperm.xlu2 %1196, %v1023_v54  }
 0x133   : > { %v804_v34 = vld [vmem:[#allocation2 + $0x20] sm:$0xff]  ;;  %v805_v36 = vld [vmem:[#allocation2 + $0x28] sm:$0xff] }
 0x13a   : > { %v638_v57 = vpop.permute.xlu1 %637 }
 0x13b   : > { %v639_v58 = vrot.slane %v638_v57, 1 }
 0x13d   : > { %v640_v45 = vsel %vm622_vm3, %v638_v57, %v639_v58  ;;  %v709_v59 = vpop.permute.xlu2 %708  ;;  %v790_v57 = vld [vmem:[%s1586_s1 + $0x30] sm:$0xff] }
 0x13e   : > { %643 = vst.msk [vmem:[#allocation2 + $0x33] ss:$8 sm:$0x3] %vm1338_vm4, %v640_v45  ;;  %v710_v60 = vrot.slane %v709_v59, 1  ;;  %v798_v58 = vld [vmem:[%s1586_s1 + $0x70] sm:$0xff]  ;;  %v791_v45 = vld [vmem:[%s1586_s1 + $0x38] sm:$0xff] }
 0x140   : > { %v711_v62 = vsel %vm585_vm5, %v709_v59, %v710_v60  ;;  %v799_v59 = vld [vmem:[%s1586_s1 + $0x78] sm:$0xff] }
 0x141   : > { %714 = vst.msk [vmem:[#allocation2 + $0x37] ss:$8 sm:$0x3] %vm1338_vm4, %v711_v62 }
 0x143   : > { %v675_v63 = vpop.permute.xlu0 %674 }
 0x144   : > { %v676_v0 = vrot.slane %v675_v63, 1 }
 0x145   : > { %v226_v5 = vpop.permute.xlu2 %225 }
 0x146   : > { %v677_v1 = vsel %vm659_vm6, %v675_v63, %v676_v0  ;;  %v227_v7 = vrot.slane %v226_v5, 1 }
 0x147   : > { %680 = vst.msk [vmem:[#allocation2 + $0x35] ss:$8 sm:$0x3] %vm1338_vm4, %v677_v1 }
 0x148   : > { %v228_v9 = vsel %vm210_vm8, %v226_v5, %v227_v7 }
 0x149   : > { %231 = vst.msk [vmem:[#allocation2 + $0x3] ss:$8 sm:$0x3] %vm1338_vm4, %v228_v9 }
 0x14c   : > { %v692_v2 = vpop.permute.xlu1 %691 }
 0x14d   : > { %v693_v3 = vrot.slane %v692_v2, 1 }
 0x14f   : > { %v694_v4 = vsel %vm585_vm5, %v692_v2, %v693_v3 }
 0x150   : > { %697 = vst.msk [vmem:[#allocation2 + $0x36] ss:$8 sm:$0x3] %vm1338_vm4, %v694_v4 }
 0x157   : > { %v806_v32 = vld [vmem:[#allocation2 + $0x30] sm:$0xff]  ;;  %v807_v33 = vld [vmem:[#allocation2 + $0x38] sm:$0xff] }
 0x15e   : > { %v726_v6 = vpop.permute.xlu0 %725 }
 0x15f   : > { %v727_v8 = vrot.slane %v726_v6, 1 }
 0x161   : > { %v728_v11 = vsel %vm622_vm3, %v726_v6, %v727_v8 }
 0x162   : > { %731 = vst.msk [vmem:[#allocation2 + $0x40] ss:$8 sm:$0x3] %vm1338_vm4, %v728_v11 }
 0x167   : > { %v743_v15 = vpop.permute.xlu0 %742 }
 0x168   : > { %v744_v16 = vrot.slane %v743_v15, 1 }
 0x16a   : > { %v745_v17 = vsel %vm622_vm3, %v743_v15, %v744_v16 }
 0x16b   : > { %748 = vst.msk [vmem:[#allocation2 + $0x41] ss:$8 sm:$0x3] %vm1338_vm4, %v745_v17 }
 0x16f   : > { %v245_v18 = vpop.permute.xlu0 %244 }
 0x170   : > { %v760_v19 = vpop.permute.xlu1 %759  ;;  %v246_v20 = vrot.slane %v245_v18, 1 }
 0x171   : > { %v761_v21 = vrot.slane %v760_v19, 1 }
 0x172   : > { %v248_v22 = vsel %vm247_vm11, %v245_v18, %v246_v20 }
 0x173   : > { %v762_v23 = vsel %vm659_vm6, %v760_v19, %v761_v21  ;;  %251 = vst.msk [vmem:[#allocation2 + $0x4] ss:$8 sm:$0x3] %vm1338_vm4, %v248_v22 }
 0x174   : > { %765 = vst.msk [vmem:[#allocation2 + $0x42] ss:$8 sm:$0x3] %vm1338_vm4, %v762_v23 }
 0x179   : > { %v777_v24 = vpop.permute.xlu1 %776 }
 0x17a   : > { %v778_v25 = vrot.slane %v777_v24, 1 }
 0x17c   : > { %v779_v26 = vsel %vm659_vm6, %v777_v24, %v778_v25 }
 0x17d   : > { %782 = vst.msk [vmem:[#allocation2 + $0x43] ss:$8 sm:$0x3] %vm1338_vm4, %v779_v26  ;;  %v1027_v22 = vpop.permute.xlu2 %1026 }
 0x181   : > { %v263_v27 = vpop.permute.xlu1 %262 }
 0x182   : > { %v264_v28 = vrot.slane %v263_v27, 1 }
 0x184   : > { %v265_v29 = vsel %vm247_vm11, %v263_v27, %v264_v28  ;;  %v808_v30 = vld [vmem:[#allocation2 + $0x40] sm:$0xf]  ;;  %v809_v31 = vld [vmem:[#allocation2 + $0x48] sm:$0xf] }
 0x185   : > { %268 = vst.msk [vmem:[#allocation2 + $0x5] ss:$8 sm:$0x3] %vm1338_vm4, %v265_v29  ;;  %1131 = vmatpush.msk.msra.mxu0 %vm859_vm12, %v808_v30  ;;  %1168 = vmatpush.msk.msra.mxu2 %vm859_vm12, %v808_v30 }
 0x186   : > { %1148 = vmatpush.msk.msra.mxu1 %vm859_vm12, %v809_v31  ;;  %1173 = vmatpush.msk.msra.mxu3 %vm859_vm12, %v809_v31 }
 0x187   : > { %878 = vmatpush.msra.mxu0 %v806_v32  ;;  %1169 = vmatpush.msra.mxu2 %v806_v32 }
 0x188   : > { %943 = vmatpush.msra.mxu1 %v807_v33  ;;  %1174 = vmatpush.msra.mxu3 %v807_v33 }
 0x189   : > { %879 = vmatpush.msra.mxu0 %v804_v34  ;;  %1170 = vmatpush.msra.mxu2 %v804_v34 }
 0x18a   : > { %944 = vmatpush.msra.mxu1 %v805_v36  ;;  %1175 = vmatpush.msra.mxu3 %v805_v36 }
 0x18b   : > { %880 = vmatpush.msra.mxu0 %v802_v37  ;;  %1171 = vmatpush.msra.mxu2 %v802_v37 }
 0x18c   : > { %945 = vmatpush.msra.mxu1 %v803_v35  ;;  %1176 = vmatpush.msra.mxu3 %v803_v35  ;;  %v800_v39 = vld [vmem:[#allocation2] sm:$0xff]  ;;  %v801_v41 = vld [vmem:[#allocation2 + $0x8] sm:$0xff] }
 0x18d   : > { %881 = vmatpush.msra.mxu0 %v800_v39  ;;  %1172 = vmatpush.msra.mxu2 %v800_v39 }
 0x18e   : > { %946 = vmatpush.msra.mxu1 %v801_v41  ;;  %1177 = vmatpush.msra.mxu3 %v801_v41 }
 0x18f   : > { %1132 = vmatmul.msk.f32.vlgmr.msra.gmra.mxu0 %vm810_vm13, %v784_v38  ;;  %1140 = vmatmul.msk.f32.vlgmr.msra.gmra.mxu2 %vm810_vm13, %v792_v40 }
 0x190   : > { %1149 = vmatmul.msk.f32.vlgmr.msra.gmra.mxu1 %vm810_vm13, %v784_v38  ;;  %1157 = vmatmul.msk.f32.vlgmr.msra.gmra.mxu3 %vm810_vm13, %v792_v40 }
 0x191   : > { %v1032_v35 = vpop.permute.xlu0 %1031 }
 0x197   : > { %1133 = vmatmul.msk.f32.gmra.mxu0 %vm810_vm13, %v785_v42  ;;  %1141 = vmatmul.msk.f32.gmra.mxu2 %vm810_vm13, %v793_v43 }
 0x198   : > { %1150 = vmatmul.msk.f32.gmra.mxu1 %vm810_vm13, %v785_v42  ;;  %1158 = vmatmul.msk.f32.gmra.mxu3 %vm810_vm13, %v793_v43 }
 0x19f   : > { %1134 = vmatmul.msk.f32.gmra.mxu0 %vm810_vm13, %v786_v44  ;;  %1142 = vmatmul.msk.f32.gmra.mxu2 %vm810_vm13, %v794_v46 }
 0x1a0   : > { %1151 = vmatmul.msk.f32.gmra.mxu1 %vm810_vm13, %v786_v44  ;;  %1159 = vmatmul.msk.f32.gmra.mxu3 %vm810_vm13, %v794_v46 }
 0x1a7   : > { %1135 = vmatmul.msk.f32.gmra.mxu0 %vm810_vm13, %v787_v47  ;;  %1143 = vmatmul.msk.f32.gmra.mxu2 %vm810_vm13, %v795_v49 }
 0x1a8   : > { %1152 = vmatmul.msk.f32.gmra.mxu1 %vm810_vm13, %v787_v47  ;;  %1160 = vmatmul.msk.f32.gmra.mxu3 %vm810_vm13, %v795_v49 }
 0x1af   : > { %1136 = vmatmul.msk.f32.gmra.mxu0 %vm810_vm13, %v788_v61  ;;  %1144 = vmatmul.msk.f32.gmra.mxu2 %vm810_vm13, %v796_v53 }
 0x1b0   : > { %1153 = vmatmul.msk.f32.gmra.mxu1 %vm810_vm13, %v788_v61  ;;  %1161 = vmatmul.msk.f32.gmra.mxu3 %vm810_vm13, %v796_v53  ;;  %v1037_v53 = vpop.permute.xlu1 %1036 }
 0x1b7   : > { %1137 = vmatmul.msk.f32.gmra.mxu0 %vm810_vm13, %v789_v55  ;;  %1145 = vmatmul.msk.f32.gmra.mxu2 %vm810_vm13, %v797_v56 }
 0x1b8   : > { %1154 = vmatmul.msk.f32.gmra.mxu1 %vm810_vm13, %v789_v55  ;;  %1162 = vmatmul.msk.f32.gmra.mxu3 %vm810_vm13, %v797_v56 }
 0x1bf   : > { %1138 = vmatmul.msk.f32.gmra.mxu0 %vm810_vm13, %v790_v57  ;;  %1146 = vmatmul.msk.f32.gmra.mxu2 %vm810_vm13, %v798_v58 }
 0x1c0   : > { %1155 = vmatmul.msk.f32.gmra.mxu1 %vm810_vm13, %v790_v57  ;;  %1163 = vmatmul.msk.f32.gmra.mxu3 %vm810_vm13, %v798_v58 }
 0x1c7   : > { %1139 = vmatmul.msk.f32.gmra.mxu0 %vm810_vm13, %v791_v45  ;;  %1147 = vmatmul.msk.f32.gmra.mxu2 %vm810_vm13, %v799_v59 }
 0x1c8   : > { %1156 = vmatmul.msk.f32.gmra.mxu1 %vm810_vm13, %v791_v45  ;;  %1164 = vmatmul.msk.f32.gmra.mxu3 %vm810_vm13, %v799_v59 }
 0x20c   : > { %v883_v60 = vpop.f32.mrf.mxu0 }
 0x20d   : > { %v948_v62 = vpop.f32.mrf.mxu1 }
 0x212   : > { %v907_v63 = vpop.f32.mrf.mxu2 }
 0x213   : > { %v972_v0 = vpop.f32.mrf.mxu3 }
 0x214   : > { %v886_v1 = vpop.f32.mrf.mxu0 }
 0x215   : > { %v951_v2 = vpop.f32.mrf.mxu1 }
 0x21a   : > { %v910_v3 = vpop.f32.mrf.mxu2 }
 0x21b   : > { %v975_v4 = vpop.f32.mrf.mxu3 }
 0x21c   : > { %v889_v5 = vpop.f32.mrf.mxu0 }
 0x21d   : > { %v954_v6 = vpop.f32.mrf.mxu1 }
 0x222   : > { %v913_v7 = vpop.f32.mrf.mxu2 }
 0x223   : > { %v978_v8 = vpop.f32.mrf.mxu3 }
 0x224   : > { %v1560_v9 = vpop.f32.mrf.mxu0 }
 0x225   : > { %v1562_v10 = vpop.f32.mrf.mxu1 }
 0x22a   : > { %v1564_v11 = vpop.f32.mrf.mxu2 }
 0x22b   : > { %v1566_v12 = vpop.f32.mrf.mxu3 }
 0x22c   : > { %v895_v13 = vpop.f32.mrf.mxu0 }
 0x22d   : > { %v960_v14 = vpop.f32.mrf.mxu1  ;;  %v996_v16 = vmax.f32 %v883_v60, %v895_v13 }
 0x22e   : > { %v997_v19 = vmax.f32 %v948_v62, %v960_v14 }
 0x232   : > { %v919_v15 = vpop.f32.mrf.mxu2 }
 0x233   : > { %v1004_v17 = vmax.f32 %v907_v63, %v919_v15  ;;  %v984_v18 = vpop.f32.mrf.mxu3 }
 0x234   : > { %v1005_v20 = vmax.f32 %v972_v0, %v984_v18  ;;  %v898_v21 = vpop.f32.mrf.mxu0 }
 0x235   : > { %v1012_v23 = vmax.f32 %v996_v16, %v1004_v17  ;;  %v963_v24 = vpop.f32.mrf.mxu1  ;;  %v998_v31 = vmax.f32 %v886_v1, %v898_v21 }
 0x236   : > { %v1013_v25 = vmax.f32 %v997_v19, %v1005_v20  ;;  %v999_v34 = vmax.f32 %v951_v2, %v963_v24 }
 0x237   : > { %v1044_v26 = vadd.f32 %v1027_v22, %v1012_v23 }
 0x238   : > { %v1045_v27 = vadd.f32 %v1027_v22, %v1013_v25 }
 0x239   : > { %v1052_v28 = vmax.f32 %v1044_v26, 0.0 }
 0x23a   : > { %v1053_v29 = vmax.f32 %v1045_v27, 0.0  ;;  %v922_v30 = vpop.f32.mrf.mxu2 }
 0x23b   : > { %v1006_v32 = vmax.f32 %v910_v3, %v922_v30  ;;  %v987_v33 = vpop.f32.mrf.mxu3 }
 0x23c   : > { %v1060_v36 = vpack.c.bf16 %v1053_v29, %v1052_v28  ;;  %v1007_v37 = vmax.f32 %v975_v4, %v987_v33  ;;  %v901_v39 = vpop.f32.mrf.mxu0 }
 0x23d   : > { %v1014_v38 = vmax.f32 %v998_v31, %v1006_v32  ;;  %v966_v40 = vpop.f32.mrf.mxu1  ;;  %v1000_v49 = vmax.f32 %v889_v5, %v901_v39 }
 0x23e   : > { %1064 = vst [vmem:[%s1572_s19] sm:$0xff] %v1060_v36  ;;  %v1015_v41 = vmax.f32 %v999_v34, %v1007_v37  ;;  %v1001_v52 = vmax.f32 %v954_v6, %v966_v40  ;;  %v1042_v6 = vpop.permute.xlu2 %1041 }
 0x23f   : > { %v1046_v42 = vadd.f32 %v1032_v35, %v1014_v38 }
 0x240   : > { %v1047_v43 = vadd.f32 %v1032_v35, %v1015_v41 }
 0x241   : > { %v1054_v44 = vmax.f32 %v1046_v42, 0.0 }
 0x242   : > { %v1055_v46 = vmax.f32 %v1047_v43, 0.0  ;;  %v925_v47 = vpop.f32.mrf.mxu2 }
 0x243   : > { %v1008_v51 = vmax.f32 %v913_v7, %v925_v47  ;;  %v990_v50 = vpop.f32.mrf.mxu3 }
 0x244   : > { %v1061_v48 = vpack.c.bf16 %v1055_v46, %v1054_v44  ;;  %v1009_v61 = vmax.f32 %v978_v8, %v990_v50  ;;  %v904_v57 = vpop.f32.mrf.mxu0 }
 0x245   : > { %v1016_v54 = vmax.f32 %v1000_v49, %v1008_v51  ;;  %v969_v45 = vpop.f32.mrf.mxu1  ;;  %v1002_v63 = vmax.f32 %v1560_v9, %v904_v57 }
 0x246   : > { %1065 = vst [vmem:[%s1572_s19 + $0x8] sm:$0xff] %v1061_v48  ;;  %v1017_v55 = vmax.f32 %v1001_v52, %v1009_v61  ;;  %v1003_v2 = vmax.f32 %v1562_v10, %v969_v45 }
 0x247   : > { %v1048_v56 = vadd.f32 %v1037_v53, %v1016_v54 }
 0x248   : > { %v1049_v58 = vadd.f32 %v1037_v53, %v1017_v55 }
 0x249   : > { %v1056_v59 = vmax.f32 %v1048_v56, 0.0 }
 0x24a   : > { %v1057_v60 = vmax.f32 %v1049_v58, 0.0  ;;  %v928_v62 = vpop.f32.mrf.mxu2 }
 0x24b   : > { %v1010_v0 = vmax.f32 %v1564_v11, %v928_v62  ;;  %v993_v1 = vpop.f32.mrf.mxu3 }
 0x24c   : > { %v1062_v3 = vpack.c.bf16 %v1057_v60, %v1056_v59  ;;  %v1011_v4 = vmax.f32 %v1566_v12, %v993_v1 }
 0x24d   : > { %v1018_v5 = vmax.f32 %v1002_v63, %v1010_v0 }
 0x24e   : > { %1066 = vst [vmem:[%s1572_s19 + $0x10] sm:$0xff] %v1062_v3  ;;  %v1019_v7 = vmax.f32 %v1003_v2, %v1011_v4 }
 0x24f   : > { %v1050_v8 = vadd.f32 %v1042_v6, %v1018_v5 }
 0x250   : > { %v1051_v13 = vadd.f32 %v1042_v6, %v1019_v7 }
 0x251   : > { %v1058_v14 = vmax.f32 %v1050_v8, 0.0 }
 0x252   : > { %v1059_v15 = vmax.f32 %v1051_v13, 0.0 }
 0x254   : > { %v1063_v16 = vpack.c.bf16 %v1059_v15, %v1058_v14 }
 0x256   : > { %1067 = vst [vmem:[%s1572_s19 + $0x18] sm:$0xff] %v1063_v16 }
 0x257 PF: > { %s13_s12 = sadd.s32 1, %s1205_s12  }
 0x258   : > { %p10_p4 = scmp.ge.s32.totalorder %s13_s12, 4  }
 0x25a   :  { %12 = sbr.rel (!%p10_p4) target bundleno = 1 (0x1), region = 124 }

// kernel: cnn_forward.4
= control target key start
LH: loop header
LB: loop body
LE: loop exit
PB: predicated region body
PF: predicated region fallthrough
CT: control target
= control target key end

     0   :  { %s2849_s12 = smov 0   ;;  %s3558_s0 = inlined_call_operand.vmem [shape: bf16[2,4,32,64], index: 0, kind: input, shape index: {}]   ;;  %s3559_s1 = inlined_call_operand.vmem [shape: bf16[64,1152], index: 1, kind: input, shape index: {}]   ;;  %s3560_s2 = inlined_call_operand.vmem [shape: f32[16,1], index: 2, kind: input, shape index: {}]   ;;  %s3561_s3 = inlined_call_operand.vmem [shape: f32[2,16,48], index: 3, kind: output, shape index: {}]  }
   0x1 LB: > { %s2116_s13 = sadd.s32 4294967295, %s2818_s12   ;;  %p2120_p0 = scmp.ge.s32.totalorder %s2818_s12, 1  ;;  %s2818_s12 = sphi %s2849_s12, %s13_s12  }
   0x2   : > { %p137_p1 = scmp.lt.s32.totalorder %s2818_s12, 3 }
   0x4   : > { %p138_p2 = pnand %p2120_p0, %p137_p1 }
   0x5   : > { %p161_p3 = scmp.lt.s32.totalorder (!%p138_p2), %s2116_s13, 1  ;;  %s2820_s18 = smov (!%p138_p2), 127  }
   0x6   : > { %141 = sbr.rel (%p138_p2) target bundleno = 655 (0x28f), region = 32  ;;  %s2821_s19 = smov (!%p138_p2), 126  }
   0x7   : > { %s2822_s20 = smov (!%p138_p2), 120   ;;  %s2823_s21 = smov (!%p138_p2), 121  }
   0x8   : > { %s2824_s22 = smov (!%p138_p2), 119   ;;  %s2825_s23 = smov (!%p138_p2), 113  }
   0x9   : > { %s2826_s24 = smov (!%p138_p2), 114   ;;  %s2827_s10 = smov (!%p138_p2), 112  }
   0xb   : > { %s3563_s13 = smov (!%p161_p3, %s2116_s13), 1  ;;  %vm175_vm0 = vcmask 388096   ;;  %vm2058_vm1 = vcmask 392192  }
   0xc   : > { %s2667_s14 = sshll.u32 %s3563_s13, 6  ;;  %s2668_s6 = sshll.u32 %s3563_s13, 4 }
   0xd   : > { %s2863_s17 = scalar_lea.vmem %s3558_s0, %s2667_s14  ;;  %s170_s9 = scalar_lea.vmem %s3561_s3, %s2668_s6 }
   0xe   : > { %v191_v0 = vld [vmem:[%s2863_s17 + $0x8] sm:$0xf]  ;;  %v189_v1 = vld [vmem:[%s2863_s17] sm:$0xf]  ;;  %v2129_v2 = vld [vmem:[%s2863_s17 + $0x10] sm:$0xf] }
   0xf   : > { %201 = vrot.lane.b32.xlu1 %v191_v0, %s2820_s18  ;;  %197 = vrot.lane.b32.xlu0 %v189_v1, %s2820_s18  ;;  %v192_v3 = vld [vmem:[%s2863_s17 + $0xc] sm:$0xf]  ;;  %v190_v4 = vld [vmem:[%s2863_s17 + $0x4] sm:$0xf] }
  0x10   : > { %221 = vrot.lane.b32.xlu2 %v2129_v2, %s2820_s18  ;;  %v2130_v5 = vld [vmem:[%s2863_s17 + $0x14] sm:$0xf]  ;;  %v2132_v6 = vld [vmem:[%s2863_s17 + $0x1c] sm:$0xf]  ;;  %v2131_v7 = vld [vmem:[%s2863_s17 + $0x18] sm:$0xf] }
  0x11   : > { %v237_v8 = vld [vmem:[%s2863_s17] sm:$0xf]  ;;  %v239_v9 = vld [vmem:[%s2863_s17 + $0x8] sm:$0xf]  ;;  %v238_v10 = vld [vmem:[%s2863_s17 + $0x4] sm:$0xf] }
  0x12   : > { %v240_v11 = vld [vmem:[%s2863_s17 + $0xc] sm:$0xf]  ;;  %v2159_v12 = vld [vmem:[%s2863_s17 + $0x38] sm:$0xf]  ;;  %v2133_v13 = vld [vmem:[%s2863_s17 + $0x10] sm:$0xf] }
  0x13   : > { %v2160_v14 = vld [vmem:[%s2863_s17 + $0x3c] sm:$0xf]  ;;  %v2158_v15 = vld [vmem:[%s2863_s17 + $0x34] sm:$0xf]  ;;  %v2157_v16 = vld [vmem:[%s2863_s17 + $0x30] sm:$0xf] }
  0x14   : > { %v2155_v17 = vld [vmem:[%s2863_s17 + $0x28] sm:$0xf]  ;;  %v2153_v18 = vld [vmem:[%s2863_s17 + $0x20] sm:$0xf]  ;;  %v2156_v19 = vld [vmem:[%s2863_s17 + $0x2c] sm:$0xf] }
  0x15   : > { %v2154_v20 = vld [vmem:[%s2863_s17 + $0x24] sm:$0xf]  ;;  %v2168_v21 = vld [vmem:[%s2863_s17 + $0x1c] sm:$0xf]  ;;  %v2167_v22 = vld [vmem:[%s2863_s17 + $0x18] sm:$0xf] }
  0x16   : > { %v2151_v23 = vld [vmem:[%s2863_s17 + $0x38] sm:$0xf]  ;;  %v2165_v24 = vld [vmem:[%s2863_s17 + $0x10] sm:$0xf]  ;;  %v2152_v25 = vld [vmem:[%s2863_s17 + $0x3c] sm:$0xf] }
  0x17   : > { %203 = vrot.lane.b32.xlu1 %v192_v3, %s2820_s18  ;;  %199 = vrot.lane.b32.xlu0 %v190_v4, %s2820_s18  ;;  %v2166_v26 = vld [vmem:[%s2863_s17 + $0x14] sm:$0xf]  ;;  %v2149_v28 = vld [vmem:[%s2863_s17 + $0x30] sm:$0xf] }
  0x18   : > { %223 = vrot.lane.b32.xlu2 %v2130_v5, %s2820_s18  ;;  %v2150_v27 = vld [vmem:[%s2863_s17 + $0x34] sm:$0xf]  ;;  %v449_v29 = vld [vmem:[%s2863_s17 + $0x8] sm:$0xf]  ;;  %v450_v31 = vld [vmem:[%s2863_s17 + $0xc] sm:$0xf] }
  0x19   : > { %v2147_v30 = vld [vmem:[%s2863_s17 + $0x28] sm:$0xf]  ;;  %v2148_v32 = vld [vmem:[%s2863_s17 + $0x2c] sm:$0xf]  ;;  %v448_v33 = vld [vmem:[%s2863_s17 + $0x4] sm:$0xf] }
  0x1a   : > { %v447_v34 = vld [vmem:[%s2863_s17] sm:$0xf]  ;;  %v2163_v37 = vld [vmem:[%s2863_s17 + $0x18] sm:$0xf]  ;;  %v2146_v38 = vld [vmem:[%s2863_s17 + $0x24] sm:$0xf] }
  0x1b   : > { %v2145_v35 = vld [vmem:[%s2863_s17 + $0x20] sm:$0xf]  ;;  %v2164_v39 = vld [vmem:[%s2863_s17 + $0x1c] sm:$0xf]  ;;  %v2135_v42 = vld [vmem:[%s2863_s17 + $0x18] sm:$0xf] }
  0x1c   : > { %v2136_v41 = vld [vmem:[%s2863_s17 + $0x1c] sm:$0xf]  ;;  %v2161_v43 = vld [vmem:[%s2863_s17 + $0x10] sm:$0xf]  ;;  %v2134_v45 = vld [vmem:[%s2863_s17 + $0x14] sm:$0xf] }
  0x1d   : > { %v2162_v46 = vld [vmem:[%s2863_s17 + $0x14] sm:$0xf]  ;;  %v401_v47 = vld [vmem:[%s2863_s17 + $0x8] sm:$0xf]  ;;  %v2179_v51 = vld [vmem:[%s2863_s17 + $0x38] sm:$0xf] }
  0x1e   : > { %v402_v52 = vld [vmem:[%s2863_s17 + $0xc] sm:$0xf]  ;;  %v2180_v53 = vld [vmem:[%s2863_s17 + $0x3c] sm:$0xf]  ;;  %v400_v57 = vld [vmem:[%s2863_s17 + $0x4] sm:$0xf] }
  0x1f   : > { %227 = vrot.lane.b32.xlu1 %v2132_v6, %s2820_s18  ;;  %225 = vrot.lane.b32.xlu0 %v2131_v7, %s2820_s18  ;;  %v399_v58 = vld [vmem:[%s2863_s17] sm:$0xf]  ;;  %v2177_v59 = vld [vmem:[%s2863_s17 + $0x30] sm:$0xf] }
  0x20   : > { %245 = vrot.lane.b32.xlu2 %v237_v8, %s2821_s19  ;;  %v2175_v63 = vld [vmem:[%s2863_s17 + $0x28] sm:$0xf]  ;;  %v2178_v0 = vld [vmem:[%s2863_s17 + $0x34] sm:$0xf]  ;;  %v2176_v1 = vld [vmem:[%s2863_s17 + $0x2c] sm:$0xf] }
  0x21   : > { %v2174_v6 = vld [vmem:[%s2863_s17 + $0x24] sm:$0xf]  ;;  %v2173_v7 = vld [vmem:[%s2863_s17 + $0x20] sm:$0xf] }
  0x27   : > { %249 = vrot.lane.b32.xlu1 %v239_v9, %s2821_s19  ;;  %247 = vrot.lane.b32.xlu0 %v238_v10, %s2821_s19  ;;  %v2171_v9 = vld [vmem:[%s2863_s17 + $0x18] sm:$0xf] }
  0x28   : > { %251 = vrot.lane.b32.xlu2 %v240_v11, %s2821_s19 }
  0x2f   : > { %387 = vrot.lane.b32.xlu1 %v2159_v12, %s2821_s19  ;;  %269 = vrot.lane.b32.xlu0 %v2133_v13, %s2821_s19 }
  0x30   : > { %389 = vrot.lane.b32.xlu2 %v2160_v14, %s2821_s19  ;;  %v2169_v14 = vld [vmem:[%s2863_s17 + $0x10] sm:$0xf] }
  0x37   : > { %385 = vrot.lane.b32.xlu1 %v2158_v15, %s2821_s19  ;;  %383 = vrot.lane.b32.xlu0 %v2157_v16, %s2821_s19  ;;  %v2172_v15 = vld [vmem:[%s2863_s17 + $0x1c] sm:$0xf] }
  0x38   : > { %363 = vrot.lane.b32.xlu2 %v2155_v17, %s2821_s19  ;;  %v2170_v17 = vld [vmem:[%s2863_s17 + $0x14] sm:$0xf] }
  0x3f   : > { %359 = vrot.lane.b32.xlu1 %v2153_v18, %s2821_s19  ;;  %365 = vrot.lane.b32.xlu0 %v2156_v19, %s2821_s19 }
  0x40   : > { %361 = vrot.lane.b32.xlu2 %v2154_v20, %s2821_s19 }
  0x47   : > { %485 = vrot.lane.b32.xlu1 %v2168_v21, %s2822_s20  ;;  %483 = vrot.lane.b32.xlu0 %v2167_v22, %s2822_s20  ;;  %v498_v22 = vld [vmem:[%s2863_s17 + $0xc] sm:$0xf] }
  0x48   : > { %339 = vrot.lane.b32.xlu2 %v2151_v23, %s2820_s18  ;;  %v497_v23 = vld [vmem:[%s2863_s17 + $0x8] sm:$0xf] }
  0x4f   : > { %479 = vrot.lane.b32.xlu1 %v2165_v24, %s2822_s20  ;;  %341 = vrot.lane.b32.xlu0 %v2152_v25, %s2820_s18  ;;  %v2127_v24 = vld [vmem:[%s2863_s17 + $0x18] sm:$0xf]  ;;  %v2128_v25 = vld [vmem:[%s2863_s17 + $0x1c] sm:$0xf] }
  0x50   : > { %481 = vrot.lane.b32.xlu2 %v2166_v26, %s2822_s20  ;;  %v2203_v26 = vld [vmem:[%s2863_s17 + $0x18] sm:$0xf]  ;;  %187 = vst.msk [vmem:[#allocation2 + $0x18] sm:$0xf] %vm175_vm0, %v2127_v24 }
  0x51   : > { %188 = vst.msk [vmem:[#allocation2 + $0x1c] sm:$0xf] %vm175_vm0, %v2128_v25 }
  0x57   : > { %337 = vrot.lane.b32.xlu1 %v2150_v27, %s2820_s18  ;;  %335 = vrot.lane.b32.xlu0 %v2149_v28, %s2820_s18 }
  0x58   : > { %459 = vrot.lane.b32.xlu2 %v449_v29, %s2822_s20 }
  0x5f   : > { %315 = vrot.lane.b32.xlu1 %v2147_v30, %s2820_s18  ;;  %461 = vrot.lane.b32.xlu0 %v450_v31, %s2822_s20  ;;  %v2125_v30 = vld [vmem:[%s2863_s17 + $0x10] sm:$0xf] }
  0x60   : > { %317 = vrot.lane.b32.xlu2 %v2148_v32, %s2820_s18  ;;  %v2126_v32 = vld [vmem:[%s2863_s17 + $0x14] sm:$0xf]  ;;  %185 = vst.msk [vmem:[#allocation2 + $0x10] sm:$0xf] %vm175_vm0, %v2125_v30 }
  0x61   : > { %186 = vst.msk [vmem:[#allocation2 + $0x14] sm:$0xf] %vm175_vm0, %v2126_v32 }
  0x67   : > { %457 = vrot.lane.b32.xlu1 %v448_v33, %s2822_s20  ;;  %455 = vrot.lane.b32.xlu0 %v447_v34, %s2822_s20  ;;  %v495_v33 = vld [vmem:[%s2863_s17] sm:$0xf]  ;;  %v2204_v34 = vld [vmem:[%s2863_s17 + $0x1c] sm:$0xf] }
  0x68   : > { %311 = vrot.lane.b32.xlu2 %v2145_v35, %s2820_s18  ;;  %v173_v35 = vld [vmem:[%s2863_s17 + $0x8] sm:$0xf] }
  0x69   : > { %178 = vst.msk [vmem:[#allocation2 + $0x8] sm:$0xf] %vm175_vm0, %v173_v35  ;;  %v2194_v35 = vld [vmem:[%s2863_s17 + $0x34] sm:$0xf] }
  0x6a   : > { %v222_v36 = vpop.permute.xlu2 %221 }
  0x6b   : > { %233 = vst.msk [vmem:[#allocation2 + $0x30] sm:$0xf] %vm175_vm0, %v222_v36  ;;  %v174_v36 = vld [vmem:[%s2863_s17 + $0xc] sm:$0xf] }
  0x6c   : > { %179 = vst.msk [vmem:[#allocation2 + $0xc] sm:$0xf] %vm175_vm0, %v174_v36  ;;  %v2198_v36 = vld [vmem:[%s2863_s17 + $0x14] sm:$0xf] }
  0x6f   : > { %435 = vrot.lane.b32.xlu1 %v2163_v37, %s2823_s21  ;;  %313 = vrot.lane.b32.xlu0 %v2146_v38, %s2820_s18  ;;  %v496_v37 = vld [vmem:[%s2863_s17 + $0x4] sm:$0xf]  ;;  %v2708_v38 = vld [vmem:[#allocation2 + $0x18] sm:$0xff] }
  0x70   : > { %437 = vrot.lane.b32.xlu2 %v2164_v39, %s2823_s21 }
  0x72   : > { %v224_v40 = vpop.permute.xlu2 %223 }
  0x73   : > { %234 = vst.msk [vmem:[#allocation2 + $0x34] sm:$0xf] %vm175_vm0, %v224_v40 }
  0x77   : > { %275 = vrot.lane.b32.xlu1 %v2136_v41, %s2821_s19  ;;  %273 = vrot.lane.b32.xlu0 %v2135_v42, %s2821_s19  ;;  %v171_v42 = vld [vmem:[%s2863_s17] sm:$0xf] }
  0x78   : > { %431 = vrot.lane.b32.xlu2 %v2161_v43, %s2823_s21  ;;  %v2202_v43 = vld [vmem:[%s2863_s17 + $0x14] sm:$0xf]  ;;  %176 = vst.msk [vmem:[#allocation2] sm:$0xf] %vm175_vm0, %v171_v42  ;;  %v2212_v42 = vld [vmem:[%s2863_s17 + $0x2c] sm:$0xf] }
  0x7a   : > { %v246_v44 = vpop.permute.xlu2 %245  ;;  %v2711_v8 = vld [vmem:[#allocation2 + $0x30] sm:$0xff] }
  0x7b   : > { %257 = vst.msk [vmem:[#allocation2 + $0x40] sm:$0xf] %vm175_vm0, %v246_v44 }
  0x7f   : > { %271 = vrot.lane.b32.xlu1 %v2134_v45, %s2821_s19  ;;  %433 = vrot.lane.b32.xlu0 %v2162_v46, %s2823_s21  ;;  %v172_v45 = vld [vmem:[%s2863_s17 + $0x4] sm:$0xf]  ;;  %v2201_v46 = vld [vmem:[%s2863_s17 + $0x10] sm:$0xf] }
  0x80   : > { %411 = vrot.lane.b32.xlu2 %v401_v47, %s2823_s21  ;;  %v737_v47 = vld [vmem:[%s2863_s17 + $0x8] sm:$0xf]  ;;  %177 = vst.msk [vmem:[#allocation2 + $0x4] sm:$0xf] %vm175_vm0, %v172_v45 }
  0x81   : > { %v202_v48 = vpop.permute.xlu1 %201  ;;  %v198_v49 = vpop.permute.xlu0 %197 }
  0x82   : > { %211 = vst.msk [vmem:[#allocation2 + $0x28] sm:$0xf] %vm175_vm0, %v202_v48  ;;  %v252_v50 = vpop.permute.xlu2 %251  ;;  %v2707_v48 = vld [vmem:[#allocation2 + $0x10] sm:$0xff] }
  0x83   : > { %209 = vst.msk [vmem:[#allocation2 + $0x20] sm:$0xf] %vm175_vm0, %v198_v49  ;;  %v2143_v49 = vld [vmem:[%s2863_s17 + $0x38] sm:$0xf] }
  0x84   : > { %260 = vst.msk [vmem:[#allocation2 + $0x4c] sm:$0xf] %vm175_vm0, %v252_v50 }
  0x85   : > { %301 = vst.msk [vmem:[#allocation2 + $0x78] sm:$0xf] %vm175_vm0, %v2143_v49  ;;  %v689_v49 = vld [vmem:[%s2863_s17 + $0x8] sm:$0xf] }
  0x87   : > { %579 = vrot.lane.b32.xlu1 %v2179_v51, %s2823_s21  ;;  %413 = vrot.lane.b32.xlu0 %v402_v52, %s2823_s21  ;;  %v2144_v51 = vld [vmem:[%s2863_s17 + $0x3c] sm:$0xf]  ;;  %v2706_v52 = vld [vmem:[#allocation2 + $0x8] sm:$0xff] }
  0x88   : > { %581 = vrot.lane.b32.xlu2 %v2180_v53, %s2823_s21  ;;  %302 = vst.msk [vmem:[#allocation2 + $0x7c] sm:$0xf] %vm175_vm0, %v2144_v51  ;;  %v690_v51 = vld [vmem:[%s2863_s17 + $0xc] sm:$0xf] }
  0x89   : > { %v204_v54 = vpop.permute.xlu1 %203  ;;  %v200_v55 = vpop.permute.xlu0 %199 }
  0x8a   : > { %212 = vst.msk [vmem:[#allocation2 + $0x2c] sm:$0xf] %vm175_vm0, %v204_v54  ;;  %v390_v56 = vpop.permute.xlu2 %389 }
  0x8b   : > { %210 = vst.msk [vmem:[#allocation2 + $0x24] sm:$0xf] %vm175_vm0, %v200_v55 }
  0x8c   : > { %398 = vst.msk [vmem:[#allocation2 + $0xbc] sm:$0xf] %vm175_vm0, %v390_v56  ;;  %v2141_v56 = vld [vmem:[%s2863_s17 + $0x30] sm:$0xf] }
  0x8d   : > { %299 = vst.msk [vmem:[#allocation2 + $0x70] sm:$0xf] %vm175_vm0, %v2141_v56 }
  0x8f   : > { %409 = vrot.lane.b32.xlu1 %v400_v57, %s2823_s21  ;;  %407 = vrot.lane.b32.xlu0 %v399_v58, %s2823_s21  ;;  %v735_v57 = vld [vmem:[%s2863_s17] sm:$0xf] }
  0x90   : > { %575 = vrot.lane.b32.xlu2 %v2177_v59, %s2823_s21  ;;  %v2142_v59 = vld [vmem:[%s2863_s17 + $0x34] sm:$0xf] }
  0x91   : > { %v228_v60 = vpop.permute.xlu1 %227  ;;  %v226_v61 = vpop.permute.xlu0 %225  ;;  %v2710_v12 = vld [vmem:[#allocation2 + $0x28] sm:$0xff]  ;;  %300 = vst.msk [vmem:[#allocation2 + $0x74] sm:$0xf] %vm175_vm0, %v2142_v59 }
  0x92   : > { %236 = vst.msk [vmem:[#allocation2 + $0x3c] sm:$0xf] %vm175_vm0, %v228_v60  ;;  %v364_v62 = vpop.permute.xlu2 %363  ;;  %v2709_v16 = vld [vmem:[#allocation2 + $0x20] sm:$0xff]  ;;  %v738_v60 = vld [vmem:[%s2863_s17 + $0xc] sm:$0xf] }
  0x93   : > { %235 = vst.msk [vmem:[#allocation2 + $0x38] sm:$0xf] %vm175_vm0, %v226_v61  ;;  %v2139_v61 = vld [vmem:[%s2863_s17 + $0x28] sm:$0xf] }
  0x94   : > { %373 = vst.msk [vmem:[#allocation2 + $0xa8] sm:$0xf] %vm175_vm0, %v364_v62  ;;  %v2705_v62 = vld [vmem:[#allocation2] sm:$0xff] }
  0x95   : > { %292 = vst.msk [vmem:[#allocation2 + $0x68] sm:$0xf] %vm175_vm0, %v2139_v61  ;;  %v2307_v61 = vld [vmem:[%s3559_s1 + $0x90] sm:$0xf] }
  0x97   : > { %555 = vrot.lane.b32.xlu1 %v2175_v63, %s2823_s21  ;;  %577 = vrot.lane.b32.xlu0 %v2178_v0, %s2823_s21  ;;  %v2140_v63 = vld [vmem:[%s2863_s17 + $0x2c] sm:$0xf]  ;;  %v736_v0 = vld [vmem:[%s2863_s17 + $0x4] sm:$0xf] }
  0x98   : > { %557 = vrot.lane.b32.xlu2 %v2176_v1, %s2823_s21  ;;  %v2137_v1 = vld [vmem:[%s2863_s17 + $0x20] sm:$0xf]  ;;  %293 = vst.msk [vmem:[#allocation2 + $0x6c] sm:$0xf] %vm175_vm0, %v2140_v63 }
  0x99   : > { %v250_v2 = vpop.permute.xlu1 %249  ;;  %v248_v3 = vpop.permute.xlu0 %247  ;;  %290 = vst.msk [vmem:[#allocation2 + $0x60] sm:$0xf] %vm175_vm0, %v2137_v1 }
  0x9a   : > { %259 = vst.msk [vmem:[#allocation2 + $0x48] sm:$0xf] %vm175_vm0, %v250_v2  ;;  %v2712_v4 = vld [vmem:[#allocation2 + $0x38] sm:$0xff]  ;;  %v362_v5 = vpop.permute.xlu2 %361 }
  0x9b   : > { %258 = vst.msk [vmem:[#allocation2 + $0x44] sm:$0xf] %vm175_vm0, %v248_v3  ;;  %1775 = vmatpush.bf16.msra.mxu0 %v2712_v4  ;;  %2777 = vmatpush.bf16.msra.mxu1 %v2712_v4  ;;  %v2720_v2 = vld [vmem:[#allocation2 + $0x78] sm:$0xff] }
  0x9c   : > { %372 = vst.msk [vmem:[#allocation2 + $0xa4] sm:$0xf] %vm175_vm0, %v362_v5 }
  0x9f   : > { %553 = vrot.lane.b32.xlu1 %v2174_v6, %s2823_s21  ;;  %551 = vrot.lane.b32.xlu0 %v2173_v7, %s2823_s21  ;;  %v2138_v7 = vld [vmem:[%s2863_s17 + $0x24] sm:$0xf] }
  0xa0   : > { %1776 = vmatpush.bf16.msra.mxu0 %v2711_v8  ;;  %2778 = vmatpush.bf16.msra.mxu1 %v2711_v8  ;;  %291 = vst.msk [vmem:[#allocation2 + $0x64] sm:$0xf] %vm175_vm0, %v2138_v7  ;;  %v2190_v7 = vld [vmem:[%s2863_s17 + $0x24] sm:$0xf] }
  0xa1   : > { %v388_v10 = vpop.permute.xlu1 %387  ;;  %v270_v11 = vpop.permute.xlu0 %269  ;;  %531 = vrot.lane.b32.xlu2 %v2171_v9, %s2824_s22  ;;  %v2216_v9 = vld [vmem:[%s2863_s17 + $0x3c] sm:$0xf]  ;;  %v2714_v59 = vld [vmem:[#allocation2 + $0x48] sm:$0xff] }
  0xa2   : > { %397 = vst.msk [vmem:[#allocation2 + $0xb8] sm:$0xf] %vm175_vm0, %v388_v10  ;;  %v340_v13 = vpop.permute.xlu2 %339  ;;  %v2215_v10 = vld [vmem:[%s2863_s17 + $0x38] sm:$0xf] }
  0xa3   : > { %281 = vst.msk [vmem:[#allocation2 + $0x50] sm:$0xf] %vm175_vm0, %v270_v11  ;;  %v2719_v11 = vld [vmem:[#allocation2 + $0x70] sm:$0xff] }
  0xa4   : > { %1777 = vmatpush.bf16.msra.mxu0 %v2710_v12  ;;  %2779 = vmatpush.bf16.msra.mxu1 %v2710_v12  ;;  %349 = vst.msk [vmem:[#allocation2 + $0x98] sm:$0xf] %vm175_vm0, %v340_v13  ;;  %v2195_v12 = vld [vmem:[%s2863_s17 + $0x38] sm:$0xf]  ;;  %v2718_v13 = vld [vmem:[#allocation2 + $0x68] sm:$0xff] }
  0xa7   : > { %527 = vrot.lane.b32.xlu1 %v2169_v14, %s2824_s22  ;;  %533 = vrot.lane.b32.xlu0 %v2172_v15, %s2824_s22 }
  0xa8   : > { %1778 = vmatpush.bf16.msra.mxu0 %v2709_v16  ;;  %2780 = vmatpush.bf16.msra.mxu1 %v2709_v16 }
  0xa9   : > { %v386_v18 = vpop.permute.xlu1 %385  ;;  %v384_v19 = vpop.permute.xlu0 %383  ;;  %v2728_v20 = vld [vmem:[#allocation2 + $0xb8] sm:$0xff]  ;;  %529 = vrot.lane.b32.xlu2 %v2170_v17, %s2824_s22 }
  0xaa   : > { %396 = vst.msk [vmem:[#allocation2 + $0xb4] sm:$0xf] %vm175_vm0, %v386_v18  ;;  %1833 = vmatpush.bf16.msra.mxu2 %v2728_v20  ;;  %v482_v21 = vpop.permute.xlu2 %481  ;;  %v2199_v17 = vld [vmem:[%s2863_s17 + $0x18] sm:$0xf]  ;;  %v2717_v20 = vld [vmem:[#allocation2 + $0x60] sm:$0xff] }
  0xab   : > { %395 = vst.msk [vmem:[#allocation2 + $0xb0] sm:$0xf] %vm175_vm0, %v384_v19  ;;  %v2196_v19 = vld [vmem:[%s2863_s17 + $0x3c] sm:$0xf] }
  0xac   : > { %492 = vst.msk [vmem:[#allocation2 + $0xf4] sm:$0xf] %vm175_vm0, %v482_v21  ;;  %2781 = vmatpush.bf16.msra.mxu1 %v2708_v38  ;;  %1779 = vmatpush.bf16.msra.mxu0 %v2708_v38  ;;  %v2200_v21 = vld [vmem:[%s2863_s17 + $0x1c] sm:$0xf] }
  0xaf   : > { %509 = vrot.lane.b32.xlu1 %v498_v22, %s2824_s22  ;;  %507 = vrot.lane.b32.xlu0 %v497_v23, %s2824_s22 }
  0xb0   : > { %2782 = vmatpush.bf16.msra.mxu1 %v2707_v48  ;;  %1780 = vmatpush.bf16.msra.mxu0 %v2707_v48 }
  0xb1   : > { %v360_v27 = vpop.permute.xlu1 %359  ;;  %v366_v28 = vpop.permute.xlu0 %365  ;;  %771 = vrot.lane.b32.xlu2 %v2203_v26, %s2825_s23 }
  0xb2   : > { %371 = vst.msk [vmem:[#allocation2 + $0xa0] sm:$0xf] %vm175_vm0, %v360_v27  ;;  %v2727_v29 = vld [vmem:[#allocation2 + $0xb0] sm:$0xff]  ;;  %v460_v31 = vpop.permute.xlu2 %459 }
  0xb3   : > { %374 = vst.msk [vmem:[#allocation2 + $0xac] sm:$0xf] %vm175_vm0, %v366_v28  ;;  %1834 = vmatpush.bf16.msra.mxu2 %v2727_v29  ;;  %v2214_v27 = vld [vmem:[%s2863_s17 + $0x34] sm:$0xf]  ;;  %v2213_v28 = vld [vmem:[%s2863_s17 + $0x30] sm:$0xf] }
  0xb4   : > { %469 = vst.msk [vmem:[#allocation2 + $0xe8] sm:$0xf] %vm175_vm0, %v460_v31  ;;  %2783 = vmatpush.bf16.msra.mxu1 %v2706_v52  ;;  %1781 = vmatpush.bf16.msra.mxu0 %v2706_v52  ;;  %v2193_v29 = vld [vmem:[%s2863_s17 + $0x30] sm:$0xf] }
  0xb7   : > { %503 = vrot.lane.b32.xlu1 %v495_v33, %s2824_s22  ;;  %773 = vrot.lane.b32.xlu0 %v2204_v34, %s2825_s23  ;;  %v2197_v34 = vld [vmem:[%s2863_s17 + $0x10] sm:$0xf] }
  0xb8   : > { %2784 = vmatpush.bf16.msra.mxu1 %v2705_v62  ;;  %1782 = vmatpush.bf16.msra.mxu0 %v2705_v62  ;;  %v2691_v62 = vld [vmem:[%s3559_s1 + $0xb0] sm:$0xf0] }
  0xb9   : > { %v486_v39 = vpop.permute.xlu1 %485  ;;  %v484_v40 = vpop.permute.xlu0 %483  ;;  %505 = vrot.lane.b32.xlu2 %v496_v37, %s2824_s22  ;;  %v2725_v50 = vld [vmem:[#allocation2 + $0xa0] sm:$0xff]  ;;  %v2308_v63 = vor.u32 %v2691_v62, %v2307_v61  ;;  %v2184_v61 = vld [vmem:[%s2863_s17 + $0x2c] sm:$0xf] }
  0xba   : > { %494 = vst.msk [vmem:[#allocation2 + $0xfc] sm:$0xf] %vm175_vm0, %v486_v39  ;;  %v2726_v41 = vld [vmem:[#allocation2 + $0xa8] sm:$0xff]  ;;  %v318_v44 = vpop.permute.xlu2 %317 }
  0xbb   : > { %493 = vst.msk [vmem:[#allocation2 + $0xf8] sm:$0xf] %vm175_vm0, %v484_v40  ;;  %1835 = vmatpush.bf16.msra.mxu2 %v2726_v41  ;;  %1793 = vmatmul.bf16.vlgmr.msra.gmra.mxu1 %v2308_v63  ;;  %v2683_v63 = vld [vmem:[%s3559_s1 + $0x70] sm:$0xf0] }
  0xbc   : > { %326 = vst.msk [vmem:[#allocation2 + $0x8c] sm:$0xf] %vm175_vm0, %v318_v44  ;;  %1804 = vmatpush.bf16.msrb.mxu1 %v2720_v2  ;;  %v2191_v44 = vld [vmem:[%s2863_s17 + $0x28] sm:$0xf] }
  0xbf   : > { %769 = vrot.lane.b32.xlu1 %v2202_v43, %s2825_s23  ;;  %767 = vrot.lane.b32.xlu0 %v2201_v46, %s2825_s23  ;;  %v2211_v43 = vld [vmem:[%s2863_s17 + $0x28] sm:$0xf] }
  0xc0   : > { %1836 = vmatpush.bf16.msra.mxu2 %v2725_v50  ;;  %1805 = vmatpush.bf16.msrb.mxu1 %v2719_v11  ;;  %v2192_v50 = vld [vmem:[%s2863_s17 + $0x2c] sm:$0xf] }
  0xc1   : > { %v480_v53 = vpop.permute.xlu1 %479  ;;  %v342_v54 = vpop.permute.xlu0 %341  ;;  %747 = vrot.lane.b32.xlu2 %v737_v47, %s2825_s23 }
  0xc2   : > { %491 = vst.msk [vmem:[#allocation2 + $0xf0] sm:$0xf] %vm175_vm0, %v480_v53  ;;  %v2736_v55 = vld [vmem:[#allocation2 + $0xf8] sm:$0xff]  ;;  %v312_v58 = vpop.permute.xlu2 %311 }
  0xc3   : > { %350 = vst.msk [vmem:[#allocation2 + $0x9c] sm:$0xf] %vm175_vm0, %v342_v54  ;;  %1862 = vmatpush.bf16.msra.mxu3 %v2736_v55 }
  0xc4   : > { %323 = vst.msk [vmem:[#allocation2 + $0x80] sm:$0xf] %vm175_vm0, %v312_v58  ;;  %1806 = vmatpush.bf16.msrb.mxu1 %v2718_v13  ;;  %v2209_v58 = vld [vmem:[%s2863_s17 + $0x20] sm:$0xf] }
  0xc7   : > { %743 = vrot.lane.b32.xlu1 %v735_v57, %s2825_s23  ;;  %749 = vrot.lane.b32.xlu0 %v738_v60, %s2825_s23  ;;  %v2210_v57 = vld [vmem:[%s2863_s17 + $0x24] sm:$0xf]  ;;  %v2189_v60 = vld [vmem:[%s2863_s17 + $0x20] sm:$0xf] }
  0xc8   : > { %1807 = vmatpush.bf16.msrb.mxu1 %v2717_v20  ;;  %v2700_v20 = vld [vmem:[%s3559_s1 + $0xf8] sm:$0xf0] }
  0xc9   : > { %v338_v3 = vpop.permute.xlu1 %337  ;;  %v336_v4 = vpop.permute.xlu0 %335  ;;  %v2735_v5 = vld [vmem:[#allocation2 + $0xf0] sm:$0xff]  ;;  %745 = vrot.lane.b32.xlu2 %v736_v0, %s2825_s23 }
  0xca   : > { %348 = vst.msk [vmem:[#allocation2 + $0x94] sm:$0xf] %vm175_vm0, %v338_v3  ;;  %v2724_v6 = vld [vmem:[#allocation2 + $0x98] sm:$0xff]  ;;  %1863 = vmatpush.bf16.msra.mxu3 %v2735_v5  ;;  %v438_v8 = vpop.permute.xlu2 %437  ;;  %v2713_v3 = vld [vmem:[#allocation2 + $0x40] sm:$0xff] }
  0xcb   : > { %347 = vst.msk [vmem:[#allocation2 + $0x90] sm:$0xf] %vm175_vm0, %v336_v4  ;;  %1837 = vmatpush.bf16.msra.mxu2 %v2724_v6  ;;  %v687_v5 = vld [vmem:[%s2863_s17] sm:$0xf] }
  0xcc   : > { %446 = vst.msk [vmem:[#allocation2 + $0xdc] sm:$0xf] %vm175_vm0, %v438_v8  ;;  %v2235_v8 = vld [vmem:[%s3559_s1] sm:$0xf] }
  0xcf   : > { %869 = vrot.lane.b32.xlu1 %v2216_v9, %s2826_s24  ;;  %867 = vrot.lane.b32.xlu0 %v2215_v10, %s2826_s24  ;;  %v2673_v9 = vld [vmem:[%s3559_s1 + $0x20] sm:$0xf0] }
  0xd0   : > { %v688_v10 = vld [vmem:[%s2863_s17 + $0x4] sm:$0xf]  ;;  %v2236_v11 = vor.u32 %v2673_v9, %v2235_v8  ;;  %v2251_v8 = vld [vmem:[%s3559_s1 + $0x10] sm:$0xf]  ;;  %v2675_v9 = vld [vmem:[%s3559_s1 + $0x30] sm:$0xf0] }
  0xd1   : > { %v316_v14 = vpop.permute.xlu1 %315  ;;  %v462_v15 = vpop.permute.xlu0 %461  ;;  %675 = vrot.lane.b32.xlu2 %v2195_v12, %s2824_s22 }
  0xd2   : > { %325 = vst.msk [vmem:[#allocation2 + $0x88] sm:$0xf] %vm175_vm0, %v316_v14  ;;  %v2723_v16 = vld [vmem:[#allocation2 + $0x90] sm:$0xff]  ;;  %v432_v18 = vpop.permute.xlu2 %431  ;;  %1783 = vmatmul.bf16.vlgmr.msra.gmra.mxu0 %v2236_v11 }
  0xd3   : > { %470 = vst.msk [vmem:[#allocation2 + $0xec] sm:$0xf] %vm175_vm0, %v462_v15  ;;  %1838 = vmatpush.bf16.msra.mxu2 %v2723_v16  ;;  %v2208_v16 = vld [vmem:[%s2863_s17 + $0x1c] sm:$0xf] }
  0xd4   : > { %443 = vst.msk [vmem:[#allocation2 + $0xd0] sm:$0xf] %vm175_vm0, %v432_v18  ;;  %v2187_v18 = vld [vmem:[%s2863_s17 + $0x38] sm:$0xf] }
  0xd7   : > { %723 = vrot.lane.b32.xlu1 %v2199_v17, %s2826_s24  ;;  %677 = vrot.lane.b32.xlu0 %v2196_v19, %s2824_s22  ;;  %v2207_v17 = vld [vmem:[%s2863_s17 + $0x18] sm:$0xf] }
  0xd8   : > { %v2343_v19 = vld [vmem:[%s3559_s1 + $0xd8] sm:$0xf] }
  0xd9   : > { %v458_v22 = vpop.permute.xlu1 %457  ;;  %v456_v23 = vpop.permute.xlu0 %455  ;;  %v2722_v24 = vld [vmem:[#allocation2 + $0x88] sm:$0xff]  ;;  %725 = vrot.lane.b32.xlu2 %v2200_v21, %s2826_s24  ;;  %v2344_v21 = vor.u32 %v2700_v20, %v2343_v19  ;;  %v2230_v19 = vld [vmem:[%s2863_s17 + $0x34] sm:$0xf] }
  0xda   : > { %468 = vst.msk [vmem:[#allocation2 + $0xe4] sm:$0xf] %vm175_vm0, %v458_v22  ;;  %v2734_v25 = vld [vmem:[#allocation2 + $0xe8] sm:$0xff]  ;;  %1839 = vmatpush.bf16.msra.mxu2 %v2722_v24  ;;  %v412_v26 = vpop.permute.xlu2 %411 }
  0xdb   : > { %467 = vst.msk [vmem:[#allocation2 + $0xe0] sm:$0xf] %vm175_vm0, %v456_v23  ;;  %1864 = vmatpush.bf16.msra.mxu3 %v2734_v25  ;;  %1798 = vmatmul.bf16.gmra.mxu1 %v2344_v21  ;;  %v2205_v25 = vld [vmem:[%s2863_s17 + $0x10] sm:$0xf] }
  0xdc   : > { %421 = vst.msk [vmem:[#allocation2 + $0xc8] sm:$0xf] %vm175_vm0, %v412_v26 }
  0xdf   : > { %865 = vrot.lane.b32.xlu1 %v2214_v27, %s2826_s24  ;;  %863 = vrot.lane.b32.xlu0 %v2213_v28, %s2826_s24  ;;  %v2188_v27 = vld [vmem:[%s2863_s17 + $0x3c] sm:$0xf]  ;;  %v2271_v28 = vld [vmem:[%s3559_s1 + $0x48] sm:$0xf] }
  0xe1   : > { %v436_v30 = vpop.permute.xlu1 %435  ;;  %v314_v31 = vpop.permute.xlu0 %313  ;;  %671 = vrot.lane.b32.xlu2 %v2193_v29, %s2824_s22  ;;  %v2682_v29 = vld [vmem:[%s3559_s1 + $0x68] sm:$0xf0] }
  0xe2   : > { %445 = vst.msk [vmem:[#allocation2 + $0xd8] sm:$0xf] %vm175_vm0, %v436_v30  ;;  %v2733_v32 = vld [vmem:[#allocation2 + $0xe0] sm:$0xff]  ;;  %v582_v33 = vpop.permute.xlu2 %581 }
  0xe3   : > { %324 = vst.msk [vmem:[#allocation2 + $0x84] sm:$0xf] %vm175_vm0, %v314_v31  ;;  %1865 = vmatpush.bf16.msra.mxu3 %v2733_v32  ;;  %v2206_v31 = vld [vmem:[%s2863_s17 + $0x14] sm:$0xf]  ;;  %v2272_v32 = vor.u32 %v2682_v29, %v2271_v28  ;;  %v2688_v29 = vld [vmem:[%s3559_s1 + $0x9c] sm:$0xf] }
  0xe4   : > { %590 = vst.msk [vmem:[#allocation2 + $0x13c] sm:$0xf] %vm175_vm0, %v582_v33 }
  0xe5   : > { %1788 = vmatmul.bf16.gmra.mxu0 %v2272_v32 }
  0xe7   : > { %719 = vrot.lane.b32.xlu1 %v2197_v34, %s2826_s24  ;;  %673 = vrot.lane.b32.xlu0 %v2194_v35, %s2824_s22 }
  0xe9   : > { %v276_v37 = vpop.permute.xlu1 %275  ;;  %v274_v38 = vpop.permute.xlu0 %273  ;;  %v2732_v39 = vld [vmem:[#allocation2 + $0xd8] sm:$0xff]  ;;  %721 = vrot.lane.b32.xlu2 %v2198_v36, %s2826_s24  ;;  %v2243_v36 = vld [vmem:[%s3559_s1 + $0x8] sm:$0xf] }
  0xea   : > { %284 = vst.msk [vmem:[#allocation2 + $0x5c] sm:$0xf] %vm175_vm0, %v276_v37  ;;  %v2721_v40 = vld [vmem:[#allocation2 + $0x80] sm:$0xff]  ;;  %1866 = vmatpush.bf16.msra.mxu3 %v2732_v39  ;;  %v576_v41 = vpop.permute.xlu2 %575  ;;  %v2186_v37 = vld [vmem:[%s2863_s17 + $0x34] sm:$0xf] }
  0xeb   : > { %283 = vst.msk [vmem:[#allocation2 + $0x58] sm:$0xf] %vm175_vm0, %v274_v38  ;;  %1840 = vmatpush.bf16.msra.mxu2 %v2721_v40  ;;  %v2674_v39 = vld [vmem:[%s3559_s1 + $0x28] sm:$0xf0]  ;;  %v2185_v40 = vld [vmem:[%s2863_s17 + $0x30] sm:$0xf] }
  0xec   : > { %587 = vst.msk [vmem:[#allocation2 + $0x130] sm:$0xf] %vm175_vm0, %v576_v41  ;;  %v2244_v41 = vor.u32 %v2674_v39, %v2243_v36  ;;  %v2684_v36 = vld [vmem:[%s3559_s1 + $0x78] sm:$0xf0] }
  0xee   : > { %1841 = vmatmul.bf16.vlgmr.msra.gmra.mxu2 %v2244_v41 }
  0xef   : > { %845 = vrot.lane.b32.xlu1 %v2212_v42, %s2826_s24  ;;  %843 = vrot.lane.b32.xlu0 %v2211_v43, %s2826_s24  ;;  %v2670_v42 = vld [vmem:[%s3559_s1 + $0xc] sm:$0xf]  ;;  %v2245_v43 = vld [vmem:[%s3559_s1 + $0x2c] sm:$0xf0] }
  0xf1   : > { %v272_v45 = vpop.permute.xlu1 %271  ;;  %v434_v46 = vpop.permute.xlu0 %433  ;;  %651 = vrot.lane.b32.xlu2 %v2191_v44, %s2824_s22  ;;  %v785_v44 = vld [vmem:[%s2863_s17 + $0x8] sm:$0xf] }
  0xf2   : > { %282 = vst.msk [vmem:[#allocation2 + $0x54] sm:$0xf] %vm175_vm0, %v272_v45  ;;  %v2716_v47 = vld [vmem:[#allocation2 + $0x58] sm:$0xff]  ;;  %v558_v48 = vpop.permute.xlu2 %557  ;;  %v2248_v45 = vor.u32 %v2670_v42, %v2245_v43  ;;  %v2225_v43 = vld [vmem:[%s2863_s17 + $0x20] sm:$0xf] }
  0xf3   : > { %444 = vst.msk [vmem:[#allocation2 + $0xd4] sm:$0xf] %vm175_vm0, %v434_v46  ;;  %1808 = vmatpush.bf16.msrb.mxu1 %v2716_v47  ;;  %v2669_v46 = vld [vmem:[%s3559_s1 + $0x4] sm:$0xf]  ;;  %v2237_v47 = vld [vmem:[%s3559_s1 + $0x24] sm:$0xf0] }
  0xf4   : > { %566 = vst.msk [vmem:[#allocation2 + $0x12c] sm:$0xf] %vm175_vm0, %v558_v48  ;;  %v2240_v48 = vor.u32 %v2669_v46, %v2237_v47  ;;  %v2226_v46 = vld [vmem:[%s2863_s17 + $0x24] sm:$0xf] }
  0xf7   : > { %699 = vrot.lane.b32.xlu1 %v689_v49, %s2826_s24  ;;  %653 = vrot.lane.b32.xlu0 %v2192_v50, %s2824_s22 }
  0xf9   : > { %v580_v52 = vpop.permute.xlu1 %579  ;;  %v414_v53 = vpop.permute.xlu0 %413  ;;  %v2715_v54 = vld [vmem:[#allocation2 + $0x50] sm:$0xff]  ;;  %701 = vrot.lane.b32.xlu2 %v690_v51, %s2826_s24 }
  0xfa   : > { %589 = vst.msk [vmem:[#allocation2 + $0x138] sm:$0xf] %vm175_vm0, %v580_v52  ;;  %v2731_v55 = vld [vmem:[#allocation2 + $0xd0] sm:$0xff]  ;;  %1809 = vmatpush.bf16.msrb.mxu1 %v2715_v54  ;;  %v786_v54 = vld [vmem:[%s2863_s17 + $0xc] sm:$0xf] }
  0xfb   : > { %422 = vst.msk [vmem:[#allocation2 + $0xcc] sm:$0xf] %vm175_vm0, %v414_v53  ;;  %v532_v56 = vpop.permute.xlu2 %531  ;;  %1867 = vmatpush.bf16.msra.mxu3 %v2731_v55  ;;  %v2231_v53 = vld [vmem:[%s2863_s17 + $0x38] sm:$0xf] }
  0xfc   : > { %541 = vst.msk [vmem:[#allocation2 + $0x118] sm:$0xf] %vm175_vm0, %v532_v56  ;;  %v2232_v56 = vld [vmem:[%s2863_s17 + $0x3c] sm:$0xf] }
  0xfe   : > { %1810 = vmatpush.bf16.msrb.mxu1 %v2714_v59 }
  0xff   : > { %841 = vrot.lane.b32.xlu1 %v2210_v57, %s2826_s24  ;;  %839 = vrot.lane.b32.xlu0 %v2209_v58, %s2826_s24 }
 0x101   : > { %v410_v0 = vpop.permute.xlu1 %409  ;;  %v408_v1 = vpop.permute.xlu0 %407  ;;  %v2744_v2 = vld [vmem:[#allocation2 + $0x138] sm:$0xff]  ;;  %647 = vrot.lane.b32.xlu2 %v2189_v60, %s2824_s22  ;;  %v2279_v60 = vld [vmem:[%s3559_s1 + $0x50] sm:$0xf] }
 0x102   : > { %420 = vst.msk [vmem:[#allocation2 + $0xc4] sm:$0xf] %vm175_vm0, %v410_v0  ;;  %v2730_v4 = vld [vmem:[#allocation2 + $0xc8] sm:$0xff]  ;;  %1891 = vmatpush.bf16.msrb.mxu0 %v2744_v2  ;;  %1811 = vmatpush.bf16.msrb.mxu1 %v2713_v3  ;;  %v2679_v2 = vld [vmem:[%s3559_s1 + $0x54] sm:$0xf] }
 0x103   : > { %419 = vst.msk [vmem:[#allocation2 + $0xc0] sm:$0xf] %vm175_vm0, %v408_v1  ;;  %v530_v6 = vpop.permute.xlu2 %529  ;;  %1868 = vmatpush.bf16.msra.mxu3 %v2730_v4  ;;  %v2183_v0 = vld [vmem:[%s2863_s17 + $0x28] sm:$0xf]  ;;  %v2280_v1 = vor.u32 %v2683_v63, %v2279_v60  ;;  %v2281_v3 = vld [vmem:[%s3559_s1 + $0x74] sm:$0xf0] }
 0x104   : > { %540 = vst.msk [vmem:[#allocation2 + $0x114] sm:$0xf] %vm175_vm0, %v530_v6  ;;  %v783_v4 = vld [vmem:[%s2863_s17] sm:$0xf]  ;;  %v2678_v6 = vld [vmem:[%s3559_s1 + $0x4c] sm:$0xf] }
 0x105   : > { %1812 = vmatmul.bf16.vlgmr.msrb.gmra.mxu1 %v2240_v48  ;;  %1846 = vmatmul.bf16.gmra.mxu2 %v2280_v1  ;;  %v2696_v60 = vld [vmem:[%s3559_s1 + $0xdc] sm:$0xf]  ;;  %v2693_v63 = vld [vmem:[%s3559_s1 + $0xc0] sm:$0xf0] }
 0x107   : > { %695 = vrot.lane.b32.xlu1 %v687_v5, %s2826_s24  ;;  %649 = vrot.lane.b32.xlu0 %v2190_v7, %s2824_s22  ;;  %v2284_v5 = vor.u32 %v2679_v2, %v2281_v3  ;;  %v2273_v7 = vld [vmem:[%s3559_s1 + $0x6c] sm:$0xf0] }
 0x109   : > { %v556_v12 = vpop.permute.xlu1 %555  ;;  %v578_v13 = vpop.permute.xlu0 %577  ;;  %697 = vrot.lane.b32.xlu2 %v688_v10, %s2826_s24  ;;  %v2276_v10 = vor.u32 %v2678_v6, %v2273_v7  ;;  %v2219_v7 = vld [vmem:[%s2863_s17 + $0x28] sm:$0xf] }
 0x10a   : > { %565 = vst.msk [vmem:[#allocation2 + $0x128] sm:$0xf] %vm175_vm0, %v556_v12  ;;  %v2729_v14 = vld [vmem:[#allocation2 + $0xc0] sm:$0xff] }
 0x10b   : > { %588 = vst.msk [vmem:[#allocation2 + $0x134] sm:$0xf] %vm175_vm0, %v578_v13  ;;  %v772_v15 = vpop.permute.xlu2 %771  ;;  %1869 = vmatpush.bf16.msra.mxu3 %v2729_v14 }
 0x10c   : > { %781 = vst.msk [vmem:[#allocation2 + $0x1b8] sm:$0xf] %vm175_vm0, %v772_v15  ;;  %v2252_v15 = vor.u32 %v2675_v9, %v2251_v8  ;;  %v2222_v8 = vld [vmem:[%s2863_s17 + $0x34] sm:$0xf]  ;;  %v2220_v9 = vld [vmem:[%s2863_s17 + $0x2c] sm:$0xf] }
 0x10e   : > { %1870 = vmatmul.bf16.vlgmr.msra.gmra.mxu3 %v2248_v45 }
 0x10f   : > { %821 = vrot.lane.b32.xlu1 %v2208_v16, %s2827_s10  ;;  %819 = vrot.lane.b32.xlu0 %v2207_v17, %s2827_s10  ;;  %v2229_v17 = vld [vmem:[%s2863_s17 + $0x30] sm:$0xf] }
 0x111   : > { %v554_v22 = vpop.permute.xlu1 %553  ;;  %v552_v23 = vpop.permute.xlu0 %551  ;;  %627 = vrot.lane.b32.xlu2 %v2187_v18, %s2822_s20  ;;  %v2742_v30 = vld [vmem:[#allocation2 + $0x128] sm:$0xff]  ;;  %v784_v18 = vld [vmem:[%s2863_s17 + $0x4] sm:$0xf] }
 0x112   : > { %564 = vst.msk [vmem:[#allocation2 + $0x124] sm:$0xf] %vm175_vm0, %v554_v22  ;;  %v2743_v24 = vld [vmem:[#allocation2 + $0x130] sm:$0xff] }
 0x113   : > { %563 = vst.msk [vmem:[#allocation2 + $0x120] sm:$0xf] %vm175_vm0, %v552_v23  ;;  %v506_v26 = vpop.permute.xlu2 %505  ;;  %1892 = vmatpush.bf16.msrb.mxu0 %v2743_v24  ;;  %v2315_v23 = vld [vmem:[%s3559_s1 + $0x98] sm:$0xf]  ;;  %v2182_v24 = vld [vmem:[%s2863_s17 + $0x24] sm:$0xf] }
 0x114   : > { %516 = vst.msk [vmem:[#allocation2 + $0x104] sm:$0xf] %vm175_vm0, %v506_v26  ;;  %v2692_v26 = vld [vmem:[%s3559_s1 + $0xb8] sm:$0xf0] }
 0x115   : > { %1817 = vmatmul.bf16.gmra.mxu1 %v2276_v10  ;;  %v2316_v28 = vor.u32 %v2692_v26, %v2315_v23 }
 0x117   : > { %815 = vrot.lane.b32.xlu1 %v2205_v25, %s2827_s10  ;;  %629 = vrot.lane.b32.xlu0 %v2188_v27, %s2822_s20  ;;  %v2181_v27 = vld [vmem:[%s2863_s17 + $0x20] sm:$0xf] }
 0x118   : > { %1893 = vmatpush.bf16.msrb.mxu0 %v2742_v30  ;;  %v2317_v30 = vld [vmem:[%s3559_s1 + $0xbc] sm:$0xf0]  ;;  %1851 = vmatmul.bf16.gmra.mxu2 %v2316_v28 }
 0x119   : > { %v528_v33 = vpop.permute.xlu1 %527  ;;  %v534_v34 = vpop.permute.xlu0 %533  ;;  %817 = vrot.lane.b32.xlu2 %v2206_v31, %s2827_s10  ;;  %v2227_v31 = vld [vmem:[%s2863_s17 + $0x28] sm:$0xf]  ;;  %v2320_v32 = vor.u32 %v2688_v29, %v2317_v30 }
 0x11a   : > { %539 = vst.msk [vmem:[#allocation2 + $0x110] sm:$0xf] %vm175_vm0, %v528_v33  ;;  %v2741_v35 = vld [vmem:[#allocation2 + $0x120] sm:$0xff]  ;;  %v2687_v33 = vld [vmem:[%s3559_s1 + $0x94] sm:$0xf] }
 0x11b   : > { %542 = vst.msk [vmem:[#allocation2 + $0x11c] sm:$0xf] %vm175_vm0, %v534_v34  ;;  %v748_v38 = vpop.permute.xlu2 %747  ;;  %v2309_v34 = vld [vmem:[%s3559_s1 + $0xb4] sm:$0xf0] }
 0x11c   : > { %1894 = vmatpush.bf16.msrb.mxu0 %v2741_v35  ;;  %757 = vst.msk [vmem:[#allocation2 + $0x1a8] sm:$0xf] %vm175_vm0, %v748_v38  ;;  %v2287_v35 = vld [vmem:[%s3559_s1 + $0x58] sm:$0xf] }
 0x11d   : > { %v2288_v41 = vor.u32 %v2684_v36, %v2287_v35 }
 0x11e   : > { %1875 = vmatmul.bf16.gmra.mxu3 %v2284_v5 }
 0x11f   : > { %625 = vrot.lane.b32.xlu1 %v2186_v37, %s2822_s20  ;;  %623 = vrot.lane.b32.xlu0 %v2185_v40, %s2822_s20  ;;  %v2312_v37 = vor.u32 %v2687_v33, %v2309_v34 }
 0x121   : > { %v510_v49 = vpop.permute.xlu1 %509  ;;  %v508_v50 = vpop.permute.xlu0 %507  ;;  %795 = vrot.lane.b32.xlu2 %v785_v44, %s2827_s10  ;;  %v2739_v55 = vld [vmem:[#allocation2 + $0x110] sm:$0xff]  ;;  %v2228_v44 = vld [vmem:[%s2863_s17 + $0x2c] sm:$0xf] }
 0x122   : > { %518 = vst.msk [vmem:[#allocation2 + $0x10c] sm:$0xf] %vm175_vm0, %v510_v49  ;;  %v2740_v51 = vld [vmem:[#allocation2 + $0x118] sm:$0xff] }
 0x123   : > { %517 = vst.msk [vmem:[#allocation2 + $0x108] sm:$0xf] %vm175_vm0, %v508_v50  ;;  %v746_v52 = vpop.permute.xlu2 %745  ;;  %1895 = vmatpush.bf16.msrb.mxu0 %v2740_v51  ;;  %v2224_v50 = vld [vmem:[%s2863_s17 + $0x3c] sm:$0xf]  ;;  %v2351_v51 = vld [vmem:[%s3559_s1 + $0xe0] sm:$0xf] }
 0x124   : > { %756 = vst.msk [vmem:[#allocation2 + $0x1a4] sm:$0xf] %vm175_vm0, %v746_v52  ;;  %v2223_v52 = vld [vmem:[%s2863_s17 + $0x38] sm:$0xf] }
 0x125   : > { %1822 = vmatmul.bf16.gmra.mxu1 %v2312_v37 }
 0x127   : > { %963 = vrot.lane.b32.xlu1 %v2231_v53, %s2827_s10  ;;  %797 = vrot.lane.b32.xlu0 %v786_v54, %s2827_s10  ;;  %v2701_v54 = vld [vmem:[%s3559_s1 + $0x100] sm:$0xf0] }
 0x128   : > { %1896 = vmatpush.bf16.msrb.mxu0 %v2739_v55  ;;  %v2352_v55 = vor.u32 %v2701_v54, %v2351_v51 }
 0x129   : > { %v504_v57 = vpop.permute.xlu1 %503  ;;  %v774_v58 = vpop.permute.xlu0 %773  ;;  %965 = vrot.lane.b32.xlu2 %v2232_v56, %s2827_s10  ;;  %v2697_v56 = vld [vmem:[%s3559_s1 + $0xe4] sm:$0xf] }
 0x12a   : > { %515 = vst.msk [vmem:[#allocation2 + $0x100] sm:$0xf] %vm175_vm0, %v504_v57  ;;  %v2738_v59 = vld [vmem:[#allocation2 + $0x108] sm:$0xff]  ;;  %1856 = vmatmul.bf16.gmra.mxu2 %v2352_v55 }
 0x12b   : > { %782 = vst.msk [vmem:[#allocation2 + $0x1bc] sm:$0xf] %vm175_vm0, %v774_v58  ;;  %v676_v62 = vpop.permute.xlu2 %675  ;;  %v2353_v57 = vld [vmem:[%s3559_s1 + $0x104] sm:$0xf0] }
 0x12c   : > { %1897 = vmatpush.bf16.msrb.mxu0 %v2738_v59  ;;  %685 = vst.msk [vmem:[#allocation2 + $0x178] sm:$0xf] %vm175_vm0, %v676_v62  ;;  %v2356_v58 = vor.u32 %v2697_v56, %v2353_v57  ;;  %v2221_v59 = vld [vmem:[%s2863_s17 + $0x30] sm:$0xf]  ;;  %v2323_v62 = vld [vmem:[%s3559_s1 + $0xa0] sm:$0xf] }
 0x12d   : > { %v2324_v5 = vor.u32 %v2693_v63, %v2323_v62 }
 0x12e   : > { %1880 = vmatmul.bf16.gmra.mxu3 %v2320_v32 }
 0x12f   : > { %605 = vrot.lane.b32.xlu1 %v2184_v61, %s2822_s20  ;;  %603 = vrot.lane.b32.xlu0 %v2183_v0, %s2822_s20  ;;  %v2345_v61 = vld [vmem:[%s3559_s1 + $0xfc] sm:$0xf0] }
 0x130   : > { %v2348_v0 = vor.u32 %v2696_v60, %v2345_v61 }
 0x131   : > { %v770_v11 = vpop.permute.xlu1 %769  ;;  %v768_v12 = vpop.permute.xlu0 %767  ;;  %v2737_v13 = vld [vmem:[#allocation2 + $0x100] sm:$0xff]  ;;  %791 = vrot.lane.b32.xlu2 %v783_v4, %s2827_s10 }
 0x132   : > { %780 = vst.msk [vmem:[#allocation2 + $0x1b4] sm:$0xf] %vm175_vm0, %v770_v11  ;;  %v2760_v14 = vld [vmem:[#allocation2 + $0x1b8] sm:$0xff]  ;;  %1898 = vmatpush.bf16.msrb.mxu0 %v2737_v13 }
 0x133   : > { %779 = vst.msk [vmem:[#allocation2 + $0x1b0] sm:$0xf] %vm175_vm0, %v768_v12  ;;  %v726_v16 = vpop.permute.xlu2 %725  ;;  %1949 = vmatpush.bf16.msrb.mxu2 %v2760_v14  ;;  %v2218_v14 = vld [vmem:[%s2863_s17 + $0x24] sm:$0xf] }
 0x134   : > { %734 = vst.msk [vmem:[#allocation2 + $0x19c] sm:$0xf] %vm175_vm0, %v726_v16  ;;  %v2359_v16 = vld [vmem:[%s3559_s1 + $0xe8] sm:$0xf] }
 0x135   : > { %1899 = vmatmul.bf16.vlgmr.msrb.gmra.mxu0 %v2252_v15  ;;  %1827 = vmatmul.bf16.gmra.mxu1 %v2348_v0  ;;  %v2217_v15 = vld [vmem:[%s2863_s17 + $0x20] sm:$0xf] }
 0x136   : > { %v2295_v0 = vld [vmem:[%s3559_s1 + $0x60] sm:$0xf] }
 0x137   : > { %959 = vrot.lane.b32.xlu1 %v2229_v17, %s2827_s10  ;;  %793 = vrot.lane.b32.xlu0 %v784_v18, %s2827_s10  ;;  %v2702_v17 = vld [vmem:[%s3559_s1 + $0x108] sm:$0xf0] }
 0x138   : > { %v3372_v37 = vpop.f32.mrf.mxu1 }
 0x139   : > { %v744_v20 = vpop.permute.xlu1 %743  ;;  %v750_v21 = vpop.permute.xlu0 %749  ;;  %961 = vrot.lane.b32.xlu2 %v2230_v19, %s2827_s10 }
 0x13a   : > { %755 = vst.msk [vmem:[#allocation2 + $0x1a0] sm:$0xf] %vm175_vm0, %v744_v20  ;;  %v2759_v22 = vld [vmem:[#allocation2 + $0x1b0] sm:$0xff] }
 0x13b   : > { %758 = vst.msk [vmem:[#allocation2 + $0x1ac] sm:$0xf] %vm175_vm0, %v750_v21  ;;  %v672_v25 = vpop.permute.xlu2 %671  ;;  %1950 = vmatpush.bf16.msrb.mxu2 %v2759_v22  ;;  %v2360_v22 = vor.u32 %v2702_v17, %v2359_v16 }
 0x13c   : > { %683 = vst.msk [vmem:[#allocation2 + $0x170] sm:$0xf] %vm175_vm0, %v672_v25 }
 0x13e   : > { %1885 = vmatmul.bf16.gmra.mxu3 %v2356_v58 }
 0x13f   : > { %601 = vrot.lane.b32.xlu1 %v2182_v24, %s2822_s20  ;;  %599 = vrot.lane.b32.xlu0 %v2181_v27, %s2822_s20 }
 0x141   : > { %v870_v38 = vpop.permute.xlu1 %869  ;;  %v868_v39 = vpop.permute.xlu0 %867  ;;  %939 = vrot.lane.b32.xlu2 %v2227_v31, %s2827_s10  ;;  %v2757_v45 = vld [vmem:[#allocation2 + $0x1a0] sm:$0xff] }
 0x142   : > { %878 = vst.msk [vmem:[#allocation2 + $0x1fc] sm:$0xf] %vm175_vm0, %v870_v38  ;;  %v2758_v40 = vld [vmem:[#allocation2 + $0x1a8] sm:$0xff] }
 0x143   : > { %877 = vst.msk [vmem:[#allocation2 + $0x1f8] sm:$0xf] %vm175_vm0, %v868_v39  ;;  %v722_v42 = vpop.permute.xlu2 %721  ;;  %1951 = vmatpush.bf16.msrb.mxu2 %v2758_v40 }
 0x144   : > { %732 = vst.msk [vmem:[#allocation2 + $0x194] sm:$0xf] %vm175_vm0, %v722_v42 }
 0x145   : > { %1904 = vmatmul.bf16.gmra.mxu0 %v2288_v41 }
 0x147   : > { %935 = vrot.lane.b32.xlu1 %v2225_v43, %s2827_s10  ;;  %941 = vrot.lane.b32.xlu0 %v2228_v44, %s2827_s10  ;;  %v3377_v43 = vpop.f32.mrf.mxu1 }
 0x148   : > { %1952 = vmatpush.bf16.msrb.mxu2 %v2757_v45 }
 0x149   : > { %v724_v47 = vpop.permute.xlu1 %723  ;;  %v678_v48 = vpop.permute.xlu0 %677  ;;  %937 = vrot.lane.b32.xlu2 %v2226_v46, %s2827_s10 }
 0x14a   : > { %733 = vst.msk [vmem:[#allocation2 + $0x198] sm:$0xf] %vm175_vm0, %v724_v47  ;;  %v2768_v49 = vld [vmem:[#allocation2 + $0x1f8] sm:$0xff] }
 0x14b   : > { %686 = vst.msk [vmem:[#allocation2 + $0x17c] sm:$0xf] %vm175_vm0, %v678_v48  ;;  %v652_v53 = vpop.permute.xlu2 %651  ;;  %1978 = vmatpush.bf16.msrb.mxu3 %v2768_v49  ;;  %v2259_v49 = vld [vmem:[%s3559_s1 + $0x18] sm:$0xf] }
 0x14c   : > { %661 = vst.msk [vmem:[#allocation2 + $0x168] sm:$0xf] %vm175_vm0, %v652_v53 }
 0x14f   : > { %917 = vrot.lane.b32.xlu1 %v2224_v50, %s2825_s23  ;;  %915 = vrot.lane.b32.xlu0 %v2223_v52, %s2825_s23  ;;  %v3380_v47 = vpop.f32.mrf.mxu0  ;;  %v2676_v50 = vld [vmem:[%s3559_s1 + $0x38] sm:$0xf0] }
 0x150   : > { %v2260_v51 = vor.u32 %v2676_v50, %v2259_v49 }
 0x151   : > { %v866_v1 = vpop.permute.xlu1 %865  ;;  %v864_v2 = vpop.permute.xlu0 %863  ;;  %v2756_v3 = vld [vmem:[#allocation2 + $0x198] sm:$0xff]  ;;  %911 = vrot.lane.b32.xlu2 %v2221_v59, %s2825_s23 }
 0x152   : > { %876 = vst.msk [vmem:[#allocation2 + $0x1f4] sm:$0xf] %vm175_vm0, %v866_v1  ;;  %v2752_v4 = vld [vmem:[#allocation2 + $0x178] sm:$0xff]  ;;  %1953 = vmatpush.bf16.msrb.mxu2 %v2756_v3  ;;  %v2685_v1 = vld [vmem:[%s3559_s1 + $0x80] sm:$0xf0] }
 0x153   : > { %875 = vst.msk [vmem:[#allocation2 + $0x1f0] sm:$0xf] %vm175_vm0, %v864_v2  ;;  %v702_v6 = vpop.permute.xlu2 %701  ;;  %1920 = vmatpush.bf16.msra.mxu1 %v2752_v4  ;;  %v2296_v2 = vor.u32 %v2685_v1, %v2295_v0 }
 0x154   : > { %710 = vst.msk [vmem:[#allocation2 + $0x18c] sm:$0xf] %vm175_vm0, %v702_v6 }
 0x155   : > { %1909 = vmatmul.bf16.gmra.mxu0 %v2324_v5 }
 0x157   : > { %891 = vrot.lane.b32.xlu1 %v2219_v7, %s2825_s23  ;;  %913 = vrot.lane.b32.xlu0 %v2222_v8, %s2825_s23  ;;  %v3395_v58 = vpop.f32.mrf.mxu0 }
 0x158   : > { %v3390_v52 = vpop.f32.mrf.mxu1 }
 0x159   : > { %v720_v10 = vpop.permute.xlu1 %719  ;;  %v674_v11 = vpop.permute.xlu0 %673  ;;  %893 = vrot.lane.b32.xlu2 %v2220_v9, %s2825_s23 }
 0x15a   : > { %731 = vst.msk [vmem:[#allocation2 + $0x190] sm:$0xf] %vm175_vm0, %v720_v10  ;;  %v2767_v12 = vld [vmem:[#allocation2 + $0x1f0] sm:$0xff] }
 0x15b   : > { %684 = vst.msk [vmem:[#allocation2 + $0x174] sm:$0xf] %vm175_vm0, %v674_v11  ;;  %v648_v13 = vpop.permute.xlu2 %647  ;;  %1979 = vmatpush.bf16.msrb.mxu3 %v2767_v12 }
 0x15c   : > { %659 = vst.msk [vmem:[#allocation2 + $0x160] sm:$0xf] %vm175_vm0, %v648_v13 }
 0x15f   : > { %889 = vrot.lane.b32.xlu1 %v2218_v14, %s2825_s23  ;;  %887 = vrot.lane.b32.xlu0 %v2217_v15, %s2825_s23 }
 0x160   : > { %v3397_v59 = vpop.f32.mrf.mxu1 }
 0x161   : > { %v846_v18 = vpop.permute.xlu1 %845  ;;  %v844_v19 = vpop.permute.xlu0 %843  ;;  %v2755_v20 = vld [vmem:[#allocation2 + $0x190] sm:$0xff] }
 0x162   : > { %854 = vst.msk [vmem:[#allocation2 + $0x1ec] sm:$0xf] %vm175_vm0, %v846_v18  ;;  %v2751_v21 = vld [vmem:[#allocation2 + $0x170] sm:$0xff]  ;;  %1954 = vmatpush.bf16.msrb.mxu2 %v2755_v20  ;;  %v3408_v3 = vpop.f32.mrf.mxu0  ;;  %v2331_v20 = vld [vmem:[%s3559_s1 + $0xa8] sm:$0xf] }
 0x163   : > { %853 = vst.msk [vmem:[#allocation2 + $0x1e8] sm:$0xf] %vm175_vm0, %v844_v19  ;;  %v698_v23 = vpop.permute.xlu2 %697  ;;  %1921 = vmatpush.bf16.msra.mxu1 %v2751_v21  ;;  %v2694_v21 = vld [vmem:[%s3559_s1 + $0xc8] sm:$0xf0] }
 0x164   : > { %708 = vst.msk [vmem:[#allocation2 + $0x184] sm:$0xf] %vm175_vm0, %v698_v23 }
 0x165   : > { %1914 = vmatmul.bf16.gmra.mxu0 %v2360_v22  ;;  %v2332_v22 = vor.u32 %v2694_v21, %v2331_v20 }
 0x169   : > { %v700_v24 = vpop.permute.xlu1 %699  ;;  %v654_v25 = vpop.permute.xlu0 %653 }
 0x16a   : > { %709 = vst.msk [vmem:[#allocation2 + $0x188] sm:$0xf] %vm175_vm0, %v700_v24  ;;  %v2766_v26 = vld [vmem:[#allocation2 + $0x1e8] sm:$0xff]  ;;  %v1791_v13 = vpop.f32.mrf.mxu0  ;;  %v2672_v24 = vld [vmem:[%s3559_s1 + $0x1c] sm:$0xf] }
 0x16b   : > { %662 = vst.msk [vmem:[#allocation2 + $0x16c] sm:$0xf] %vm175_vm0, %v654_v25  ;;  %v628_v27 = vpop.permute.xlu2 %627  ;;  %1980 = vmatpush.bf16.msrb.mxu3 %v2766_v26  ;;  %v2261_v25 = vld [vmem:[%s3559_s1 + $0x3c] sm:$0xf0] }
 0x16c   : > { %637 = vst.msk [vmem:[#allocation2 + $0x158] sm:$0xf] %vm175_vm0, %v628_v27 }
 0x171   : > { %v842_v28 = vpop.permute.xlu1 %841  ;;  %v840_v29 = vpop.permute.xlu0 %839  ;;  %v2754_v30 = vld [vmem:[#allocation2 + $0x188] sm:$0xff] }
 0x172   : > { %852 = vst.msk [vmem:[#allocation2 + $0x1e4] sm:$0xf] %vm175_vm0, %v842_v28  ;;  %v2750_v31 = vld [vmem:[#allocation2 + $0x168] sm:$0xff]  ;;  %1955 = vmatpush.bf16.msrb.mxu2 %v2754_v30  ;;  %v1842_v9 = vpop.f32.mrf.mxu2 }
 0x173   : > { %851 = vst.msk [vmem:[#allocation2 + $0x1e0] sm:$0xf] %vm175_vm0, %v840_v29  ;;  %v818_v32 = vpop.permute.xlu2 %817  ;;  %1922 = vmatpush.bf16.msra.mxu1 %v2750_v31  ;;  %v2264_v31 = vor.u32 %v2672_v24, %v2261_v25 }
 0x174   : > { %828 = vst.msk [vmem:[#allocation2 + $0x1d4] sm:$0xf] %vm175_vm0, %v818_v32 }
 0x179   : > { %v696_v33 = vpop.permute.xlu1 %695  ;;  %v650_v34 = vpop.permute.xlu0 %649 }
 0x17a   : > { %707 = vst.msk [vmem:[#allocation2 + $0x180] sm:$0xf] %vm175_vm0, %v696_v33  ;;  %v2765_v35 = vld [vmem:[#allocation2 + $0x1e0] sm:$0xff]  ;;  %v1844_v17 = vpop.f32.mrf.mxu2 }
 0x17b   : > { %660 = vst.msk [vmem:[#allocation2 + $0x164] sm:$0xf] %vm175_vm0, %v650_v34  ;;  %v796_v36 = vpop.permute.xlu2 %795  ;;  %1981 = vmatpush.bf16.msrb.mxu3 %v2765_v35 }
 0x17c   : > { %805 = vst.msk [vmem:[#allocation2 + $0x1c8] sm:$0xf] %vm175_vm0, %v796_v36 }
 0x181   : > { %v822_v38 = vpop.permute.xlu1 %821  ;;  %v820_v39 = vpop.permute.xlu0 %819  ;;  %v2753_v40 = vld [vmem:[#allocation2 + $0x180] sm:$0xff] }
 0x182   : > { %830 = vst.msk [vmem:[#allocation2 + $0x1dc] sm:$0xf] %vm175_vm0, %v822_v38  ;;  %v2749_v41 = vld [vmem:[#allocation2 + $0x160] sm:$0xff]  ;;  %1956 = vmatpush.bf16.msrb.mxu2 %v2753_v40  ;;  %v1813_v4 = vpop.f32.mrf.mxu1  ;;  %v2671_v40 = vld [vmem:[%s3559_s1 + $0x14] sm:$0xf] }
 0x183   : > { %829 = vst.msk [vmem:[#allocation2 + $0x1d8] sm:$0xf] %vm175_vm0, %v820_v39  ;;  %v966_v42 = vpop.permute.xlu2 %965  ;;  %1923 = vmatpush.bf16.msra.mxu1 %v2749_v41  ;;  %v1814_v33 = vadd.f32 %v1813_v4, %v3380_v47  ;;  %v2253_v41 = vld [vmem:[%s3559_s1 + $0x34] sm:$0xf0] }
 0x184   : > { %974 = vst.msk [vmem:[#allocation2 + $0x23c] sm:$0xf] %vm175_vm0, %v966_v42  ;;  %v2256_v49 = vor.u32 %v2671_v40, %v2253_v41  ;;  %v2689_v40 = vld [vmem:[%s3559_s1 + $0xa4] sm:$0xf] }
 0x185   : > { %1957 = vmatmul.bf16.vlgmr.msrb.gmra.mxu2 %v2260_v51  ;;  %v1843_v36 = vadd.f32 %v1842_v9, %v1814_v33 }
 0x188   : > { %v1847_v30 = vpop.f32.mrf.mxu2 }
 0x189   : > { %v816_v44 = vpop.permute.xlu1 %815  ;;  %v630_v45 = vpop.permute.xlu0 %629 }
 0x18a   : > { %827 = vst.msk [vmem:[#allocation2 + $0x1d0] sm:$0xf] %vm175_vm0, %v816_v44  ;;  %v2764_v46 = vld [vmem:[#allocation2 + $0x1d8] sm:$0xff]  ;;  %v1815_v12 = vpop.f32.mrf.mxu1 }
 0x18b   : > { %638 = vst.msk [vmem:[#allocation2 + $0x15c] sm:$0xf] %vm175_vm0, %v630_v45  ;;  %v792_v48 = vpop.permute.xlu2 %791  ;;  %1982 = vmatpush.bf16.msrb.mxu3 %v2764_v46  ;;  %v1816_v42 = vadd.f32 %v1815_v12, %v3395_v58 }
 0x18c   : > { %803 = vst.msk [vmem:[#allocation2 + $0x1c0] sm:$0xf] %vm175_vm0, %v792_v48 }
 0x18d   : > { %v1845_v51 = vadd.f32 %v1844_v17, %v1816_v42  ;;  %v2680_v17 = vld [vmem:[%s3559_s1 + $0x5c] sm:$0xf]  ;;  %v2325_v42 = vld [vmem:[%s3559_s1 + $0xc4] sm:$0xf0] }
 0x190   : > { %v1849_v48 = vpop.f32.mrf.mxu2 }
 0x191   : > { %v626_v53 = vpop.permute.xlu1 %625  ;;  %v624_v54 = vpop.permute.xlu0 %623  ;;  %v2763_v55 = vld [vmem:[#allocation2 + $0x1d0] sm:$0xff] }
 0x192   : > { %636 = vst.msk [vmem:[#allocation2 + $0x154] sm:$0xf] %vm175_vm0, %v626_v53  ;;  %v2748_v56 = vld [vmem:[#allocation2 + $0x158] sm:$0xff]  ;;  %1983 = vmatpush.bf16.msrb.mxu3 %v2763_v55  ;;  %v1871_v11 = vpop.f32.mrf.mxu3  ;;  %v1818_v23 = vpop.f32.mrf.mxu1  ;;  %v2367_v53 = vld [vmem:[%s3559_s1 + $0xf0] sm:$0xf] }
 0x193   : > { %635 = vst.msk [vmem:[#allocation2 + $0x150] sm:$0xf] %vm175_vm0, %v624_v54  ;;  %v962_v57 = vpop.permute.xlu2 %961  ;;  %1924 = vmatpush.bf16.msra.mxu1 %v2748_v56  ;;  %v1872_v39 = vadd.f32 %v1871_v11, %v1843_v36  ;;  %v2703_v55 = vld [vmem:[%s3559_s1 + $0x110] sm:$0xf0] }
 0x194   : > { %972 = vst.msk [vmem:[#allocation2 + $0x234] sm:$0xf] %vm175_vm0, %v962_v57  ;;  %v2368_v57 = vor.u32 %v2703_v55, %v2367_v53  ;;  %v2043_v55 = vld [vmem:[%s3560_s2 + $0x8] sm:$0xff] }
 0x195   : > { %1962 = vmatmul.bf16.gmra.mxu2 %v2296_v2 }
 0x199   : > { %v964_v60 = vpop.permute.xlu1 %963  ;;  %v798_v61 = vpop.permute.xlu0 %797 }
 0x19a   : > { %973 = vst.msk [vmem:[#allocation2 + $0x238] sm:$0xf] %vm175_vm0, %v964_v60  ;;  %v2747_v62 = vld [vmem:[#allocation2 + $0x150] sm:$0xff]  ;;  %v1873_v19 = vpop.f32.mrf.mxu3  ;;  %v1820_v38 = vpop.f32.mrf.mxu1  ;;  %v1819_v60 = vadd.f32 %v1818_v23, %v3408_v3 }
 0x19b   : > { %806 = vst.msk [vmem:[#allocation2 + $0x1cc] sm:$0xf] %vm175_vm0, %v798_v61  ;;  %v940_v63 = vpop.permute.xlu2 %939  ;;  %1925 = vmatpush.bf16.msra.mxu1 %v2747_v62  ;;  %v1874_v56 = vadd.f32 %v1873_v19, %v1845_v51  ;;  %v1821_v61 = vadd.f32 %v1820_v38, %v1791_v13  ;;  %v2681_v62 = vld [vmem:[%s3559_s1 + $0x64] sm:$0xf]  ;;  %v1852_v3 = vpop.f32.mrf.mxu2 }
 0x19c   : > { %949 = vst.msk [vmem:[#allocation2 + $0x228] sm:$0xf] %vm175_vm0, %v940_v63  ;;  %v2297_v63 = vld [vmem:[%s3559_s1 + $0x84] sm:$0xf0]  ;;  %v1848_v4 = vadd.f32 %v1847_v30, %v1819_v60  ;;  %v2690_v30 = vld [vmem:[%s3559_s1 + $0xac] sm:$0xf] }
 0x19d   : > { %v2828_v60 = vmov 0  }
 0x19e   : > { %2811 = vset.pattern.permute.xlu0 %v2828_v60  ;;  %2810 = vset.pattern.permute.xlu2 %v2828_v60 }
 0x19f   : > { %2051 = vperm.xlu0 %2811, %v2043_v55  }
 0x1a1   : > { %v606_v5 = vpop.permute.xlu1 %605  ;;  %v604_v6 = vpop.permute.xlu0 %603  ;;  %v2776_v7 = vld [vmem:[#allocation2 + $0x238] sm:$0xff] }
 0x1a2   : > { %614 = vst.msk [vmem:[#allocation2 + $0x14c] sm:$0xf] %vm175_vm0, %v606_v5  ;;  %v2762_v8 = vld [vmem:[#allocation2 + $0x1c8] sm:$0xff]  ;;  %2007 = vmatpush.bf16.msra.mxu0 %v2776_v7  ;;  %2785 = vmatpush.bf16.msra.mxu2 %v2776_v7  ;;  %v1876_v35 = vpop.f32.mrf.mxu3  ;;  %v1823_v58 = vpop.f32.mrf.mxu1  ;;  %v1850_v5 = vadd.f32 %v1849_v48, %v1821_v61  ;;  %v2300_v7 = vor.u32 %v2681_v62, %v2297_v63  ;;  %v2361_v63 = vld [vmem:[%s3559_s1 + $0x10c] sm:$0xf0] }
 0x1a3   : > { %613 = vst.msk [vmem:[#allocation2 + $0x148] sm:$0xf] %vm175_vm0, %v604_v6  ;;  %v938_v10 = vpop.permute.xlu2 %937  ;;  %1984 = vmatpush.bf16.msrb.mxu3 %v2762_v8  ;;  %v1877_v8 = vadd.f32 %v1876_v35, %v1848_v4  ;;  %v1854_v23 = vpop.f32.mrf.mxu2  ;;  %v2698_v62 = vld [vmem:[%s3559_s1 + $0xec] sm:$0xf] }
 0x1a4   : > { %948 = vst.msk [vmem:[#allocation2 + $0x224] sm:$0xf] %vm175_vm0, %v938_v10  ;;  %v2364_v4 = vor.u32 %v2698_v62, %v2361_v63 }
 0x1a5   : > { %1967 = vmatmul.bf16.gmra.mxu2 %v2332_v22 }
 0x1a9   : > { %v960_v14 = vpop.permute.xlu1 %959  ;;  %v794_v15 = vpop.permute.xlu0 %793 }
 0x1aa   : > { %971 = vst.msk [vmem:[#allocation2 + $0x230] sm:$0xf] %vm175_vm0, %v960_v14  ;;  %v2746_v16 = vld [vmem:[#allocation2 + $0x148] sm:$0xff]  ;;  %v1878_v54 = vpop.f32.mrf.mxu3  ;;  %v1825_v13 = vpop.f32.mrf.mxu1 }
 0x1ab   : > { %804 = vst.msk [vmem:[#allocation2 + $0x1c4] sm:$0xf] %vm175_vm0, %v794_v15  ;;  %v912_v18 = vpop.permute.xlu2 %911  ;;  %1926 = vmatpush.bf16.msra.mxu1 %v2746_v16  ;;  %v1879_v14 = vadd.f32 %v1878_v54, %v1850_v5  ;;  %v1824_v15 = vadd.f32 %v1823_v58, %v3372_v37  ;;  %v1826_v16 = vadd.f32 %v1825_v13, %v3377_v43  ;;  %v2369_v58 = vld [vmem:[%s3559_s1 + $0x114] sm:$0xf0] }
 0x1ac   : > { %923 = vst.msk [vmem:[#allocation2 + $0x210] sm:$0xf] %vm175_vm0, %v912_v18  ;;  %v2289_v18 = vld [vmem:[%s3559_s1 + $0x7c] sm:$0xf0] }
 0x1ad   : > { %v1853_v21 = vadd.f32 %v1852_v3, %v1824_v15  ;;  %v2292_v37 = vor.u32 %v2680_v17, %v2289_v18  ;;  %v1855_v24 = vadd.f32 %v1854_v23, %v1826_v16  ;;  %v3487_v35 = vpop.f32.mrf.mxu2  ;;  %v2695_v3 = vld [vmem:[%s3559_s1 + $0xd0] sm:$0xf0] }
 0x1b1   : > { %v602_v26 = vpop.permute.xlu1 %601  ;;  %v600_v27 = vpop.permute.xlu0 %599  ;;  %v2775_v28 = vld [vmem:[#allocation2 + $0x230] sm:$0xff] }
 0x1b2   : > { %612 = vst.msk [vmem:[#allocation2 + $0x144] sm:$0xf] %vm175_vm0, %v602_v26  ;;  %v2761_v29 = vld [vmem:[#allocation2 + $0x1c0] sm:$0xff]  ;;  %2008 = vmatpush.bf16.msra.mxu0 %v2775_v28  ;;  %2786 = vmatpush.bf16.msra.mxu2 %v2775_v28  ;;  %v1900_v34 = vpop.f32.mrf.mxu0  ;;  %v1881_v10 = vpop.f32.mrf.mxu3 }
 0x1b3   : > { %611 = vst.msk [vmem:[#allocation2 + $0x140] sm:$0xf] %vm175_vm0, %v600_v27  ;;  %v894_v32 = vpop.permute.xlu2 %893  ;;  %1985 = vmatpush.bf16.msrb.mxu3 %v2761_v29  ;;  %v3439_v46 = vadd.f32 %v1900_v34, %v1872_v39  ;;  %v3472_v43 = vadd.f32 %v1881_v10, %v1853_v21  ;;  %v3476_v28 = vpop.f32.mrf.mxu1 }
 0x1b4   : > { %902 = vst.msk [vmem:[#allocation2 + $0x20c] sm:$0xf] %vm175_vm0, %v894_v32 }
 0x1b5   : > { %1972 = vmatmul.bf16.gmra.mxu2 %v2368_v57  ;;  %v2699_v57 = vld [vmem:[%s3559_s1 + $0xf4] sm:$0xf] }
 0x1b6   : > { %1986 = vmatmul.bf16.vlgmr.msrb.gmra.mxu3 %v2264_v31  ;;  %v2333_v31 = vld [vmem:[%s3559_s1 + $0xcc] sm:$0xf0]  ;;  %v2372_v61 = vor.u32 %v2699_v57, %v2369_v58 }
 0x1b7   : > { %v2336_v36 = vor.u32 %v2690_v30, %v2333_v31 }
 0x1b9   : > { %v936_v44 = vpop.permute.xlu1 %935  ;;  %v942_v45 = vpop.permute.xlu0 %941 }
 0x1ba   : > { %947 = vst.msk [vmem:[#allocation2 + $0x220] sm:$0xf] %vm175_vm0, %v936_v44  ;;  %v2745_v47 = vld [vmem:[#allocation2 + $0x140] sm:$0xff]  ;;  %v1902_v50 = vpop.f32.mrf.mxu0  ;;  %v1883_v25 = vpop.f32.mrf.mxu3 }
 0x1bb   : > { %950 = vst.msk [vmem:[#allocation2 + $0x22c] sm:$0xf] %vm175_vm0, %v942_v45  ;;  %1927 = vmatpush.bf16.msra.mxu1 %v2745_v47  ;;  %v3456_v0 = vadd.f32 %v1902_v50, %v1874_v56  ;;  %v3474_v26 = vadd.f32 %v1883_v25, %v1855_v24  ;;  %v1830_v39 = vpop.f32.mrf.mxu1  ;;  %v2267_v44 = vld [vmem:[%s3559_s1 + $0x20] sm:$0xf]  ;;  %v2677_v45 = vld [vmem:[%s3559_s1 + $0x40] sm:$0xf0]  ;;  %v2328_v50 = vor.u32 %v2689_v40, %v2325_v42 }
 0x1bc   : > { %v1831_v41 = vadd.f32 %v1830_v39, %v3397_v59  ;;  %v2375_v47 = vld [vmem:[%s3559_s1 + $0xf8] sm:$0xf]  ;;  %v2704_v59 = vld [vmem:[%s3559_s1 + $0x118] sm:$0xf0]  ;;  %v2268_v51 = vor.u32 %v2677_v45, %v2267_v44  ;;  %v2042_v56 = vld [vmem:[%s3560_s2] sm:$0xff] }
 0x1bd   : > { %v2376_v54 = vor.u32 %v2704_v59, %v2375_v47  ;;  %2046 = vperm.xlu2 %2810, %v2042_v56  }
 0x1be   : > { %1928 = vmatmul.bf16.vlgmr.msra.gmra.mxu1 %v2256_v49  ;;  %v1859_v49 = vpop.f32.mrf.mxu2 }
 0x1bf   : > { %v3509_v53 = vadd.f32 %v1859_v49, %v1831_v41 }
 0x1c1   : > { %v918_v1 = vpop.permute.xlu1 %917  ;;  %v916_v2 = vpop.permute.xlu0 %915  ;;  %v2773_v12 = vld [vmem:[#allocation2 + $0x220] sm:$0xff] }
 0x1c2   : > { %926 = vst.msk [vmem:[#allocation2 + $0x21c] sm:$0xf] %vm175_vm0, %v918_v1  ;;  %v2774_v6 = vld [vmem:[#allocation2 + $0x228] sm:$0xff]  ;;  %v1905_v9 = vpop.f32.mrf.mxu0 }
 0x1c3   : > { %925 = vst.msk [vmem:[#allocation2 + $0x218] sm:$0xf] %vm175_vm0, %v916_v2  ;;  %2009 = vmatpush.bf16.msra.mxu0 %v2774_v6  ;;  %2787 = vmatpush.bf16.msra.mxu2 %v2774_v6  ;;  %v3460_v11 = vadd.f32 %v1905_v9, %v1877_v8  ;;  %v2303_v1 = vld [vmem:[%s3559_s1 + $0x68] sm:$0xf]  ;;  %v2686_v2 = vld [vmem:[%s3559_s1 + $0x88] sm:$0xf0]  ;;  %v1886_v9 = vpop.f32.mrf.mxu3 }
 0x1c4   : > { %v2304_v5 = vor.u32 %v2686_v2, %v2303_v1  ;;  %v2339_v6 = vld [vmem:[%s3559_s1 + $0xb0] sm:$0xf] }
 0x1c6   : > { %1991 = vmatmul.bf16.gmra.mxu3 %v2300_v7  ;;  %v2340_v7 = vor.u32 %v2695_v3, %v2339_v6 }
 0x1c7   : > { %2010 = vmatpush.bf16.msra.mxu0 %v2773_v12  ;;  %2788 = vmatpush.bf16.msra.mxu2 %v2773_v12 }
 0x1c9   : > { %v892_v19 = vpop.permute.xlu1 %891  ;;  %v914_v20 = vpop.permute.xlu0 %913 }
 0x1ca   : > { %901 = vst.msk [vmem:[#allocation2 + $0x208] sm:$0xf] %vm175_vm0, %v892_v19  ;;  %v2772_v22 = vld [vmem:[#allocation2 + $0x218] sm:$0xff]  ;;  %v1907_v27 = vpop.f32.mrf.mxu0 }
 0x1cb   : > { %924 = vst.msk [vmem:[#allocation2 + $0x214] sm:$0xf] %vm175_vm0, %v914_v20  ;;  %2011 = vmatpush.bf16.msra.mxu0 %v2772_v22  ;;  %2789 = vmatpush.bf16.msra.mxu2 %v2772_v22  ;;  %v3478_v29 = vadd.f32 %v1907_v27, %v1879_v14  ;;  %v1888_v12 = vpop.f32.mrf.mxu3 }
 0x1ce   : > { %1933 = vmatmul.bf16.gmra.mxu1 %v2292_v37 }
 0x1d1   : > { %v890_v32 = vpop.permute.xlu1 %889  ;;  %v888_v33 = vpop.permute.xlu0 %887  ;;  %v2770_v38 = vld [vmem:[#allocation2 + $0x208] sm:$0xff] }
 0x1d2   : > { %900 = vst.msk [vmem:[#allocation2 + $0x204] sm:$0xf] %vm175_vm0, %v890_v32  ;;  %v2771_v34 = vld [vmem:[#allocation2 + $0x210] sm:$0xff]  ;;  %v1910_v13 = vpop.f32.mrf.mxu0 }
 0x1d3   : > { %899 = vst.msk [vmem:[#allocation2 + $0x200] sm:$0xf] %vm175_vm0, %v888_v33  ;;  %2012 = vmatpush.bf16.msra.mxu0 %v2771_v34  ;;  %2790 = vmatpush.bf16.msra.mxu2 %v2771_v34  ;;  %v1829_v34 = vadd.f32 %v3476_v28, %v3390_v52 }
 0x1d5   : > { %v1858_v42 = vadd.f32 %v3487_v35, %v1829_v34  ;;  %v1911_v35 = vadd.f32 %v1910_v13, %v3472_v43 }
 0x1d6   : > { %1996 = vmatmul.bf16.gmra.mxu3 %v2336_v36 }
 0x1d7   : > { %2013 = vmatpush.bf16.msra.mxu0 %v2770_v38  ;;  %2791 = vmatpush.bf16.msra.mxu2 %v2770_v38  ;;  %v1887_v47 = vadd.f32 %v1886_v9, %v1858_v42 }
 0x1da   : > { %v2769_v48 = vld [vmem:[#allocation2 + $0x200] sm:$0xff]  ;;  %v1912_v17 = vpop.f32.mrf.mxu0 }
 0x1db   : > { %2014 = vmatpush.bf16.msra.mxu0 %v2769_v48  ;;  %2792 = vmatpush.bf16.msra.mxu2 %v2769_v48 }
 0x1de   : > { %1938 = vmatmul.bf16.gmra.mxu1 %v2328_v50  ;;  %2015 = vmatmul.bf16.vlgmr.msra.gmra.mxu0 %v2268_v51 }
 0x1df   : > { %2030 = vmatmul.bf16.vlgmr.msra.gmra.mxu2 %v2376_v54 }
 0x1e2   : > { %v1915_v21 = vpop.f32.mrf.mxu0 }
 0x1e3   : > { %v1916_v55 = vadd.f32 %v1915_v21, %v1887_v47 }
 0x1e6   : > { %2001 = vmatmul.bf16.gmra.mxu3 %v2372_v61  ;;  %v1889_v61 = vadd.f32 %v1888_v12, %v3509_v53 }
 0x1ea   : > { %v1917_v24 = vpop.f32.mrf.mxu0 }
 0x1eb   : > { %v1918_v3 = vadd.f32 %v1917_v24, %v1889_v61 }
 0x1ee   : > { %1943 = vmatmul.bf16.gmra.mxu1 %v2364_v4  ;;  %2020 = vmatmul.bf16.gmra.mxu0 %v2304_v5 }
 0x1fe   : > { %2025 = vmatmul.bf16.gmra.mxu0 %v2340_v7 }
 0x208   : > { %v1958_v8 = vpop.f32.mrf.mxu2 }
 0x210   : > { %v1960_v10 = vpop.f32.mrf.mxu2 }
 0x218   : > { %v1963_v15 = vpop.f32.mrf.mxu2 }
 0x220   : > { %v1965_v20 = vpop.f32.mrf.mxu2 }
 0x228   : > { %v1968_v37 = vpop.f32.mrf.mxu2 }
 0x230   : > { %v1970_v30 = vpop.f32.mrf.mxu2 }
 0x238   : > { %v1973_v39 = vpop.f32.mrf.mxu2 }
 0x239   : > { %v1987_v14 = vpop.f32.mrf.mxu3 }
 0x23b   : > { %v1929_v16 = vpop.f32.mrf.mxu1 }
 0x23c   : > { %v1930_v36 = vadd.f32 %v1929_v16, %v3439_v46 }
 0x23e   : > { %v1959_v44 = vadd.f32 %v1958_v8, %v1930_v36 }
 0x240   : > { %v1988_v48 = vadd.f32 %v1987_v14, %v1959_v44 }
 0x241   : > { %v1989_v18 = vpop.f32.mrf.mxu3 }
 0x243   : > { %v1931_v19 = vpop.f32.mrf.mxu1 }
 0x244   : > { %v1932_v49 = vadd.f32 %v1931_v19, %v3456_v0 }
 0x246   : > { %v1961_v56 = vadd.f32 %v1960_v10, %v1932_v49  ;;  %v1913_v10 = vadd.f32 %v1912_v17, %v3474_v26 }
 0x248   : > { %v1990_v62 = vadd.f32 %v1989_v18, %v1961_v56 }
 0x249   : > { %v1992_v23 = vpop.f32.mrf.mxu3 }
 0x24b   : > { %v1934_v22 = vpop.f32.mrf.mxu1 }
 0x24c   : > { %v1935_v38 = vadd.f32 %v1934_v22, %v3460_v11  ;;  %v1975_v11 = vpop.f32.mrf.mxu2  ;;  %v2047_v22 = vpop.permute.xlu2 %2046 }
 0x24e   : > { %v1964_v45 = vadd.f32 %v1963_v15, %v1935_v38 }
 0x250   : > { %v1993_v50 = vadd.f32 %v1992_v23, %v1964_v45 }
 0x251   : > { %v1994_v27 = vpop.f32.mrf.mxu3 }
 0x253   : > { %v1936_v25 = vpop.f32.mrf.mxu1 }
 0x254   : > { %v1937_v51 = vadd.f32 %v1936_v25, %v3478_v29 }
 0x256   : > { %v1966_v57 = vadd.f32 %v1965_v20, %v1937_v51 }
 0x258   : > { %v1995_v63 = vadd.f32 %v1994_v27, %v1966_v57 }
 0x259   : > { %v1997_v33 = vpop.f32.mrf.mxu3 }
 0x25b   : > { %v1939_v31 = vpop.f32.mrf.mxu1  ;;  %v2016_v32 = vpop.f32.mrf.mxu0 }
 0x25c   : > { %v2017_v46 = vadd.f32 %v2016_v32, %v1988_v48  ;;  %v1940_v0 = vadd.f32 %v1939_v31, %v1911_v35 }
 0x25e   : > { %v1969_v7 = vadd.f32 %v1968_v37, %v1940_v0 }
 0x260   : > { %v1998_v14 = vadd.f32 %v1997_v33, %v1969_v7 }
 0x261   : > { %v1999_v59 = vpop.f32.mrf.mxu3 }
 0x262   : > { %v2031_v9 = vpop.f32.mrf.mxu2 }
 0x263   : > { %v1941_v40 = vpop.f32.mrf.mxu1  ;;  %v2018_v41 = vpop.f32.mrf.mxu0 }
 0x264   : > { %v2019_v29 = vadd.f32 %v2018_v41, %v1990_v62  ;;  %v1942_v53 = vadd.f32 %v1941_v40, %v1913_v10 }
 0x266   : > { %v1971_v20 = vadd.f32 %v1970_v30, %v1942_v53  ;;  %v2052_v30 = vpop.permute.xlu0 %2051 }
 0x268   : > { %v2000_v25 = vadd.f32 %v1999_v59, %v1971_v20 }
 0x269   : > { %v2002_v1 = vpop.f32.mrf.mxu3 }
 0x26a   : > { %v2033_v24 = vpop.f32.mrf.mxu2 }
 0x26b   : > { %v1944_v52 = vpop.f32.mrf.mxu1  ;;  %v2021_v28 = vpop.f32.mrf.mxu0 }
 0x26c   : > { %v2022_v54 = vadd.f32 %v2021_v28, %v1993_v50  ;;  %v1945_v60 = vadd.f32 %v1944_v52, %v1916_v55 }
 0x26e   : > { %v2036_v58 = vmax.f32 %v2017_v46, %v2022_v54  ;;  %v1974_v4 = vadd.f32 %v1973_v39, %v1945_v60 }
 0x270   : > { %v2003_v43 = vadd.f32 %v2002_v1, %v1974_v4 }
 0x271   : > { %v2004_v19 = vpop.f32.mrf.mxu3 }
 0x272   : > { %v2032_v15 = vadd.f32 %v2031_v9, %v2003_v43 }
 0x273   : > { %v2023_v2 = vpop.f32.mrf.mxu0  ;;  %v1946_v6 = vpop.f32.mrf.mxu1 }
 0x274   : > { %v2024_v5 = vadd.f32 %v2023_v2, %v1995_v63  ;;  %v1947_v13 = vadd.f32 %v1946_v6, %v1918_v3 }
 0x276   : > { %v2037_v8 = vmax.f32 %v2019_v29, %v2024_v5  ;;  %v1976_v16 = vadd.f32 %v1975_v11, %v1947_v13 }
 0x278   : > { %v2005_v23 = vadd.f32 %v2004_v19, %v1976_v16 }
 0x27a   : > { %v2034_v17 = vadd.f32 %v2033_v24, %v2005_v23 }
 0x27b   : > { %v2026_v12 = vpop.f32.mrf.mxu0 }
 0x27c   : > { %v2027_v18 = vadd.f32 %v2026_v12, %v1998_v14 }
 0x27e   : > { %v2038_v21 = vmax.f32 %v2027_v18, %v2032_v15 }
 0x280   : > { %v2040_v37 = vmax.f32 %v2036_v58, %v2038_v21 }
 0x282   : > { %v2054_v27 = vadd.f32 %v2047_v22, %v2040_v37 }
 0x283   : > { %v2028_v26 = vpop.f32.mrf.mxu0 }
 0x284   : > { %v2056_v31 = vmax.f32 %v2054_v27, 0.0  ;;  %v2029_v32 = vadd.f32 %v2028_v26, %v2000_v25 }
 0x286   : > { %2059 = vst.msk [vmem:[%s170_s9] sm:$0xff] %vm2058_vm1, %v2056_v31  ;;  %v2039_v33 = vmax.f32 %v2029_v32, %v2034_v17 }
 0x288   : > { %v2041_v34 = vmax.f32 %v2037_v8, %v2039_v33 }
 0x28a   : > { %v2055_v36 = vadd.f32 %v2052_v30, %v2041_v34 }
 0x28c   : > { %v2057_v38 = vmax.f32 %v2055_v36, 0.0 }
 0x28e   : > { %2060 = vst.msk [vmem:[%s170_s9 + $0x8] sm:$0xff] %vm2058_vm1, %v2057_v38 }
 0x28f PF: > { %s13_s12 = sadd.s32 1, %s2818_s12  }
 0x290   : > { %p10_p4 = scmp.ge.s32.totalorder %s13_s12, 4  }
 0x292   :  { %12 = sbr.rel (!%p10_p4) target bundleno = 1 (0x1), region = 65 }

</bundles_post_ra>
